<compile_context>
chip_gen: v7x
topology: tpu7x:2x2x1
jax: 0.10.0
libtpu: 0.0.40
codegen_flags: <defaults>
</compile_context>

<pallas_src>
import math

import numpy as np

import jax
import jax.numpy as jnp
from jax.experimental import pallas as pl
from jax.experimental.pallas import tpu as pltpu

# ----------------------------- configuration --------------------------------
B = 2            # batch
C = 4            # input channels
IMG = 16         # image height/width
PATCH = 4        # patch size
GRIDHW = IMG // PATCH
N_PATCH = GRIDHW * GRIDHW        # 16 patches per image
EMBED = 32                       # embedding dim
DEPTH = 2                        # transformer encoder layers
N_HEADS = 4
HEAD_DIM = EMBED // N_HEADS      # 8
MLP_DIM = 64                     # transformer feed-forward dim
NUM_CLASSES = 10
CLASS_PAD = 128                  # lane-dense classifier output width
FLAT = EMBED * N_PATCH           # 512  (flattened encoder output)
HEAD_HID = FLAT // 2             # 256  (MultiLayerPredictor hidden dim)
BN = B * N_PATCH                 # 32 tokens across the whole batch
HBN = N_HEADS * BN               # 128  head-stacked rows / score lanes
LN_EPS = 1e-5
NEG_INF = -1e30


# ------------------------------ kernel helpers -------------------------------
def _layernorm(x, g, b, eps=LN_EPS):
    mu = jnp.mean(x, axis=-1, keepdims=True)
    var = jnp.mean((x - mu) ** 2, axis=-1, keepdims=True)
    return (x - mu) * jax.lax.rsqrt(var + eps) * g + b


def _gelu_exact(x):
    # PyTorch nn.GELU default = exact erf formulation.
    return 0.5 * x * (1.0 + jax.lax.erf(x * (1.0 / math.sqrt(2.0))))


# --------------------- precomputed (host-side) constants ---------------------
def _build_constants():
    """Compile-time 0/1 selection matrices & masks.

    Precomputed on the host (perf-review item: keeps ~100 per-call VPU iota/
    compare ops and their vreg pressure out of the kernel; extra DMA ~200 KiB).
    """
    hs = np.arange(HBN)                                   # h*BN + j
    c = np.arange(EMBED)
    i = np.arange(BN)
    f = np.arange(FLAT)

    # (HBN, EMBED): head block h keeps only head-h's embedding columns.
    vmask = ((c[None, :] // HEAD_DIM) == (hs[:, None] // BN)).astype(np.float32)
    # (BN, HBN): additive batch mask — tokens attend only within their image.
    j = hs % BN
    attn_bias = np.where((i[:, None] // N_PATCH) == (j[None, :] // N_PATCH),
                         0.0, NEG_INF).astype(np.float32)
    # (HBN, HBN): block-diagonal ones → per-head softmax denominators in one matmul.
    denom_mat = ((hs[:, None] // BN) == (hs[None, :] // BN)).astype(np.float32)
    # (BN, BN): within-image row-sum matrix for head-LayerNorm statistics.
    bsum_mat = ((i[:, None] // N_PATCH) == (i[None, :] // N_PATCH)).astype(np.float32)
    # Flatten (BN, D) -> (B, N*D):  spread[r, f] = x[r, f % D], kept where
    # (r % N) == f // D, then per-image row gather with gather_b.
    t_mat = (np.arange(EMBED)[:, None] == (f[None, :] % EMBED)).astype(np.float32)
    place = ((i[:, None] % N_PATCH) == (f[None, :] // EMBED)).astype(np.float32)
    gather_b = ((i[None, :] // N_PATCH) == np.arange(B)[:, None]).astype(np.float32)

    return (jnp.asarray(vmask), jnp.asarray(attn_bias), jnp.asarray(denom_mat),
            jnp.asarray(bsum_mat), jnp.asarray(t_mat), jnp.asarray(place),
            jnp.asarray(gather_b))


_CONSTS = _build_constants()


# ------------------------------- fused kernel --------------------------------
def vit_fused_kernel(
    # data + small weights (auto-copied into VMEM before the body starts)
    patches_ref, pe_w_ref, pe_b_ref,
    wqkv_ref, bqkv_ref, wo_ref, bo_ref,
    ln1g_ref, ln1b_ref, ln2g_ref, ln2b_ref,
    w1_ref, b1_ref, w2_ref, b2_ref,
    hln_b_ref, hb1_ref, hb2_ref,
    # MLP-head weights left in HBM (pl.ANY); DMA'd manually so the copy
    # overlaps encoder compute instead of blocking kernel entry.
    hw1_hbm_ref, hw2_hbm_ref,
    # precomputed constants
    vmask_ref, attn_bias_ref, denom_ref, bsum_ref, t_mat_ref, place_g_ref,
    gather_b_ref,
    # output
    o_ref,
    # scratch
    hw1_vmem, hw2_vmem, dma_sems,
):
    f32 = jnp.float32
    bf16 = jnp.bfloat16
    scale = 1.0 / math.sqrt(HEAD_DIM)

    # ---- start the (large, late-used) MLP-head weight DMAs right away ------
    cp_w1 = pltpu.make_async_copy(hw1_hbm_ref, hw1_vmem, dma_sems.at[0])
    cp_w2 = pltpu.make_async_copy(hw2_hbm_ref, hw2_vmem, dma_sems.at[1])
    cp_w1.start()
    cp_w2.start()

    # ---- patch embedding: (BN, C*P*P) @ (C*P*P, D) + b ----------------------
    h = jnp.dot(patches_ref[...].astype(bf16), pe_w_ref[...],
                preferred_element_type=f32) + pe_b_ref[...]          # (BN, D) f32

    # ---- transformer encoder layers (post-norm, ReLU FF), unrolled ----------
    for l in range(DEPTH):
        # fused QKV projection: one (BN, D) @ (D, 3D) bf16 matmul, f32 accumulate
        qkv = jnp.dot(h.astype(bf16), wqkv_ref[l],
                      preferred_element_type=f32) + bqkv_ref[l]      # (BN, 3D)
        q = qkv[:, 0:EMBED] * scale
        k = qkv[:, EMBED:2 * EMBED]
        v = qkv[:, 2 * EMBED:3 * EMBED]

        # Head-blocked K / V: 4 sublane-stacked copies, with columns that do
        # not belong to that head block zeroed.  All heads are then handled by
        # three lane-dense matmuls instead of 12 tiny per-head ones.
        k_blk = jnp.concatenate([k, k, k, k], axis=0) * vmask_ref[...]   # (HBN, D)
        v_blk = jnp.concatenate([v, v, v, v], axis=0) * vmask_ref[...]   # (HBN, D)

        # scores for all heads at once: (BN, HBN) = (32, 128) dense lanes
        s = jax.lax.dot_general(q, k_blk, (((1,), (1,)), ((), ())),
                                preferred_element_type=f32) + attn_bias_ref[...]

        # Per-head softmax: a row-global max is a valid upper bound for every
        # head block (the shift cancels in the normalisation); per-head-block
        # denominators come from one matmul with a block-diagonal ones matrix.
        m = jnp.max(s, axis=-1, keepdims=True)
        p = jnp.exp(s - m)
        denom = jnp.dot(p, denom_ref[...], preferred_element_type=f32)   # (BN, HBN)
        p = p * pl.reciprocal(jnp.maximum(denom, 1e-30), approx=True)

        attn = jnp.dot(p, v_blk, preferred_element_type=f32)             # (BN, D)
        attn = jnp.dot(attn.astype(bf16), wo_ref[l],
                       preferred_element_type=f32) + bo_ref[l]

        y = _layernorm(h + attn, ln1g_ref[l], ln1b_ref[l])               # post-norm 1
        ff = jnp.dot(y.astype(bf16), w1_ref[l],
                     preferred_element_type=f32) + b1_ref[l]
        ff = jnp.maximum(ff, 0.0)                                        # ReLU
        ff = jnp.dot(ff.astype(bf16), w2_ref[l],
                     preferred_element_type=f32) + b2_ref[l]
        h = _layernorm(y + ff, ln2g_ref[l], ln2b_ref[l])                 # post-norm 2

    # ---- head LayerNorm over the flattened N*D features (stats per image) ---
    # Segment sums via one (BN,BN) 0/1 matmul + a lane reduction (replaces the
    # per-image Python loop of double reductions + selects).
    seg_sum = jnp.dot(bsum_ref[...], h, preferred_element_type=f32)        # (BN, D)
    seg_sq = jnp.dot(bsum_ref[...], h * h, preferred_element_type=f32)     # (BN, D)
    mean_r = jnp.sum(seg_sum, axis=-1, keepdims=True) * (1.0 / FLAT)       # (BN, 1)
    ex2_r = jnp.sum(seg_sq, axis=-1, keepdims=True) * (1.0 / FLAT)
    inv_r = jax.lax.rsqrt(jnp.maximum(ex2_r - mean_r * mean_r, 0.0) + LN_EPS)
    xn = (h - mean_r) * inv_r                                              # (BN, D)

    # ---- flatten to a lane-dense (B, N*D) slab via precomputed selection
    #      matmuls (head-LayerNorm gamma already folded into place_g) ---------
    spread = jnp.dot(xn, t_mat_ref[...], preferred_element_type=f32)       # (BN, FLAT)
    flat = jnp.dot(gather_b_ref[...], spread * place_g_ref[...],
                   preferred_element_type=f32) + hln_b_ref[...]            # (B, FLAT)

    # ---- MLP head: Linear -> exact GELU -> Linear (classes zero-padded) -----
    cp_w1.wait()
    hid = jnp.dot(flat.astype(bf16), hw1_vmem[...],
                  preferred_element_type=f32) + hb1_ref[...]
    hid = _gelu_exact(hid)
    cp_w2.wait()
    o_ref[...] = jnp.dot(hid.astype(bf16), hw2_vmem[...],
                         preferred_element_type=f32) + hb2_ref[...]


# ------------------------------ pallas wrapper --------------------------------
def vit_forward(x, params):
    Bx, Cx, Hx, Wx = x.shape
    gh, gw = Hx // PATCH, Wx // PATCH

    # Patch extraction (glue): (B, C, H, W) -> (B*N, C*P*P) in (c, ph, pw) order —
    # identical to Conv2d(C, D, kernel=P, stride=P) followed by flattening.
    patches = (
        x.reshape(Bx, Cx, gh, PATCH, gw, PATCH)
        .transpose(0, 2, 4, 1, 3, 5)
        .reshape(Bx * gh * gw, Cx * PATCH * PATCH)
    )

    vmask, attn_bias, denom_mat, bsum_mat, t_mat, place, gather_b = _CONSTS
    # Fold the head-LayerNorm gamma into the flatten placement mask (exact:
    # the mask is 0/1 and gamma is constant across the gathered rows).
    place_g = place * params["head_ln_g"]

    vmem = pl.BlockSpec(memory_space=pltpu.MemorySpace.VMEM)
    hbm = pl.BlockSpec(memory_space=pl.ANY)
    in_specs = [vmem] * 18 + [hbm, hbm] + [vmem] * 7

    logits_padded = pl.pallas_call(
        vit_fused_kernel,
        out_shape=jax.ShapeDtypeStruct((Bx, CLASS_PAD), jnp.float32),
        in_specs=in_specs,
        out_specs=pl.BlockSpec(memory_space=pltpu.MemorySpace.VMEM),
        scratch_shapes=[
            pltpu.VMEM((FLAT, HEAD_HID), jnp.bfloat16),     # head_w1 landing buffer
            pltpu.VMEM((HEAD_HID, CLASS_PAD), jnp.bfloat16),  # head_w2 landing buffer
            pltpu.SemaphoreType.DMA((2,)),
        ],
    )(
        patches,
        params["pe_w"], params["pe_b"],
        params["wqkv"], params["bqkv"], params["wo"], params["bo"],
        params["ln1g"], params["ln1b"], params["ln2g"], params["ln2b"],
        params["w1"], params["b1"], params["w2"], params["b2"],
        params["head_ln_b"], params["head_b1"], params["head_b2"],
        params["head_w1"], params["head_w2"],
        vmask, attn_bias, denom_mat, bsum_mat, t_mat, place_g, gather_b,
    )
    return logits_padded[:, :NUM_CLASSES]


# ----------------------------- parameter init ---------------------------------
def init_params(key):
    keys = iter(jax.random.split(key, 32))
    f32 = jnp.float32

    def rnd(shape, scale=0.05, dtype=jnp.bfloat16):
        w = scale * jax.random.normal(next(keys), shape, dtype=jnp.float32)
        return w.astype(dtype)

    params = {
        # patch embedding == Conv2d(C, D, kernel=P, stride=P) as a matmul
        "pe_w": rnd((C * PATCH * PATCH, EMBED)),
        "pe_b": rnd((1, EMBED), dtype=f32),
        # transformer encoder layers, stacked along a leading DEPTH axis;
        # weights bf16 (MXU operands / halved DMA), biases & LN params f32.
        "wqkv": rnd((DEPTH, EMBED, 3 * EMBED)),          # fused in_proj weight
        "bqkv": rnd((DEPTH, 1, 3 * EMBED), dtype=f32),   # fused in_proj bias
        "wo": rnd((DEPTH, EMBED, EMBED)),                # out_proj weight
        "bo": rnd((DEPTH, 1, EMBED), dtype=f32),         # out_proj bias
        "ln1g": jnp.ones((DEPTH, 1, EMBED), f32),
        "ln1b": jnp.zeros((DEPTH, 1, EMBED), f32),
        "ln2g": jnp.ones((DEPTH, 1, EMBED), f32),
        "ln2b": jnp.zeros((DEPTH, 1, EMBED), f32),
        "w1": rnd((DEPTH, EMBED, MLP_DIM)),
        "b1": rnd((DEPTH, 1, MLP_DIM), dtype=f32),
        "w2": rnd((DEPTH, MLP_DIM, EMBED)),
        "b2": rnd((DEPTH, 1, EMBED), dtype=f32),
        # MLP head
        "head_ln_g": jnp.ones((1, FLAT), f32),
        "head_ln_b": jnp.zeros((1, FLAT), f32),
        "head_w1": rnd((FLAT, HEAD_HID)),
        "head_b1": rnd((1, HEAD_HID), dtype=f32),
    }
    # classifier weights zero-padded to a lane-dense 128-wide output
    w2c = rnd((HEAD_HID, NUM_CLASSES))
    b2c = rnd((1, NUM_CLASSES), dtype=f32)
    params["head_w2"] = (
        jnp.zeros((HEAD_HID, CLASS_PAD), jnp.bfloat16).at[:, :NUM_CLASSES].set(w2c)
    )
    params["head_b2"] = (
        jnp.zeros((1, CLASS_PAD), f32).at[:, :NUM_CLASSES].set(b2c)
    )
    return params


# ----------------------------------- main --------------------------------------
if __name__ == "__main__":
    key = jax.random.PRNGKey(0)
    k_param, k_input = jax.random.split(key)
    params = init_params(k_param)
    x = jax.random.normal(k_input, (B, C, IMG, IMG), dtype=jnp.float32)

    logits = jax.jit(vit_forward)(x, params)
    logits = jax.block_until_ready(logits)
    assert logits.shape == (B, NUM_CLASSES)
    assert bool(jnp.all(jnp.isfinite(logits)))
    print("KERNEL_OK")
</pallas_src>

<mosaic_0001>
module attributes {stable_mosaic.version = 11 : i64} {
  func.func @vit_fused_kernel(%arg0: memref<32x64xf32, #tpu.memory_space<vmem>>, %arg1: memref<64x32xbf16, #tpu.memory_space<vmem>>, %arg2: memref<1x32xf32, #tpu.memory_space<vmem>>, %arg3: memref<2x32x96xbf16, #tpu.memory_space<vmem>>, %arg4: memref<2x1x96xf32, #tpu.memory_space<vmem>>, %arg5: memref<2x32x32xbf16, #tpu.memory_space<vmem>>, %arg6: memref<2x1x32xf32, #tpu.memory_space<vmem>>, %arg7: memref<2x1x32xf32, #tpu.memory_space<vmem>>, %arg8: memref<2x1x32xf32, #tpu.memory_space<vmem>>, %arg9: memref<2x1x32xf32, #tpu.memory_space<vmem>>, %arg10: memref<2x1x32xf32, #tpu.memory_space<vmem>>, %arg11: memref<2x32x64xbf16, #tpu.memory_space<vmem>>, %arg12: memref<2x1x64xf32, #tpu.memory_space<vmem>>, %arg13: memref<2x64x32xbf16, #tpu.memory_space<vmem>>, %arg14: memref<2x1x32xf32, #tpu.memory_space<vmem>>, %arg15: memref<1x512xf32, #tpu.memory_space<vmem>>, %arg16: memref<1x256xf32, #tpu.memory_space<vmem>>, %arg17: memref<1x128xf32, #tpu.memory_space<vmem>>, %arg18: memref<512x256xbf16, #tpu.memory_space<any>>, %arg19: memref<256x128xbf16, #tpu.memory_space<any>>, %arg20: memref<128x32xf32, #tpu.memory_space<vmem>>, %arg21: memref<32x128xf32, #tpu.memory_space<vmem>>, %arg22: memref<128x128xf32, #tpu.memory_space<vmem>>, %arg23: memref<32x32xf32, #tpu.memory_space<vmem>>, %arg24: memref<32x512xf32, #tpu.memory_space<vmem>>, %arg25: memref<32x512xf32, #tpu.memory_space<vmem>>, %arg26: memref<2x32xf32, #tpu.memory_space<vmem>>, %arg27: memref<2x128xf32, #tpu.memory_space<vmem>>, %arg28: memref<512x256xbf16, #tpu.memory_space<vmem>>, %arg29: memref<256x128xbf16, #tpu.memory_space<vmem>>, %arg30: memref<2x!tpu.dma_semaphore, #tpu.memory_space<semaphore_mem>>) attributes {dimension_semantics = [], scalar_prefetch = 0 : i64, scratch_operands = 3 : i64, tpu.core_type = #tpu.core_type<tc>} {
    %c0_i32 = arith.constant 0 : i32
    %0 = tpu.memref_slice %arg30[%c0_i32] : memref<2x!tpu.dma_semaphore, #tpu.memory_space<semaphore_mem>> -> memref<1x!tpu.dma_semaphore, #tpu.memory_space<semaphore_mem>>
    %1 = tpu.memref_squeeze %0 : memref<1x!tpu.dma_semaphore, #tpu.memory_space<semaphore_mem>> -> memref<!tpu.dma_semaphore, #tpu.memory_space<semaphore_mem>>
    tpu.enqueue_dma source(%arg18 : memref<512x256xbf16, #tpu.memory_space<any>>) target(%arg28 : memref<512x256xbf16, #tpu.memory_space<vmem>>) target_semaphore(%1 : memref<!tpu.dma_semaphore, #tpu.memory_space<semaphore_mem>>)
    %c1_i32 = arith.constant 1 : i32
    %2 = tpu.memref_slice %arg30[%c1_i32] : memref<2x!tpu.dma_semaphore, #tpu.memory_space<semaphore_mem>> -> memref<1x!tpu.dma_semaphore, #tpu.memory_space<semaphore_mem>>
    %3 = tpu.memref_squeeze %2 : memref<1x!tpu.dma_semaphore, #tpu.memory_space<semaphore_mem>> -> memref<!tpu.dma_semaphore, #tpu.memory_space<semaphore_mem>>
    tpu.enqueue_dma source(%arg19 : memref<256x128xbf16, #tpu.memory_space<any>>) target(%arg29 : memref<256x128xbf16, #tpu.memory_space<vmem>>) target_semaphore(%3 : memref<!tpu.dma_semaphore, #tpu.memory_space<semaphore_mem>>)
    %c0 = arith.constant 0 : index
    %c0_0 = arith.constant 0 : index
    %4 = vector.load %arg0[%c0, %c0_0] : memref<32x64xf32, #tpu.memory_space<vmem>>, vector<32x64xf32>
    %5 = arith.truncf %4 : vector<32x64xf32> to vector<32x64xbf16>
    %c0_1 = arith.constant 0 : index
    %c0_2 = arith.constant 0 : index
    %6 = vector.load %arg1[%c0_1, %c0_2] : memref<64x32xbf16, #tpu.memory_space<vmem>>, vector<64x32xbf16>
    %cst = arith.constant dense<0.000000e+00> : vector<32x32xf32>
    %7 = tpu.matmul %5, %6, %cst {dimension_numbers = #tpu.dot_dimension_numbers<[1], [0], [0], [1], [0, 0, 1, 1], [], []>} : vector<32x64xbf16>, vector<64x32xbf16>, vector<32x32xf32> -> vector<32x32xf32>
    %c0_3 = arith.constant 0 : index
    %c0_4 = arith.constant 0 : index
    %8 = vector.load %arg2[%c0_3, %c0_4] : memref<1x32xf32, #tpu.memory_space<vmem>>, vector<1x32xf32>
    %9 = vector.broadcast %8 : vector<1x32xf32> to vector<32x32xf32>
    %10 = arith.addf %7, %9 : vector<32x32xf32>
    %11 = arith.truncf %10 : vector<32x32xf32> to vector<32x32xbf16>
    %c0_5 = arith.constant 0 : index
    %c0_6 = arith.constant 0 : index
    %c0_7 = arith.constant 0 : index
    %12 = vector.load %arg3[%c0_5, %c0_6, %c0_7] : memref<2x32x96xbf16, #tpu.memory_space<vmem>>, vector<1x32x96xbf16>
    %13 = vector.shape_cast %12 : vector<1x32x96xbf16> to vector<32x96xbf16>
    %cst_8 = arith.constant dense<0.000000e+00> : vector<32x96xf32>
    %14 = tpu.matmul %11, %13, %cst_8 {dimension_numbers = #tpu.dot_dimension_numbers<[1], [0], [0], [1], [0, 0, 1, 1], [], []>} : vector<32x32xbf16>, vector<32x96xbf16>, vector<32x96xf32> -> vector<32x96xf32>
    %c0_9 = arith.constant 0 : index
    %c0_10 = arith.constant 0 : index
    %c0_11 = arith.constant 0 : index
    %15 = vector.load %arg4[%c0_9, %c0_10, %c0_11] : memref<2x1x96xf32, #tpu.memory_space<vmem>>, vector<1x1x96xf32>
    %16 = vector.shape_cast %15 : vector<1x1x96xf32> to vector<1x96xf32>
    %17 = vector.broadcast %16 : vector<1x96xf32> to vector<32x96xf32>
    %18 = arith.addf %14, %17 : vector<32x96xf32>
    %19 = vector.extract_strided_slice %18 {offsets = [0, 0], sizes = [32, 32], strides = [1, 1]} : vector<32x96xf32> to vector<32x32xf32>
    %cst_12 = arith.constant 0.353553385 : f32
    %20 = vector.broadcast %cst_12 : f32 to vector<32x32xf32>
    %21 = arith.mulf %19, %20 : vector<32x32xf32>
    %22 = vector.extract_strided_slice %18 {offsets = [0, 32], sizes = [32, 32], strides = [1, 1]} : vector<32x96xf32> to vector<32x32xf32>
    %23 = vector.extract_strided_slice %18 {offsets = [0, 64], sizes = [32, 32], strides = [1, 1]} : vector<32x96xf32> to vector<32x32xf32>
    %24 = tpu.concatenate %22, %22, %22, %22 in 0 : vector<32x32xf32>, vector<32x32xf32>, vector<32x32xf32>, vector<32x32xf32> -> vector<128x32xf32>
    %c0_13 = arith.constant 0 : index
    %c0_14 = arith.constant 0 : index
    %25 = vector.load %arg20[%c0_13, %c0_14] : memref<128x32xf32, #tpu.memory_space<vmem>>, vector<128x32xf32>
    %26 = arith.mulf %24, %25 : vector<128x32xf32>
    %27 = tpu.concatenate %23, %23, %23, %23 in 0 : vector<32x32xf32>, vector<32x32xf32>, vector<32x32xf32>, vector<32x32xf32> -> vector<128x32xf32>
    %c0_15 = arith.constant 0 : index
    %c0_16 = arith.constant 0 : index
    %28 = vector.load %arg20[%c0_15, %c0_16] : memref<128x32xf32, #tpu.memory_space<vmem>>, vector<128x32xf32>
    %29 = arith.mulf %27, %28 : vector<128x32xf32>
    %cst_17 = arith.constant dense<0.000000e+00> : vector<32x128xf32>
    %30 = tpu.matmul %21, %26, %cst_17 {dimension_numbers = #tpu.dot_dimension_numbers<[1], [1], [0], [0], [0, 0, 1, 0], [], []>} : vector<32x32xf32>, vector<128x32xf32>, vector<32x128xf32> -> vector<32x128xf32>
    %c0_18 = arith.constant 0 : index
    %c0_19 = arith.constant 0 : index
    %31 = vector.load %arg21[%c0_18, %c0_19] : memref<32x128xf32, #tpu.memory_space<vmem>>, vector<32x128xf32>
    %32 = arith.addf %30, %31 : vector<32x128xf32>
    %cst_20 = arith.constant dense<0xFF800000> : vector<32xf32>
    %33 = vector.multi_reduction <maximumf>, %32, %cst_20 [1] : vector<32x128xf32> to vector<32xf32>
    %34 = vector.shape_cast %33 : vector<32xf32> to vector<32x1xf32>
    %35 = vector.broadcast %34 : vector<32x1xf32> to vector<32x128xf32>
    %36 = arith.subf %32, %35 : vector<32x128xf32>
    %37 = math.exp %36 : vector<32x128xf32>
    %c0_21 = arith.constant 0 : index
    %c0_22 = arith.constant 0 : index
    %38 = vector.load %arg22[%c0_21, %c0_22] : memref<128x128xf32, #tpu.memory_space<vmem>>, vector<128x128xf32>
    %cst_23 = arith.constant dense<0.000000e+00> : vector<32x128xf32>
    %39 = tpu.matmul %37, %38, %cst_23 {dimension_numbers = #tpu.dot_dimension_numbers<[1], [0], [0], [1], [0, 0, 1, 1], [], []>} : vector<32x128xf32>, vector<128x128xf32>, vector<32x128xf32> -> vector<32x128xf32>
    %cst_24 = arith.constant 1.000000e-30 : f32
    %40 = vector.broadcast %cst_24 : f32 to vector<32x128xf32>
    %41 = arith.maximumf %39, %40 : vector<32x128xf32>
    %42 = tpu.reciprocal %41 {approx = true} : vector<32x128xf32> -> vector<32x128xf32>
    %43 = arith.mulf %37, %42 : vector<32x128xf32>
    %cst_25 = arith.constant dense<0.000000e+00> : vector<32x32xf32>
    %44 = tpu.matmul %43, %29, %cst_25 {dimension_numbers = #tpu.dot_dimension_numbers<[1], [0], [0], [1], [0, 0, 1, 1], [], []>} : vector<32x128xf32>, vector<128x32xf32>, vector<32x32xf32> -> vector<32x32xf32>
    %45 = arith.truncf %44 : vector<32x32xf32> to vector<32x32xbf16>
    %c0_26 = arith.constant 0 : index
    %c0_27 = arith.constant 0 : index
    %c0_28 = arith.constant 0 : index
    %46 = vector.load %arg5[%c0_26, %c0_27, %c0_28] : memref<2x32x32xbf16, #tpu.memory_space<vmem>>, vector<1x32x32xbf16>
    %47 = vector.shape_cast %46 : vector<1x32x32xbf16> to vector<32x32xbf16>
    %cst_29 = arith.constant dense<0.000000e+00> : vector<32x32xf32>
    %48 = tpu.matmul %45, %47, %cst_29 {dimension_numbers = #tpu.dot_dimension_numbers<[1], [0], [0], [1], [0, 0, 1, 1], [], []>} : vector<32x32xbf16>, vector<32x32xbf16>, vector<32x32xf32> -> vector<32x32xf32>
    %c0_30 = arith.constant 0 : index
    %c0_31 = arith.constant 0 : index
    %c0_32 = arith.constant 0 : index
    %49 = vector.load %arg6[%c0_30, %c0_31, %c0_32] : memref<2x1x32xf32, #tpu.memory_space<vmem>>, vector<1x1x32xf32>
    %50 = vector.shape_cast %49 : vector<1x1x32xf32> to vector<1x32xf32>
    %51 = vector.broadcast %50 : vector<1x32xf32> to vector<32x32xf32>
    %52 = arith.addf %48, %51 : vector<32x32xf32>
    %53 = arith.addf %10, %52 : vector<32x32xf32>
    %c0_33 = arith.constant 0 : index
    %c0_34 = arith.constant 0 : index
    %c0_35 = arith.constant 0 : index
    %54 = vector.load %arg7[%c0_33, %c0_34, %c0_35] : memref<2x1x32xf32, #tpu.memory_space<vmem>>, vector<1x1x32xf32>
    %55 = vector.shape_cast %54 : vector<1x1x32xf32> to vector<1x32xf32>
    %c0_36 = arith.constant 0 : index
    %c0_37 = arith.constant 0 : index
    %c0_38 = arith.constant 0 : index
    %56 = vector.load %arg8[%c0_36, %c0_37, %c0_38] : memref<2x1x32xf32, #tpu.memory_space<vmem>>, vector<1x1x32xf32>
    %57 = vector.shape_cast %56 : vector<1x1x32xf32> to vector<1x32xf32>
    %cst_39 = arith.constant dense<0.000000e+00> : vector<32xf32>
    %58 = vector.multi_reduction <add>, %53, %cst_39 [1] : vector<32x32xf32> to vector<32xf32>
    %59 = vector.shape_cast %58 : vector<32xf32> to vector<32x1xf32>
    %cst_40 = arith.constant 3.200000e+01 : f32
    %60 = vector.broadcast %cst_40 : f32 to vector<32x1xf32>
    %61 = arith.divf %59, %60 : vector<32x1xf32>
    %62 = vector.broadcast %61 : vector<32x1xf32> to vector<32x32xf32>
    %63 = arith.subf %53, %62 : vector<32x32xf32>
    %64 = arith.mulf %63, %63 : vector<32x32xf32>
    %cst_41 = arith.constant dense<0.000000e+00> : vector<32xf32>
    %65 = vector.multi_reduction <add>, %64, %cst_41 [1] : vector<32x32xf32> to vector<32xf32>
    %66 = vector.shape_cast %65 : vector<32xf32> to vector<32x1xf32>
    %cst_42 = arith.constant 3.200000e+01 : f32
    %67 = vector.broadcast %cst_42 : f32 to vector<32x1xf32>
    %68 = arith.divf %66, %67 : vector<32x1xf32>
    %69 = vector.broadcast %61 : vector<32x1xf32> to vector<32x32xf32>
    %70 = arith.subf %53, %69 : vector<32x32xf32>
    %cst_43 = arith.constant 9.99999974E-6 : f32
    %71 = vector.broadcast %cst_43 : f32 to vector<32x1xf32>
    %72 = arith.addf %68, %71 : vector<32x1xf32>
    %73 = math.rsqrt %72 : vector<32x1xf32>
    %74 = vector.broadcast %73 : vector<32x1xf32> to vector<32x32xf32>
    %75 = arith.mulf %70, %74 : vector<32x32xf32>
    %76 = vector.broadcast %55 : vector<1x32xf32> to vector<32x32xf32>
    %77 = arith.mulf %75, %76 : vector<32x32xf32>
    %78 = vector.broadcast %57 : vector<1x32xf32> to vector<32x32xf32>
    %79 = arith.addf %77, %78 : vector<32x32xf32>
    %80 = arith.truncf %79 : vector<32x32xf32> to vector<32x32xbf16>
    %c0_44 = arith.constant 0 : index
    %c0_45 = arith.constant 0 : index
    %c0_46 = arith.constant 0 : index
    %81 = vector.load %arg11[%c0_44, %c0_45, %c0_46] : memref<2x32x64xbf16, #tpu.memory_space<vmem>>, vector<1x32x64xbf16>
    %82 = vector.shape_cast %81 : vector<1x32x64xbf16> to vector<32x64xbf16>
    %cst_47 = arith.constant dense<0.000000e+00> : vector<32x64xf32>
    %83 = tpu.matmul %80, %82, %cst_47 {dimension_numbers = #tpu.dot_dimension_numbers<[1], [0], [0], [1], [0, 0, 1, 1], [], []>} : vector<32x32xbf16>, vector<32x64xbf16>, vector<32x64xf32> -> vector<32x64xf32>
    %c0_48 = arith.constant 0 : index
    %c0_49 = arith.constant 0 : index
    %c0_50 = arith.constant 0 : index
    %84 = vector.load %arg12[%c0_48, %c0_49, %c0_50] : memref<2x1x64xf32, #tpu.memory_space<vmem>>, vector<1x1x64xf32>
    %85 = vector.shape_cast %84 : vector<1x1x64xf32> to vector<1x64xf32>
    %86 = vector.broadcast %85 : vector<1x64xf32> to vector<32x64xf32>
    %87 = arith.addf %83, %86 : vector<32x64xf32>
    %cst_51 = arith.constant 0.000000e+00 : f32
    %88 = vector.broadcast %cst_51 : f32 to vector<32x64xf32>
    %89 = arith.maximumf %87, %88 : vector<32x64xf32>
    %90 = arith.truncf %89 : vector<32x64xf32> to vector<32x64xbf16>
    %c0_52 = arith.constant 0 : index
    %c0_53 = arith.constant 0 : index
    %c0_54 = arith.constant 0 : index
    %91 = vector.load %arg13[%c0_52, %c0_53, %c0_54] : memref<2x64x32xbf16, #tpu.memory_space<vmem>>, vector<1x64x32xbf16>
    %92 = vector.shape_cast %91 : vector<1x64x32xbf16> to vector<64x32xbf16>
    %cst_55 = arith.constant dense<0.000000e+00> : vector<32x32xf32>
    %93 = tpu.matmul %90, %92, %cst_55 {dimension_numbers = #tpu.dot_dimension_numbers<[1], [0], [0], [1], [0, 0, 1, 1], [], []>} : vector<32x64xbf16>, vector<64x32xbf16>, vector<32x32xf32> -> vector<32x32xf32>
    %c0_56 = arith.constant 0 : index
    %c0_57 = arith.constant 0 : index
    %c0_58 = arith.constant 0 : index
    %94 = vector.load %arg14[%c0_56, %c0_57, %c0_58] : memref<2x1x32xf32, #tpu.memory_space<vmem>>, vector<1x1x32xf32>
    %95 = vector.shape_cast %94 : vector<1x1x32xf32> to vector<1x32xf32>
    %96 = vector.broadcast %95 : vector<1x32xf32> to vector<32x32xf32>
    %97 = arith.addf %93, %96 : vector<32x32xf32>
    %98 = arith.addf %79, %97 : vector<32x32xf32>
    %c0_59 = arith.constant 0 : index
    %c0_60 = arith.constant 0 : index
    %c0_61 = arith.constant 0 : index
    %99 = vector.load %arg9[%c0_59, %c0_60, %c0_61] : memref<2x1x32xf32, #tpu.memory_space<vmem>>, vector<1x1x32xf32>
    %100 = vector.shape_cast %99 : vector<1x1x32xf32> to vector<1x32xf32>
    %c0_62 = arith.constant 0 : index
    %c0_63 = arith.constant 0 : index
    %c0_64 = arith.constant 0 : index
    %101 = vector.load %arg10[%c0_62, %c0_63, %c0_64] : memref<2x1x32xf32, #tpu.memory_space<vmem>>, vector<1x1x32xf32>
    %102 = vector.shape_cast %101 : vector<1x1x32xf32> to vector<1x32xf32>
    %cst_65 = arith.constant dense<0.000000e+00> : vector<32xf32>
    %103 = vector.multi_reduction <add>, %98, %cst_65 [1] : vector<32x32xf32> to vector<32xf32>
    %104 = vector.shape_cast %103 : vector<32xf32> to vector<32x1xf32>
    %cst_66 = arith.constant 3.200000e+01 : f32
    %105 = vector.broadcast %cst_66 : f32 to vector<32x1xf32>
    %106 = arith.divf %104, %105 : vector<32x1xf32>
    %107 = vector.broadcast %106 : vector<32x1xf32> to vector<32x32xf32>
    %108 = arith.subf %98, %107 : vector<32x32xf32>
    %109 = arith.mulf %108, %108 : vector<32x32xf32>
    %cst_67 = arith.constant dense<0.000000e+00> : vector<32xf32>
    %110 = vector.multi_reduction <add>, %109, %cst_67 [1] : vector<32x32xf32> to vector<32xf32>
    %111 = vector.shape_cast %110 : vector<32xf32> to vector<32x1xf32>
    %cst_68 = arith.constant 3.200000e+01 : f32
    %112 = vector.broadcast %cst_68 : f32 to vector<32x1xf32>
    %113 = arith.divf %111, %112 : vector<32x1xf32>
    %114 = vector.broadcast %106 : vector<32x1xf32> to vector<32x32xf32>
    %115 = arith.subf %98, %114 : vector<32x32xf32>
    %cst_69 = arith.constant 9.99999974E-6 : f32
    %116 = vector.broadcast %cst_69 : f32 to vector<32x1xf32>
    %117 = arith.addf %113, %116 : vector<32x1xf32>
    %118 = math.rsqrt %117 : vector<32x1xf32>
    %119 = vector.broadcast %118 : vector<32x1xf32> to vector<32x32xf32>
    %120 = arith.mulf %115, %119 : vector<32x32xf32>
    %121 = vector.broadcast %100 : vector<1x32xf32> to vector<32x32xf32>
    %122 = arith.mulf %120, %121 : vector<32x32xf32>
    %123 = vector.broadcast %102 : vector<1x32xf32> to vector<32x32xf32>
    %124 = arith.addf %122, %123 : vector<32x32xf32>
    %125 = arith.truncf %124 : vector<32x32xf32> to vector<32x32xbf16>
    %c1 = arith.constant 1 : index
    %c0_70 = arith.constant 0 : index
    %c0_71 = arith.constant 0 : index
    %126 = vector.load %arg3[%c1, %c0_70, %c0_71] : memref<2x32x96xbf16, #tpu.memory_space<vmem>>, vector<1x32x96xbf16>
    %127 = vector.shape_cast %126 : vector<1x32x96xbf16> to vector<32x96xbf16>
    %cst_72 = arith.constant dense<0.000000e+00> : vector<32x96xf32>
    %128 = tpu.matmul %125, %127, %cst_72 {dimension_numbers = #tpu.dot_dimension_numbers<[1], [0], [0], [1], [0, 0, 1, 1], [], []>} : vector<32x32xbf16>, vector<32x96xbf16>, vector<32x96xf32> -> vector<32x96xf32>
    %c1_73 = arith.constant 1 : index
    %c0_74 = arith.constant 0 : index
    %c0_75 = arith.constant 0 : index
    %129 = vector.load %arg4[%c1_73, %c0_74, %c0_75] : memref<2x1x96xf32, #tpu.memory_space<vmem>>, vector<1x1x96xf32>
    %130 = vector.shape_cast %129 : vector<1x1x96xf32> to vector<1x96xf32>
    %131 = vector.broadcast %130 : vector<1x96xf32> to vector<32x96xf32>
    %132 = arith.addf %128, %131 : vector<32x96xf32>
    %133 = vector.extract_strided_slice %132 {offsets = [0, 0], sizes = [32, 32], strides = [1, 1]} : vector<32x96xf32> to vector<32x32xf32>
    %cst_76 = arith.constant 0.353553385 : f32
    %134 = vector.broadcast %cst_76 : f32 to vector<32x32xf32>
    %135 = arith.mulf %133, %134 : vector<32x32xf32>
    %136 = vector.extract_strided_slice %132 {offsets = [0, 32], sizes = [32, 32], strides = [1, 1]} : vector<32x96xf32> to vector<32x32xf32>
    %137 = vector.extract_strided_slice %132 {offsets = [0, 64], sizes = [32, 32], strides = [1, 1]} : vector<32x96xf32> to vector<32x32xf32>
    %138 = tpu.concatenate %136, %136, %136, %136 in 0 : vector<32x32xf32>, vector<32x32xf32>, vector<32x32xf32>, vector<32x32xf32> -> vector<128x32xf32>
    %c0_77 = arith.constant 0 : index
    %c0_78 = arith.constant 0 : index
    %139 = vector.load %arg20[%c0_77, %c0_78] : memref<128x32xf32, #tpu.memory_space<vmem>>, vector<128x32xf32>
    %140 = arith.mulf %138, %139 : vector<128x32xf32>
    %141 = tpu.concatenate %137, %137, %137, %137 in 0 : vector<32x32xf32>, vector<32x32xf32>, vector<32x32xf32>, vector<32x32xf32> -> vector<128x32xf32>
    %c0_79 = arith.constant 0 : index
    %c0_80 = arith.constant 0 : index
    %142 = vector.load %arg20[%c0_79, %c0_80] : memref<128x32xf32, #tpu.memory_space<vmem>>, vector<128x32xf32>
    %143 = arith.mulf %141, %142 : vector<128x32xf32>
    %cst_81 = arith.constant dense<0.000000e+00> : vector<32x128xf32>
    %144 = tpu.matmul %135, %140, %cst_81 {dimension_numbers = #tpu.dot_dimension_numbers<[1], [1], [0], [0], [0, 0, 1, 0], [], []>} : vector<32x32xf32>, vector<128x32xf32>, vector<32x128xf32> -> vector<32x128xf32>
    %c0_82 = arith.constant 0 : index
    %c0_83 = arith.constant 0 : index
    %145 = vector.load %arg21[%c0_82, %c0_83] : memref<32x128xf32, #tpu.memory_space<vmem>>, vector<32x128xf32>
    %146 = arith.addf %144, %145 : vector<32x128xf32>
    %cst_84 = arith.constant dense<0xFF800000> : vector<32xf32>
    %147 = vector.multi_reduction <maximumf>, %146, %cst_84 [1] : vector<32x128xf32> to vector<32xf32>
    %148 = vector.shape_cast %147 : vector<32xf32> to vector<32x1xf32>
    %149 = vector.broadcast %148 : vector<32x1xf32> to vector<32x128xf32>
    %150 = arith.subf %146, %149 : vector<32x128xf32>
    %151 = math.exp %150 : vector<32x128xf32>
    %c0_85 = arith.constant 0 : index
    %c0_86 = arith.constant 0 : index
    %152 = vector.load %arg22[%c0_85, %c0_86] : memref<128x128xf32, #tpu.memory_space<vmem>>, vector<128x128xf32>
    %cst_87 = arith.constant dense<0.000000e+00> : vector<32x128xf32>
    %153 = tpu.matmul %151, %152, %cst_87 {dimension_numbers = #tpu.dot_dimension_numbers<[1], [0], [0], [1], [0, 0, 1, 1], [], []>} : vector<32x128xf32>, vector<128x128xf32>, vector<32x128xf32> -> vector<32x128xf32>
    %cst_88 = arith.constant 1.000000e-30 : f32
    %154 = vector.broadcast %cst_88 : f32 to vector<32x128xf32>
    %155 = arith.maximumf %153, %154 : vector<32x128xf32>
    %156 = tpu.reciprocal %155 {approx = true} : vector<32x128xf32> -> vector<32x128xf32>
    %157 = arith.mulf %151, %156 : vector<32x128xf32>
    %cst_89 = arith.constant dense<0.000000e+00> : vector<32x32xf32>
    %158 = tpu.matmul %157, %143, %cst_89 {dimension_numbers = #tpu.dot_dimension_numbers<[1], [0], [0], [1], [0, 0, 1, 1], [], []>} : vector<32x128xf32>, vector<128x32xf32>, vector<32x32xf32> -> vector<32x32xf32>
    %159 = arith.truncf %158 : vector<32x32xf32> to vector<32x32xbf16>
    %c1_90 = arith.constant 1 : index
    %c0_91 = arith.constant 0 : index
    %c0_92 = arith.constant 0 : index
    %160 = vector.load %arg5[%c1_90, %c0_91, %c0_92] : memref<2x32x32xbf16, #tpu.memory_space<vmem>>, vector<1x32x32xbf16>
    %161 = vector.shape_cast %160 : vector<1x32x32xbf16> to vector<32x32xbf16>
    %cst_93 = arith.constant dense<0.000000e+00> : vector<32x32xf32>
    %162 = tpu.matmul %159, %161, %cst_93 {dimension_numbers = #tpu.dot_dimension_numbers<[1], [0], [0], [1], [0, 0, 1, 1], [], []>} : vector<32x32xbf16>, vector<32x32xbf16>, vector<32x32xf32> -> vector<32x32xf32>
    %c1_94 = arith.constant 1 : index
    %c0_95 = arith.constant 0 : index
    %c0_96 = arith.constant 0 : index
    %163 = vector.load %arg6[%c1_94, %c0_95, %c0_96] : memref<2x1x32xf32, #tpu.memory_space<vmem>>, vector<1x1x32xf32>
    %164 = vector.shape_cast %163 : vector<1x1x32xf32> to vector<1x32xf32>
    %165 = vector.broadcast %164 : vector<1x32xf32> to vector<32x32xf32>
    %166 = arith.addf %162, %165 : vector<32x32xf32>
    %167 = arith.addf %124, %166 : vector<32x32xf32>
    %c1_97 = arith.constant 1 : index
    %c0_98 = arith.constant 0 : index
    %c0_99 = arith.constant 0 : index
    %168 = vector.load %arg7[%c1_97, %c0_98, %c0_99] : memref<2x1x32xf32, #tpu.memory_space<vmem>>, vector<1x1x32xf32>
    %169 = vector.shape_cast %168 : vector<1x1x32xf32> to vector<1x32xf32>
    %c1_100 = arith.constant 1 : index
    %c0_101 = arith.constant 0 : index
    %c0_102 = arith.constant 0 : index
    %170 = vector.load %arg8[%c1_100, %c0_101, %c0_102] : memref<2x1x32xf32, #tpu.memory_space<vmem>>, vector<1x1x32xf32>
    %171 = vector.shape_cast %170 : vector<1x1x32xf32> to vector<1x32xf32>
    %cst_103 = arith.constant dense<0.000000e+00> : vector<32xf32>
    %172 = vector.multi_reduction <add>, %167, %cst_103 [1] : vector<32x32xf32> to vector<32xf32>
    %173 = vector.shape_cast %172 : vector<32xf32> to vector<32x1xf32>
    %cst_104 = arith.constant 3.200000e+01 : f32
    %174 = vector.broadcast %cst_104 : f32 to vector<32x1xf32>
    %175 = arith.divf %173, %174 : vector<32x1xf32>
    %176 = vector.broadcast %175 : vector<32x1xf32> to vector<32x32xf32>
    %177 = arith.subf %167, %176 : vector<32x32xf32>
    %178 = arith.mulf %177, %177 : vector<32x32xf32>
    %cst_105 = arith.constant dense<0.000000e+00> : vector<32xf32>
    %179 = vector.multi_reduction <add>, %178, %cst_105 [1] : vector<32x32xf32> to vector<32xf32>
    %180 = vector.shape_cast %179 : vector<32xf32> to vector<32x1xf32>
    %cst_106 = arith.constant 3.200000e+01 : f32
    %181 = vector.broadcast %cst_106 : f32 to vector<32x1xf32>
    %182 = arith.divf %180, %181 : vector<32x1xf32>
    %183 = vector.broadcast %175 : vector<32x1xf32> to vector<32x32xf32>
    %184 = arith.subf %167, %183 : vector<32x32xf32>
    %cst_107 = arith.constant 9.99999974E-6 : f32
    %185 = vector.broadcast %cst_107 : f32 to vector<32x1xf32>
    %186 = arith.addf %182, %185 : vector<32x1xf32>
    %187 = math.rsqrt %186 : vector<32x1xf32>
    %188 = vector.broadcast %187 : vector<32x1xf32> to vector<32x32xf32>
    %189 = arith.mulf %184, %188 : vector<32x32xf32>
    %190 = vector.broadcast %169 : vector<1x32xf32> to vector<32x32xf32>
    %191 = arith.mulf %189, %190 : vector<32x32xf32>
    %192 = vector.broadcast %171 : vector<1x32xf32> to vector<32x32xf32>
    %193 = arith.addf %191, %192 : vector<32x32xf32>
    %194 = arith.truncf %193 : vector<32x32xf32> to vector<32x32xbf16>
    %c1_108 = arith.constant 1 : index
    %c0_109 = arith.constant 0 : index
    %c0_110 = arith.constant 0 : index
    %195 = vector.load %arg11[%c1_108, %c0_109, %c0_110] : memref<2x32x64xbf16, #tpu.memory_space<vmem>>, vector<1x32x64xbf16>
    %196 = vector.shape_cast %195 : vector<1x32x64xbf16> to vector<32x64xbf16>
    %cst_111 = arith.constant dense<0.000000e+00> : vector<32x64xf32>
    %197 = tpu.matmul %194, %196, %cst_111 {dimension_numbers = #tpu.dot_dimension_numbers<[1], [0], [0], [1], [0, 0, 1, 1], [], []>} : vector<32x32xbf16>, vector<32x64xbf16>, vector<32x64xf32> -> vector<32x64xf32>
    %c1_112 = arith.constant 1 : index
    %c0_113 = arith.constant 0 : index
    %c0_114 = arith.constant 0 : index
    %198 = vector.load %arg12[%c1_112, %c0_113, %c0_114] : memref<2x1x64xf32, #tpu.memory_space<vmem>>, vector<1x1x64xf32>
    %199 = vector.shape_cast %198 : vector<1x1x64xf32> to vector<1x64xf32>
    %200 = vector.broadcast %199 : vector<1x64xf32> to vector<32x64xf32>
    %201 = arith.addf %197, %200 : vector<32x64xf32>
    %cst_115 = arith.constant 0.000000e+00 : f32
    %202 = vector.broadcast %cst_115 : f32 to vector<32x64xf32>
    %203 = arith.maximumf %201, %202 : vector<32x64xf32>
    %204 = arith.truncf %203 : vector<32x64xf32> to vector<32x64xbf16>
    %c1_116 = arith.constant 1 : index
    %c0_117 = arith.constant 0 : index
    %c0_118 = arith.constant 0 : index
    %205 = vector.load %arg13[%c1_116, %c0_117, %c0_118] : memref<2x64x32xbf16, #tpu.memory_space<vmem>>, vector<1x64x32xbf16>
    %206 = vector.shape_cast %205 : vector<1x64x32xbf16> to vector<64x32xbf16>
    %cst_119 = arith.constant dense<0.000000e+00> : vector<32x32xf32>
    %207 = tpu.matmul %204, %206, %cst_119 {dimension_numbers = #tpu.dot_dimension_numbers<[1], [0], [0], [1], [0, 0, 1, 1], [], []>} : vector<32x64xbf16>, vector<64x32xbf16>, vector<32x32xf32> -> vector<32x32xf32>
    %c1_120 = arith.constant 1 : index
    %c0_121 = arith.constant 0 : index
    %c0_122 = arith.constant 0 : index
    %208 = vector.load %arg14[%c1_120, %c0_121, %c0_122] : memref<2x1x32xf32, #tpu.memory_space<vmem>>, vector<1x1x32xf32>
    %209 = vector.shape_cast %208 : vector<1x1x32xf32> to vector<1x32xf32>
    %210 = vector.broadcast %209 : vector<1x32xf32> to vector<32x32xf32>
    %211 = arith.addf %207, %210 : vector<32x32xf32>
    %212 = arith.addf %193, %211 : vector<32x32xf32>
    %c1_123 = arith.constant 1 : index
    %c0_124 = arith.constant 0 : index
    %c0_125 = arith.constant 0 : index
    %213 = vector.load %arg9[%c1_123, %c0_124, %c0_125] : memref<2x1x32xf32, #tpu.memory_space<vmem>>, vector<1x1x32xf32>
    %214 = vector.shape_cast %213 : vector<1x1x32xf32> to vector<1x32xf32>
    %c1_126 = arith.constant 1 : index
    %c0_127 = arith.constant 0 : index
    %c0_128 = arith.constant 0 : index
    %215 = vector.load %arg10[%c1_126, %c0_127, %c0_128] : memref<2x1x32xf32, #tpu.memory_space<vmem>>, vector<1x1x32xf32>
    %216 = vector.shape_cast %215 : vector<1x1x32xf32> to vector<1x32xf32>
    %cst_129 = arith.constant dense<0.000000e+00> : vector<32xf32>
    %217 = vector.multi_reduction <add>, %212, %cst_129 [1] : vector<32x32xf32> to vector<32xf32>
    %218 = vector.shape_cast %217 : vector<32xf32> to vector<32x1xf32>
    %cst_130 = arith.constant 3.200000e+01 : f32
    %219 = vector.broadcast %cst_130 : f32 to vector<32x1xf32>
    %220 = arith.divf %218, %219 : vector<32x1xf32>
    %221 = vector.broadcast %220 : vector<32x1xf32> to vector<32x32xf32>
    %222 = arith.subf %212, %221 : vector<32x32xf32>
    %223 = arith.mulf %222, %222 : vector<32x32xf32>
    %cst_131 = arith.constant dense<0.000000e+00> : vector<32xf32>
    %224 = vector.multi_reduction <add>, %223, %cst_131 [1] : vector<32x32xf32> to vector<32xf32>
    %225 = vector.shape_cast %224 : vector<32xf32> to vector<32x1xf32>
    %cst_132 = arith.constant 3.200000e+01 : f32
    %226 = vector.broadcast %cst_132 : f32 to vector<32x1xf32>
    %227 = arith.divf %225, %226 : vector<32x1xf32>
    %228 = vector.broadcast %220 : vector<32x1xf32> to vector<32x32xf32>
    %229 = arith.subf %212, %228 : vector<32x32xf32>
    %cst_133 = arith.constant 9.99999974E-6 : f32
    %230 = vector.broadcast %cst_133 : f32 to vector<32x1xf32>
    %231 = arith.addf %227, %230 : vector<32x1xf32>
    %232 = math.rsqrt %231 : vector<32x1xf32>
    %233 = vector.broadcast %232 : vector<32x1xf32> to vector<32x32xf32>
    %234 = arith.mulf %229, %233 : vector<32x32xf32>
    %235 = vector.broadcast %214 : vector<1x32xf32> to vector<32x32xf32>
    %236 = arith.mulf %234, %235 : vector<32x32xf32>
    %237 = vector.broadcast %216 : vector<1x32xf32> to vector<32x32xf32>
    %238 = arith.addf %236, %237 : vector<32x32xf32>
    %c0_134 = arith.constant 0 : index
    %c0_135 = arith.constant 0 : index
    %239 = vector.load %arg23[%c0_134, %c0_135] : memref<32x32xf32, #tpu.memory_space<vmem>>, vector<32x32xf32>
    %cst_136 = arith.constant dense<0.000000e+00> : vector<32x32xf32>
    %240 = tpu.matmul %239, %238, %cst_136 {dimension_numbers = #tpu.dot_dimension_numbers<[1], [0], [0], [1], [0, 0, 1, 1], [], []>} : vector<32x32xf32>, vector<32x32xf32>, vector<32x32xf32> -> vector<32x32xf32>
    %c0_137 = arith.constant 0 : index
    %c0_138 = arith.constant 0 : index
    %241 = vector.load %arg23[%c0_137, %c0_138] : memref<32x32xf32, #tpu.memory_space<vmem>>, vector<32x32xf32>
    %242 = arith.mulf %238, %238 : vector<32x32xf32>
    %cst_139 = arith.constant dense<0.000000e+00> : vector<32x32xf32>
    %243 = tpu.matmul %241, %242, %cst_139 {dimension_numbers = #tpu.dot_dimension_numbers<[1], [0], [0], [1], [0, 0, 1, 1], [], []>} : vector<32x32xf32>, vector<32x32xf32>, vector<32x32xf32> -> vector<32x32xf32>
    %cst_140 = arith.constant dense<0.000000e+00> : vector<32xf32>
    %244 = vector.multi_reduction <add>, %240, %cst_140 [1] : vector<32x32xf32> to vector<32xf32>
    %245 = vector.shape_cast %244 : vector<32xf32> to vector<32x1xf32>
    %cst_141 = arith.constant 0.001953125 : f32
    %246 = vector.broadcast %cst_141 : f32 to vector<32x1xf32>
    %247 = arith.mulf %245, %246 : vector<32x1xf32>
    %cst_142 = arith.constant dense<0.000000e+00> : vector<32xf32>
    %248 = vector.multi_reduction <add>, %243, %cst_142 [1] : vector<32x32xf32> to vector<32xf32>
    %249 = vector.shape_cast %248 : vector<32xf32> to vector<32x1xf32>
    %cst_143 = arith.constant 0.001953125 : f32
    %250 = vector.broadcast %cst_143 : f32 to vector<32x1xf32>
    %251 = arith.mulf %249, %250 : vector<32x1xf32>
    %252 = arith.mulf %247, %247 : vector<32x1xf32>
    %253 = arith.subf %251, %252 : vector<32x1xf32>
    %cst_144 = arith.constant 0.000000e+00 : f32
    %254 = vector.broadcast %cst_144 : f32 to vector<32x1xf32>
    %255 = arith.maximumf %253, %254 : vector<32x1xf32>
    %cst_145 = arith.constant 9.99999974E-6 : f32
    %256 = vector.broadcast %cst_145 : f32 to vector<32x1xf32>
    %257 = arith.addf %255, %256 : vector<32x1xf32>
    %258 = math.rsqrt %257 : vector<32x1xf32>
    %259 = vector.broadcast %247 : vector<32x1xf32> to vector<32x32xf32>
    %260 = arith.subf %238, %259 : vector<32x32xf32>
    %261 = vector.broadcast %258 : vector<32x1xf32> to vector<32x32xf32>
    %262 = arith.mulf %260, %261 : vector<32x32xf32>
    %c0_146 = arith.constant 0 : index
    %c0_147 = arith.constant 0 : index
    %263 = vector.load %arg24[%c0_146, %c0_147] : memref<32x512xf32, #tpu.memory_space<vmem>>, vector<32x512xf32>
    %cst_148 = arith.constant dense<0.000000e+00> : vector<32x512xf32>
    %264 = tpu.matmul %262, %263, %cst_148 {dimension_numbers = #tpu.dot_dimension_numbers<[1], [0], [0], [1], [0, 0, 1, 1], [], []>} : vector<32x32xf32>, vector<32x512xf32>, vector<32x512xf32> -> vector<32x512xf32>
    %c0_149 = arith.constant 0 : index
    %c0_150 = arith.constant 0 : index
    %265 = vector.load %arg26[%c0_149, %c0_150] : memref<2x32xf32, #tpu.memory_space<vmem>>, vector<2x32xf32>
    %c0_151 = arith.constant 0 : index
    %c0_152 = arith.constant 0 : index
    %266 = vector.load %arg25[%c0_151, %c0_152] : memref<32x512xf32, #tpu.memory_space<vmem>>, vector<32x512xf32>
    %267 = arith.mulf %264, %266 : vector<32x512xf32>
    %cst_153 = arith.constant dense<0.000000e+00> : vector<2x512xf32>
    %268 = tpu.matmul %265, %267, %cst_153 {dimension_numbers = #tpu.dot_dimension_numbers<[1], [0], [0], [1], [0, 0, 1, 1], [], []>} : vector<2x32xf32>, vector<32x512xf32>, vector<2x512xf32> -> vector<2x512xf32>
    %c0_154 = arith.constant 0 : index
    %c0_155 = arith.constant 0 : index
    %269 = vector.load %arg15[%c0_154, %c0_155] : memref<1x512xf32, #tpu.memory_space<vmem>>, vector<1x512xf32>
    %270 = vector.broadcast %269 : vector<1x512xf32> to vector<2x512xf32>
    %271 = arith.addf %268, %270 : vector<2x512xf32>
    %c0_i32_156 = arith.constant 0 : i32
    %272 = tpu.memref_slice %arg30[%c0_i32_156] : memref<2x!tpu.dma_semaphore, #tpu.memory_space<semaphore_mem>> -> memref<1x!tpu.dma_semaphore, #tpu.memory_space<semaphore_mem>>
    %273 = tpu.memref_squeeze %272 : memref<1x!tpu.dma_semaphore, #tpu.memory_space<semaphore_mem>> -> memref<!tpu.dma_semaphore, #tpu.memory_space<semaphore_mem>>
    tpu.wait_dma2 semaphore(%273 : memref<!tpu.dma_semaphore, #tpu.memory_space<semaphore_mem>>) src(%arg18 : memref<512x256xbf16, #tpu.memory_space<any>>) dst(%arg28 : memref<512x256xbf16, #tpu.memory_space<vmem>>)
    %274 = arith.truncf %271 : vector<2x512xf32> to vector<2x512xbf16>
    %c0_157 = arith.constant 0 : index
    %c0_158 = arith.constant 0 : index
    %275 = vector.load %arg28[%c0_157, %c0_158] : memref<512x256xbf16, #tpu.memory_space<vmem>>, vector<512x256xbf16>
    %cst_159 = arith.constant dense<0.000000e+00> : vector<2x256xf32>
    %276 = tpu.matmul %274, %275, %cst_159 {dimension_numbers = #tpu.dot_dimension_numbers<[1], [0], [0], [1], [0, 0, 1, 1], [], []>} : vector<2x512xbf16>, vector<512x256xbf16>, vector<2x256xf32> -> vector<2x256xf32>
    %c0_160 = arith.constant 0 : index
    %c0_161 = arith.constant 0 : index
    %277 = vector.load %arg16[%c0_160, %c0_161] : memref<1x256xf32, #tpu.memory_space<vmem>>, vector<1x256xf32>
    %278 = vector.broadcast %277 : vector<1x256xf32> to vector<2x256xf32>
    %279 = arith.addf %276, %278 : vector<2x256xf32>
    %cst_162 = arith.constant 5.000000e-01 : f32
    %280 = vector.broadcast %cst_162 : f32 to vector<2x256xf32>
    %281 = arith.mulf %280, %279 : vector<2x256xf32>
    %cst_163 = arith.constant 0.707106769 : f32
    %282 = vector.broadcast %cst_163 : f32 to vector<2x256xf32>
    %283 = arith.mulf %279, %282 : vector<2x256xf32>
    %284 = math.erf %283 : vector<2x256xf32>
    %cst_164 = arith.constant 1.000000e+00 : f32
    %285 = vector.broadcast %cst_164 : f32 to vector<2x256xf32>
    %286 = arith.addf %285, %284 : vector<2x256xf32>
    %287 = arith.mulf %281, %286 : vector<2x256xf32>
    %c1_i32_165 = arith.constant 1 : i32
    %288 = tpu.memref_slice %arg30[%c1_i32_165] : memref<2x!tpu.dma_semaphore, #tpu.memory_space<semaphore_mem>> -> memref<1x!tpu.dma_semaphore, #tpu.memory_space<semaphore_mem>>
    %289 = tpu.memref_squeeze %288 : memref<1x!tpu.dma_semaphore, #tpu.memory_space<semaphore_mem>> -> memref<!tpu.dma_semaphore, #tpu.memory_space<semaphore_mem>>
    tpu.wait_dma2 semaphore(%289 : memref<!tpu.dma_semaphore, #tpu.memory_space<semaphore_mem>>) src(%arg19 : memref<256x128xbf16, #tpu.memory_space<any>>) dst(%arg29 : memref<256x128xbf16, #tpu.memory_space<vmem>>)
    %290 = arith.truncf %287 : vector<2x256xf32> to vector<2x256xbf16>
    %c0_166 = arith.constant 0 : index
    %c0_167 = arith.constant 0 : index
    %291 = vector.load %arg29[%c0_166, %c0_167] : memref<256x128xbf16, #tpu.memory_space<vmem>>, vector<256x128xbf16>
    %cst_168 = arith.constant dense<0.000000e+00> : vector<2x128xf32>
    %292 = tpu.matmul %290, %291, %cst_168 {dimension_numbers = #tpu.dot_dimension_numbers<[1], [0], [0], [1], [0, 0, 1, 1], [], []>} : vector<2x256xbf16>, vector<256x128xbf16>, vector<2x128xf32> -> vector<2x128xf32>
    %c0_169 = arith.constant 0 : index
    %c0_170 = arith.constant 0 : index
    %293 = vector.load %arg17[%c0_169, %c0_170] : memref<1x128xf32, #tpu.memory_space<vmem>>, vector<1x128xf32>
    %294 = vector.broadcast %293 : vector<1x128xf32> to vector<2x128xf32>
    %295 = arith.addf %292, %294 : vector<2x128xf32>
    %c0_171 = arith.constant 0 : index
    %c0_172 = arith.constant 0 : index
    %296 = vector.load %arg27[%c0_171, %c0_172] : memref<2x128xf32, #tpu.memory_space<vmem>>, vector<2x128xf32>
    tpu.vector_store %arg27[%c0_171, %c0_172], %295 {strides = array<i32>} : memref<2x128xf32, #tpu.memory_space<vmem>>, vector<2x128xf32>,
    return
  }
}

</mosaic_0001>

<bundles_post_ra>
// kernel: vit_forward.1
= control target key start
LH: loop header
LB: loop body
LE: loop exit
PB: predicated region body
PF: predicated region fallthrough
CT: control target
= control target key end

     0   :  { %s6762_s0 = inlined_call_operand.vmem [shape: f32[32,64], index: 0, kind: input, shape index: {}]   ;;  %s6763_s1 = inlined_call_operand.vmem [shape: bf16[64,32], index: 1, kind: input, shape index: {}]   ;;  %s6764_s2 = inlined_call_operand.vmem [shape: f32[1,32], index: 2, kind: input, shape index: {}]   ;;  %s6765_s3 = inlined_call_operand.vmem [shape: bf16[2,32,96], index: 3, kind: input, shape index: {}]   ;;  %s6766_s4 = inlined_call_operand.vmem [shape: f32[2,1,96], index: 4, kind: input, shape index: {}]   ;;  %s6767_s5 = inlined_call_operand.vmem [shape: bf16[2,32,32], index: 5, kind: input, shape index: {}]   ;;  %s6768_s6 = inlined_call_operand.vmem [shape: f32[2,1,32], index: 6, kind: input, shape index: {}]   ;;  %s6769_s7 = inlined_call_operand.vmem [shape: f32[2,1,32], index: 7, kind: input, shape index: {}]   ;;  %s6770_s8 = inlined_call_operand.vmem [shape: f32[2,1,32], index: 8, kind: input, shape index: {}]   ;;  %s6771_s9 = inlined_call_operand.vmem [shape: f32[2,1,32], index: 9, kind: input, shape index: {}]   ;;  %s6772_s10 = inlined_call_operand.vmem [shape: f32[2,1,32], index: 10, kind: input, shape index: {}]   ;;  %s6773_s11 = inlined_call_operand.vmem [shape: bf16[2,32,64], index: 11, kind: input, shape index: {}]   ;;  %s6774_s12 = inlined_call_operand.vmem [shape: f32[2,1,64], index: 12, kind: input, shape index: {}]   ;;  %s6775_s13 = inlined_call_operand.vmem [shape: bf16[2,64,32], index: 13, kind: input, shape index: {}]   ;;  %s6776_s14 = inlined_call_operand.vmem [shape: f32[2,1,32], index: 14, kind: input, shape index: {}]   ;;  %s6777_s15 = inlined_call_operand.vmem [shape: f32[1,512], index: 15, kind: input, shape index: {}]   ;;  %s6778_s16 = inlined_call_operand.vmem [shape: f32[1,256], index: 16, kind: input, shape index: {}]   ;;  %s6779_s17 = inlined_call_operand.vmem [shape: f32[1,128], index: 17, kind: input, shape index: {}]   ;;  %s6780_s18 = inlined_call_operand.vmem [shape: bf16[512,256], index: 18, kind: input, shape index: {}]   ;;  %s6781_s19 = inlined_call_operand.vmem [shape: bf16[256,128], index: 19, kind: input, shape index: {}]   ;;  %s6782_s20 = inlined_call_operand.vmem [shape: f32[128,32], index: 20, kind: input, shape index: {}]   ;;  %s6783_s21 = inlined_call_operand.vmem [shape: f32[32,128], index: 21, kind: input, shape index: {}]   ;;  %s6784_s22 = inlined_call_operand.vmem [shape: f32[128,128], index: 22, kind: input, shape index: {}]   ;;  %s6785_s23 = inlined_call_operand.vmem [shape: f32[32,32], index: 23, kind: input, shape index: {}]   ;;  %s6786_s24 = inlined_call_operand.vmem [shape: f32[32,512], index: 24, kind: input, shape index: {}]   ;;  %s6787_s25 = inlined_call_operand.vmem [shape: f32[32,512], index: 25, kind: input, shape index: {}]   ;;  %s6788_s26 = inlined_call_operand.vmem [shape: f32[2,32], index: 26, kind: input, shape index: {}]   ;;  %s6789_s27 = inlined_call_operand.hbm [shape: f32[2,128], index: 27, kind: output, shape index: {}]  }
   0x1   :  { %6805 = sst [smem:[#allocation31_spill]] %s6762_s0 }
   0x2   :  { %6806 = sst [smem:[#allocation32_spill]] %s6763_s1 }
   0x3   :  { %6807 = sst [smem:[#allocation33_spill]] %s6764_s2 }
   0x4   :  { %6808 = sst [smem:[#allocation34_spill]] %s6765_s3 }
   0x5   :  { %6809 = sst [smem:[#allocation35_spill]] %s6766_s4 }
   0x6   :  { %6810 = sst [smem:[#allocation36_spill]] %s6767_s5 }
   0x7   :  { %6811 = sst [smem:[#allocation37_spill]] %s6768_s6 }
   0x8   :  { %6812 = sst [smem:[#allocation38_spill]] %s6769_s7 }
   0x9   :  { %6813 = sst [smem:[#allocation39_spill]] %s6770_s8 }
   0xa   :  { %6814 = sst [smem:[#allocation40_spill]] %s6771_s9 }
   0xb   :  { %6815 = sst [smem:[#allocation41_spill]] %s6772_s10 }
   0xc   :  { %6816 = sst [smem:[#allocation42_spill]] %s6773_s11 }
   0xd   :  { %32 = vsyncpa [#allocation6], 0  ;;  %v101_v0 = vld [vmem:[%s6780_s18] sm:$0xf]  ;;  %v103_v1 = vld [vmem:[%s6780_s18 + $0x8] sm:$0xf] }
   0xe   :  { %102 = vst [vmem:[#allocation2] sm:$0xf] %v101_v0  ;;  %104 = vst [vmem:[#allocation2 + $0x4] sm:$0xf] %v103_v1  ;;  %v105_v2 = vld [vmem:[%s6780_s18 + $0x4] sm:$0xf] }
   0xf   :  { %v107_v3 = vld [vmem:[%s6780_s18 + $0xc] sm:$0xff]   ;;  %v111_v4 = vld [vmem:[%s6780_s18 + $0x18] sm:$0xf]  ;;  %106 = vst [vmem:[#allocation2 + $0x8] sm:$0xf] %v105_v2  ;;  %v115_v6 = vld [vmem:[%s6780_s18 + $0x1c] sm:$0xff]  }
  0x10   :  { %108 = vst [vmem:[#allocation2 + $0xc] sm:$0xff] %v107_v3   ;;  %112 = vst [vmem:[#allocation2 + $0x14] sm:$0xf] %v111_v4  ;;  %v113_v5 = vld [vmem:[%s6780_s18 + $0x14] sm:$0xf]  ;;  %v123_v9 = vld [vmem:[%s6780_s18 + $0x2c] sm:$0xff]  }
  0x11   :  { %v119_v7 = vld [vmem:[%s6780_s18 + $0x28] sm:$0xf]  ;;  %114 = vst [vmem:[#allocation2 + $0x18] sm:$0xf] %v113_v5  ;;  %116 = vst [vmem:[#allocation2 + $0x1c] sm:$0xff] %v115_v6   ;;  %v131_v12 = vld [vmem:[%s6780_s18 + $0x3c] sm:$0xff]  }
  0x12   :  { %120 = vst [vmem:[#allocation2 + $0x24] sm:$0xf] %v119_v7  ;;  %v121_v8 = vld [vmem:[%s6780_s18 + $0x24] sm:$0xf]  ;;  %v127_v10 = vld [vmem:[%s6780_s18 + $0x38] sm:$0xf] }
  0x13   :  { %122 = vst [vmem:[#allocation2 + $0x28] sm:$0xf] %v121_v8  ;;  %124 = vst [vmem:[#allocation2 + $0x2c] sm:$0xff] %v123_v9   ;;  %v129_v11 = vld [vmem:[%s6780_s18 + $0x34] sm:$0xf]  ;;  %v139_v15 = vld [vmem:[%s6780_s18 + $0x4c] sm:$0xff]  }
  0x14   :  { %128 = vst [vmem:[#allocation2 + $0x34] sm:$0xf] %v127_v10  ;;  %v135_v13 = vld [vmem:[%s6780_s18 + $0x48] sm:$0xf]  ;;  %130 = vst [vmem:[#allocation2 + $0x38] sm:$0xf] %v129_v11 }
  0x15   :  { %132 = vst [vmem:[#allocation2 + $0x3c] sm:$0xff] %v131_v12   ;;  %136 = vst [vmem:[#allocation2 + $0x44] sm:$0xf] %v135_v13  ;;  %v137_v14 = vld [vmem:[%s6780_s18 + $0x44] sm:$0xf]  ;;  %v147_v18 = vld [vmem:[%s6780_s18 + $0x5c] sm:$0xff]  }
  0x16   :  { %v143_v16 = vld [vmem:[%s6780_s18 + $0x58] sm:$0xf]  ;;  %138 = vst [vmem:[#allocation2 + $0x48] sm:$0xf] %v137_v14  ;;  %140 = vst [vmem:[#allocation2 + $0x4c] sm:$0xff] %v139_v15   ;;  %v155_v21 = vld [vmem:[%s6780_s18 + $0x6c] sm:$0xff]  }
  0x17   :  { %144 = vst [vmem:[#allocation2 + $0x54] sm:$0xf] %v143_v16  ;;  %v145_v17 = vld [vmem:[%s6780_s18 + $0x54] sm:$0xf]  ;;  %v151_v19 = vld [vmem:[%s6780_s18 + $0x68] sm:$0xf] }
  0x18   :  { %146 = vst [vmem:[#allocation2 + $0x58] sm:$0xf] %v145_v17  ;;  %148 = vst [vmem:[#allocation2 + $0x5c] sm:$0xff] %v147_v18   ;;  %v153_v20 = vld [vmem:[%s6780_s18 + $0x64] sm:$0xf]  ;;  %v163_v24 = vld [vmem:[%s6780_s18 + $0x7c] sm:$0xff]  }
  0x19   :  { %152 = vst [vmem:[#allocation2 + $0x64] sm:$0xf] %v151_v19  ;;  %v159_v22 = vld [vmem:[%s6780_s18 + $0x78] sm:$0xf]  ;;  %154 = vst [vmem:[#allocation2 + $0x68] sm:$0xf] %v153_v20 }
  0x1a   :  { %156 = vst [vmem:[#allocation2 + $0x6c] sm:$0xff] %v155_v21   ;;  %160 = vst [vmem:[#allocation2 + $0x74] sm:$0xf] %v159_v22  ;;  %v161_v23 = vld [vmem:[%s6780_s18 + $0x74] sm:$0xf]  ;;  %v171_v27 = vld [vmem:[%s6780_s18 + $0x8c] sm:$0xff]  }
  0x1b   :  { %v167_v25 = vld [vmem:[%s6780_s18 + $0x88] sm:$0xf]  ;;  %162 = vst [vmem:[#allocation2 + $0x78] sm:$0xf] %v161_v23  ;;  %164 = vst [vmem:[#allocation2 + $0x7c] sm:$0xff] %v163_v24   ;;  %v179_v30 = vld [vmem:[%s6780_s18 + $0x9c] sm:$0xff]  }
  0x1c   :  { %168 = vst [vmem:[#allocation2 + $0x84] sm:$0xf] %v167_v25  ;;  %v169_v26 = vld [vmem:[%s6780_s18 + $0x84] sm:$0xf]  ;;  %v175_v28 = vld [vmem:[%s6780_s18 + $0x98] sm:$0xf] }
  0x1d   :  { %170 = vst [vmem:[#allocation2 + $0x88] sm:$0xf] %v169_v26  ;;  %172 = vst [vmem:[#allocation2 + $0x8c] sm:$0xff] %v171_v27   ;;  %v177_v29 = vld [vmem:[%s6780_s18 + $0x94] sm:$0xf]  ;;  %v187_v33 = vld [vmem:[%s6780_s18 + $0xac] sm:$0xff]  }
  0x1e   :  { %176 = vst [vmem:[#allocation2 + $0x94] sm:$0xf] %v175_v28  ;;  %v183_v31 = vld [vmem:[%s6780_s18 + $0xa8] sm:$0xf]  ;;  %178 = vst [vmem:[#allocation2 + $0x98] sm:$0xf] %v177_v29 }
  0x1f   :  { %180 = vst [vmem:[#allocation2 + $0x9c] sm:$0xff] %v179_v30   ;;  %184 = vst [vmem:[#allocation2 + $0xa4] sm:$0xf] %v183_v31  ;;  %v185_v32 = vld [vmem:[%s6780_s18 + $0xa4] sm:$0xf]  ;;  %v195_v36 = vld [vmem:[%s6780_s18 + $0xbc] sm:$0xff]  }
  0x20   :  { %v191_v34 = vld [vmem:[%s6780_s18 + $0xb8] sm:$0xf]  ;;  %186 = vst [vmem:[#allocation2 + $0xa8] sm:$0xf] %v185_v32  ;;  %188 = vst [vmem:[#allocation2 + $0xac] sm:$0xff] %v187_v33   ;;  %v203_v39 = vld [vmem:[%s6780_s18 + $0xcc] sm:$0xff]  }
  0x21   :  { %192 = vst [vmem:[#allocation2 + $0xb4] sm:$0xf] %v191_v34  ;;  %v193_v35 = vld [vmem:[%s6780_s18 + $0xb4] sm:$0xf]  ;;  %v199_v37 = vld [vmem:[%s6780_s18 + $0xc8] sm:$0xf] }
  0x22   :  { %194 = vst [vmem:[#allocation2 + $0xb8] sm:$0xf] %v193_v35  ;;  %196 = vst [vmem:[#allocation2 + $0xbc] sm:$0xff] %v195_v36   ;;  %v201_v38 = vld [vmem:[%s6780_s18 + $0xc4] sm:$0xf]  ;;  %v211_v42 = vld [vmem:[%s6780_s18 + $0xdc] sm:$0xff]  }
  0x23   :  { %200 = vst [vmem:[#allocation2 + $0xc4] sm:$0xf] %v199_v37  ;;  %v207_v40 = vld [vmem:[%s6780_s18 + $0xd8] sm:$0xf]  ;;  %202 = vst [vmem:[#allocation2 + $0xc8] sm:$0xf] %v201_v38 }
  0x24   :  { %204 = vst [vmem:[#allocation2 + $0xcc] sm:$0xff] %v203_v39   ;;  %208 = vst [vmem:[#allocation2 + $0xd4] sm:$0xf] %v207_v40  ;;  %v209_v41 = vld [vmem:[%s6780_s18 + $0xd4] sm:$0xf]  ;;  %v219_v45 = vld [vmem:[%s6780_s18 + $0xec] sm:$0xff]  }
  0x25   :  { %v215_v43 = vld [vmem:[%s6780_s18 + $0xe8] sm:$0xf]  ;;  %210 = vst [vmem:[#allocation2 + $0xd8] sm:$0xf] %v209_v41  ;;  %212 = vst [vmem:[#allocation2 + $0xdc] sm:$0xff] %v211_v42   ;;  %v227_v48 = vld [vmem:[%s6780_s18 + $0xfc] sm:$0xff]  }
  0x26   :  { %216 = vst [vmem:[#allocation2 + $0xe4] sm:$0xf] %v215_v43  ;;  %v217_v44 = vld [vmem:[%s6780_s18 + $0xe4] sm:$0xf]  ;;  %v223_v46 = vld [vmem:[%s6780_s18 + $0xf8] sm:$0xf] }
  0x27   :  { %218 = vst [vmem:[#allocation2 + $0xe8] sm:$0xf] %v217_v44  ;;  %220 = vst [vmem:[#allocation2 + $0xec] sm:$0xff] %v219_v45   ;;  %v225_v47 = vld [vmem:[%s6780_s18 + $0xf4] sm:$0xf]  ;;  %v235_v51 = vld [vmem:[%s6780_s18 + $0x10c] sm:$0xff]  }
  0x28   :  { %224 = vst [vmem:[#allocation2 + $0xf4] sm:$0xf] %v223_v46  ;;  %v231_v49 = vld [vmem:[%s6780_s18 + $0x108] sm:$0xf]  ;;  %226 = vst [vmem:[#allocation2 + $0xf8] sm:$0xf] %v225_v47 }
  0x29   :  { %228 = vst [vmem:[#allocation2 + $0xfc] sm:$0xff] %v227_v48   ;;  %232 = vst [vmem:[#allocation2 + $0x104] sm:$0xf] %v231_v49  ;;  %v233_v50 = vld [vmem:[%s6780_s18 + $0x104] sm:$0xf]  ;;  %v243_v54 = vld [vmem:[%s6780_s18 + $0x11c] sm:$0xff]  }
  0x2a   :  { %v239_v52 = vld [vmem:[%s6780_s18 + $0x118] sm:$0xf]  ;;  %234 = vst [vmem:[#allocation2 + $0x108] sm:$0xf] %v233_v50  ;;  %236 = vst [vmem:[#allocation2 + $0x10c] sm:$0xff] %v235_v51   ;;  %v251_v57 = vld [vmem:[%s6780_s18 + $0x12c] sm:$0xff]  }
  0x2b   :  { %240 = vst [vmem:[#allocation2 + $0x114] sm:$0xf] %v239_v52  ;;  %v241_v53 = vld [vmem:[%s6780_s18 + $0x114] sm:$0xf]  ;;  %v247_v55 = vld [vmem:[%s6780_s18 + $0x128] sm:$0xf] }
  0x2c   :  { %242 = vst [vmem:[#allocation2 + $0x118] sm:$0xf] %v241_v53  ;;  %244 = vst [vmem:[#allocation2 + $0x11c] sm:$0xff] %v243_v54   ;;  %v249_v56 = vld [vmem:[%s6780_s18 + $0x124] sm:$0xf]  ;;  %v259_v60 = vld [vmem:[%s6780_s18 + $0x13c] sm:$0xff]  }
  0x2d   :  { %248 = vst [vmem:[#allocation2 + $0x124] sm:$0xf] %v247_v55  ;;  %v255_v58 = vld [vmem:[%s6780_s18 + $0x138] sm:$0xf]  ;;  %250 = vst [vmem:[#allocation2 + $0x128] sm:$0xf] %v249_v56 }
  0x2e   :  { %252 = vst [vmem:[#allocation2 + $0x12c] sm:$0xff] %v251_v57   ;;  %256 = vst [vmem:[#allocation2 + $0x134] sm:$0xf] %v255_v58  ;;  %v257_v59 = vld [vmem:[%s6780_s18 + $0x134] sm:$0xf]  ;;  %v267_v63 = vld [vmem:[%s6780_s18 + $0x14c] sm:$0xff]  }
  0x2f   :  { %v263_v61 = vld [vmem:[%s6780_s18 + $0x148] sm:$0xf]  ;;  %258 = vst [vmem:[#allocation2 + $0x138] sm:$0xf] %v257_v59  ;;  %260 = vst [vmem:[#allocation2 + $0x13c] sm:$0xff] %v259_v60   ;;  %v275_v2 = vld [vmem:[%s6780_s18 + $0x15c] sm:$0xff]  }
  0x30   :  { %264 = vst [vmem:[#allocation2 + $0x144] sm:$0xf] %v263_v61  ;;  %v265_v62 = vld [vmem:[%s6780_s18 + $0x144] sm:$0xf]  ;;  %v271_v0 = vld [vmem:[%s6780_s18 + $0x158] sm:$0xf] }
  0x31   :  { %266 = vst [vmem:[#allocation2 + $0x148] sm:$0xf] %v265_v62  ;;  %268 = vst [vmem:[#allocation2 + $0x14c] sm:$0xff] %v267_v63   ;;  %v273_v1 = vld [vmem:[%s6780_s18 + $0x154] sm:$0xf]  ;;  %v283_v5 = vld [vmem:[%s6780_s18 + $0x16c] sm:$0xff]  }
  0x32   :  { %272 = vst [vmem:[#allocation2 + $0x154] sm:$0xf] %v271_v0  ;;  %v279_v3 = vld [vmem:[%s6780_s18 + $0x168] sm:$0xf]  ;;  %274 = vst [vmem:[#allocation2 + $0x158] sm:$0xf] %v273_v1 }
  0x33   :  { %276 = vst [vmem:[#allocation2 + $0x15c] sm:$0xff] %v275_v2   ;;  %280 = vst [vmem:[#allocation2 + $0x164] sm:$0xf] %v279_v3  ;;  %v281_v4 = vld [vmem:[%s6780_s18 + $0x164] sm:$0xf]  ;;  %v291_v8 = vld [vmem:[%s6780_s18 + $0x17c] sm:$0xff]  }
  0x34   :  { %v287_v6 = vld [vmem:[%s6780_s18 + $0x178] sm:$0xf]  ;;  %282 = vst [vmem:[#allocation2 + $0x168] sm:$0xf] %v281_v4  ;;  %284 = vst [vmem:[#allocation2 + $0x16c] sm:$0xff] %v283_v5   ;;  %v299_v11 = vld [vmem:[%s6780_s18 + $0x18c] sm:$0xff]  }
  0x35   :  { %288 = vst [vmem:[#allocation2 + $0x174] sm:$0xf] %v287_v6  ;;  %v289_v7 = vld [vmem:[%s6780_s18 + $0x174] sm:$0xf]  ;;  %v295_v9 = vld [vmem:[%s6780_s18 + $0x188] sm:$0xf] }
  0x36   :  { %290 = vst [vmem:[#allocation2 + $0x178] sm:$0xf] %v289_v7  ;;  %292 = vst [vmem:[#allocation2 + $0x17c] sm:$0xff] %v291_v8   ;;  %v297_v10 = vld [vmem:[%s6780_s18 + $0x184] sm:$0xf]  ;;  %v307_v14 = vld [vmem:[%s6780_s18 + $0x19c] sm:$0xff]  }
  0x37   :  { %296 = vst [vmem:[#allocation2 + $0x184] sm:$0xf] %v295_v9  ;;  %v303_v12 = vld [vmem:[%s6780_s18 + $0x198] sm:$0xf]  ;;  %298 = vst [vmem:[#allocation2 + $0x188] sm:$0xf] %v297_v10 }
  0x38   :  { %300 = vst [vmem:[#allocation2 + $0x18c] sm:$0xff] %v299_v11   ;;  %304 = vst [vmem:[#allocation2 + $0x194] sm:$0xf] %v303_v12  ;;  %v305_v13 = vld [vmem:[%s6780_s18 + $0x194] sm:$0xf]  ;;  %v315_v17 = vld [vmem:[%s6780_s18 + $0x1ac] sm:$0xff]  }
  0x39   :  { %v311_v15 = vld [vmem:[%s6780_s18 + $0x1a8] sm:$0xf]  ;;  %306 = vst [vmem:[#allocation2 + $0x198] sm:$0xf] %v305_v13  ;;  %308 = vst [vmem:[#allocation2 + $0x19c] sm:$0xff] %v307_v14   ;;  %v323_v20 = vld [vmem:[%s6780_s18 + $0x1bc] sm:$0xff]  }
  0x3a   :  { %312 = vst [vmem:[#allocation2 + $0x1a4] sm:$0xf] %v311_v15  ;;  %v313_v16 = vld [vmem:[%s6780_s18 + $0x1a4] sm:$0xf]  ;;  %v319_v18 = vld [vmem:[%s6780_s18 + $0x1b8] sm:$0xf] }
  0x3b   :  { %314 = vst [vmem:[#allocation2 + $0x1a8] sm:$0xf] %v313_v16  ;;  %316 = vst [vmem:[#allocation2 + $0x1ac] sm:$0xff] %v315_v17   ;;  %v321_v19 = vld [vmem:[%s6780_s18 + $0x1b4] sm:$0xf]  ;;  %v331_v23 = vld [vmem:[%s6780_s18 + $0x1cc] sm:$0xff]  }
  0x3c   :  { %320 = vst [vmem:[#allocation2 + $0x1b4] sm:$0xf] %v319_v18  ;;  %v327_v21 = vld [vmem:[%s6780_s18 + $0x1c8] sm:$0xf]  ;;  %322 = vst [vmem:[#allocation2 + $0x1b8] sm:$0xf] %v321_v19 }
  0x3d   :  { %324 = vst [vmem:[#allocation2 + $0x1bc] sm:$0xff] %v323_v20   ;;  %328 = vst [vmem:[#allocation2 + $0x1c4] sm:$0xf] %v327_v21  ;;  %v329_v22 = vld [vmem:[%s6780_s18 + $0x1c4] sm:$0xf]  ;;  %v339_v26 = vld [vmem:[%s6780_s18 + $0x1dc] sm:$0xff]  }
  0x3e   :  { %v335_v24 = vld [vmem:[%s6780_s18 + $0x1d8] sm:$0xf]  ;;  %330 = vst [vmem:[#allocation2 + $0x1c8] sm:$0xf] %v329_v22  ;;  %332 = vst [vmem:[#allocation2 + $0x1cc] sm:$0xff] %v331_v23   ;;  %v347_v29 = vld [vmem:[%s6780_s18 + $0x1ec] sm:$0xff]  }
  0x3f   :  { %336 = vst [vmem:[#allocation2 + $0x1d4] sm:$0xf] %v335_v24  ;;  %v337_v25 = vld [vmem:[%s6780_s18 + $0x1d4] sm:$0xf]  ;;  %v343_v27 = vld [vmem:[%s6780_s18 + $0x1e8] sm:$0xf] }
  0x40   :  { %338 = vst [vmem:[#allocation2 + $0x1d8] sm:$0xf] %v337_v25  ;;  %340 = vst [vmem:[#allocation2 + $0x1dc] sm:$0xff] %v339_v26   ;;  %v345_v28 = vld [vmem:[%s6780_s18 + $0x1e4] sm:$0xf] }
  0x41   :  { %344 = vst [vmem:[#allocation2 + $0x1e4] sm:$0xf] %v343_v27  ;;  %v351_v30 = vld [vmem:[%s6780_s18 + $0x1f8] sm:$0xf]  ;;  %346 = vst [vmem:[#allocation2 + $0x1e8] sm:$0xf] %v345_v28 }
  0x42   :  { %348 = vst [vmem:[#allocation2 + $0x1ec] sm:$0xff] %v347_v29   ;;  %352 = vst [vmem:[#allocation2 + $0x1f4] sm:$0xf] %v351_v30  ;;  %v353_v31 = vld [vmem:[%s6780_s18 + $0x1f4] sm:$0xf] }
  0x43   :  { %v355_v32 = vld [vmem:[%s6780_s18 + $0x1fc] sm:$0xf]  ;;  %354 = vst [vmem:[#allocation2 + $0x1f8] sm:$0xf] %v353_v31 }
  0x44   :  { %356 = vst [vmem:[#allocation2 + $0x1fc] sm:$0xf] %v355_v32 }
  0x45   :  { %643 = vsyncadd [#allocation4], 8192  ;;  %v5583_v33 = vld [vmem:[%s6781_s19] sm:$0xff]  ;;  %v5588_v34 = vld [vmem:[%s6781_s19 + $0x8] sm:$0xff] }
  0x46   :  { %6817 = vst [vmem:[#allocation12_spill] sm:$0xff] %v5583_v33  ;;  %6818 = vst [vmem:[#allocation13_spill] sm:$0xff] %v5588_v34  ;;  %v5593_v35 = vld [vmem:[%s6781_s19 + $0x10] sm:$0xff]  ;;  %v5598_v36 = vld [vmem:[%s6781_s19 + $0x18] sm:$0xff] }
  0x47   :  { %6819 = vst [vmem:[#allocation14_spill] sm:$0xff] %v5593_v35  ;;  %6820 = vst [vmem:[#allocation15_spill] sm:$0xff] %v5598_v36  ;;  %v5603_v37 = vld [vmem:[%s6781_s19 + $0x20] sm:$0xff]  ;;  %v5608_v38 = vld [vmem:[%s6781_s19 + $0x28] sm:$0xff] }
  0x48   :  { %6821 = vst [vmem:[#allocation16_spill] sm:$0xff] %v5603_v37  ;;  %6822 = vst [vmem:[#allocation17_spill] sm:$0xff] %v5608_v38  ;;  %v5613_v39 = vld [vmem:[%s6781_s19 + $0x30] sm:$0xff]  ;;  %v5618_v40 = vld [vmem:[%s6781_s19 + $0x38] sm:$0xff] }
  0x49   :  { %6823 = vst [vmem:[#allocation18_spill] sm:$0xff] %v5613_v39  ;;  %6824 = vst [vmem:[#allocation19_spill] sm:$0xff] %v5618_v40  ;;  %v5623_v41 = vld [vmem:[%s6781_s19 + $0x40] sm:$0xff]  ;;  %v5628_v42 = vld [vmem:[%s6781_s19 + $0x48] sm:$0xff] }
  0x4a   :  { %6825 = vst [vmem:[#allocation20_spill] sm:$0xff] %v5623_v41  ;;  %6826 = vst [vmem:[#allocation21_spill] sm:$0xff] %v5628_v42  ;;  %v5633_v43 = vld [vmem:[%s6781_s19 + $0x50] sm:$0xff]  ;;  %v5638_v44 = vld [vmem:[%s6781_s19 + $0x58] sm:$0xff] }
  0x4b   :  { %6827 = vst [vmem:[#allocation22_spill] sm:$0xff] %v5633_v43  ;;  %6828 = vst [vmem:[#allocation23_spill] sm:$0xff] %v5638_v44  ;;  %v5643_v45 = vld [vmem:[%s6781_s19 + $0x60] sm:$0xff]  ;;  %v5648_v46 = vld [vmem:[%s6781_s19 + $0x68] sm:$0xff] }
  0x4c   :  { %6829 = vst [vmem:[#allocation24_spill] sm:$0xff] %v5643_v45  ;;  %6830 = vst [vmem:[#allocation25_spill] sm:$0xff] %v5648_v46  ;;  %v5653_v47 = vld [vmem:[%s6781_s19 + $0x70] sm:$0xff]  ;;  %v5658_v48 = vld [vmem:[%s6781_s19 + $0x78] sm:$0xff] }
  0x4d   :  { %6831 = vst [vmem:[#allocation26_spill] sm:$0xff] %v5653_v47  ;;  %6832 = vst [vmem:[#allocation27_spill] sm:$0xff] %v5658_v48 }
  0x4e   :  { %716 = vsyncadd [#allocation4 + $0x1], 2048  ;;  %s6833_s4 = sld [smem:[#allocation32_spill]]  ;;  %s6834_s18 = sld [smem:[#allocation31_spill]]  ;;  %vm762_vm0 = vcmask 523264   ;;  %v5695_v61 = vld [vmem:[%s6782_s20] sm:$0xff] }
  0x4f   :  { %s6835_s8 = sld [smem:[#allocation34_spill]]  ;;  %v5700_v62 = vld [vmem:[%s6782_s20 + $0x10] sm:$0xff]  ;;  %s5144_s19 = smov 32   ;;  %v5707_v63 = vld [vmem:[%s6782_s20 + $0x8] sm:$0xff]  ;;  %v5712_v0 = vld [vmem:[%s6782_s20 + $0x18] sm:$0xff]  ;;  %vm843_vm1 = vcmask 261120  }
  0x50   :  { %935 = vrot.lane.b32.xlu0 %v5695_v61, %s5144_s19  ;;  %939 = vrot.lane.b32.xlu1 %v5700_v62, %s5144_s19  ;;  %v5719_v1 = vld [vmem:[%s6782_s20 + $0x20] sm:$0xff]  ;;  %v5724_v2 = vld [vmem:[%s6782_s20 + $0x28] sm:$0xff]  ;;  %s6836_s10 = sld [smem:[#allocation33_spill]]  ;;  %s6837_s29 = sld [smem:[#allocation35_spill]]  ;;  %vm5892_vm2 = vmpackc.low %vm843_vm1, %vm843_vm1 }
  0x51   :  { %v5731_v3 = vld [vmem:[%s6782_s20 + $0x30] sm:$0xff]  ;;  %v5736_v4 = vld [vmem:[%s6782_s20 + $0x38] sm:$0xff]  ;;  %v5743_v5 = vld [vmem:[%s6782_s20 + $0x40] sm:$0xff]  ;;  %s5145_s1 = smov 96   ;;  %s6844_s3 = sld [smem:[#allocation37_spill]] }
  0x52   :  { %v5748_v6 = vld [vmem:[%s6782_s20 + $0x48] sm:$0xff]  ;;  %v5755_v7 = vld [vmem:[%s6782_s20 + $0x50] sm:$0xff]  ;;  %v5760_v8 = vld [vmem:[%s6782_s20 + $0x58] sm:$0xff]  ;;  %s6845_s30 = sld [smem:[#allocation42_spill]]  ;;  %s6846_s11 = sld [smem:[#allocation38_spill]] }
  0x53   :  { %v5767_v9 = vld [vmem:[%s6782_s20 + $0x60] sm:$0xff]  ;;  %v5772_v10 = vld [vmem:[%s6782_s20 + $0x68] sm:$0xff]  ;;  %v5779_v11 = vld [vmem:[%s6782_s20 + $0x70] sm:$0xff]  ;;  %s6848_s0 = sld [smem:[#allocation40_spill]] }
  0x54   :  { %v5012_v49 = vld [vmem:[%s6833_s4] sm:$0xff]   ;;  %v5013_v50 = vld [vmem:[%s6833_s4 + $0x8] sm:$0xff]   ;;  %v5014_v53 = vld [vmem:[%s6833_s4 + $0x10] sm:$0xff]   ;;  %937 = vrot.lane.b32.xlu0 %v5707_v63, %s5144_s19 }
  0x55   :  { %4229 = vmatprep.subr.bf16.mxu1 %v5012_v49  ;;  %v717_v51 = vld [vmem:[%s6834_s18] sm:$0xff]  ;;  %v718_v52 = vld [vmem:[%s6834_s18 + $0x8] sm:$0xff]  ;;  %v5015_v55 = vld [vmem:[%s6833_s4 + $0x18] sm:$0xff]   ;;  %941 = vrot.lane.b32.xlu1 %v5712_v0, %s5144_s19  ;;  %s6847_s4 = sld [smem:[#allocation39_spill]] }
  0x56   :  { %4230 = vmatpush3.bf16.msra.mxu1 %v5012_v49  ;;  %v721_v54 = vpack.c.bf16 %v718_v52, %v717_v51  ;;  %v719_v56 = vld [vmem:[%s6834_s18 + $0x10] sm:$0xff]  ;;  %v720_v57 = vld [vmem:[%s6834_s18 + $0x18] sm:$0xff]  ;;  %v5016_v59 = vld [vmem:[%s6835_s8] sm:$0xff]   ;;  %s5146_s18 = smov 64  }
  0x57   :  { %4231 = vmatprep.subr.bf16.mxu1 %v5013_v50  ;;  %v722_v58 = vpack.c.bf16 %v720_v57, %v719_v56  ;;  %v5017_v60 = vld [vmem:[%s6835_s8 + $0x8] sm:$0xff]   ;;  %v5784_v12 = vld [vmem:[%s6782_s20 + $0x78] sm:$0xff]  ;;  %v3881_v14 = vld [vmem:[%s6836_s10] ss:$0 sm:$0xff]  ;;  %s6843_s20 = sld [smem:[#allocation36_spill]] }
  0x58   :  { %4237 = vmatprep.mubr.msk.bf16.mxu1 %vm762_vm0, %v721_v54  ;;  %943 = vrot.lane.b32.xlu0 %v5719_v1, %s5144_s19  ;;  %v1066_v45 = vld [vmem:[%s6783_s21 + $0x18] sm:$0xff] }
  0x59   :  { %945 = vrot.lane.b32.xlu1 %v5724_v2, %s5144_s19 }
  0x5a   :  { %4232 = vmatpush3.bf16.msra.mxu1 %v5013_v50  ;;  %v3888_v50 = vld [vmem:[%s6837_s29] ss:$0 sm:$0xff] }
  0x5b   :  { %4233 = vmatprep.subr.bf16.mxu1 %v5014_v53 }
  0x5c   :  { %947 = vrot.lane.b32.xlu0 %v5731_v3, %s5144_s19 }
  0x5d   :  { %949 = vrot.lane.b32.xlu1 %v5736_v4, %s5144_s19 }
  0x5e   :  { %4234 = vmatpush3.bf16.msra.mxu1 %v5014_v53 }
  0x5f   :  { %4235 = vmatprep.subr.bf16.mxu1 %v5015_v55 }
  0x60   :  { %951 = vrot.lane.b32.xlu0 %v5743_v5, %s5144_s19 }
  0x61   :  { %953 = vrot.lane.b32.xlu1 %v5748_v6, %s5144_s19 }
  0x62   :  { %4236 = vmatpush3.bf16.msra.mxu1 %v5015_v55 }
  0x63   :  { %4241 = vmatprep.subr.bf16.mxu1 %v5016_v59 }
  0x64   :  { %955 = vrot.lane.b32.xlu0 %v5755_v7, %s5144_s19 }
  0x65   :  { %4238 = vmatmul.mubr.msk.bf16.vlgmr.msra.gmra.mrb[0].mxu1 %vm762_vm0, %v722_v58  ;;  %957 = vrot.lane.b32.xlu1 %v5760_v8, %s5144_s19 }
  0x66   :  { %4242 = vmatpush3.bf16.msra.mxu1 %v5016_v59 }
  0x67   :  { %4243 = vmatprep.subr.bf16.mxu1 %v5017_v60 }
  0x68   :  { %959 = vrot.lane.b32.xlu0 %v5767_v9, %s5144_s19 }
  0x69   :  { %961 = vrot.lane.b32.xlu1 %v5772_v10, %s5144_s19 }
  0x6a   :  { %4244 = vmatpush3.bf16.msra.mxu1 %v5017_v60 }
  0x6c   :  { %963 = vrot.lane.b32.xlu0 %v5779_v11, %s5144_s19 }
  0x6d   :  { %965 = vrot.lane.b32.xlu1 %v5784_v12, %s5144_s19  ;;  %s6849_s19 = sld [smem:[#allocation41_spill]] }
  0xc2   :  { %v5805_v24 = vpop.permute.xlu1 %939  ;;  %v5807_v25 = vpop.permute.xlu0 %935 }
  0xc6   :  { %v5811_v27 = vpop.permute.xlu0 %937 }
  0xc7   :  { %v5809_v26 = vpop.permute.xlu1 %941 }
  0xca   :  { %v5815_v29 = vpop.permute.xlu0 %943 }
  0xcb   :  { %v5813_v28 = vpop.permute.xlu1 %945 }
  0xce   :  { %v5819_v31 = vpop.permute.xlu0 %947 }
  0xcf   :  { %v5817_v30 = vpop.permute.xlu1 %949 }
  0xd2   :  { %v5823_v49 = vpop.permute.xlu0 %951 }
  0xd3   :  { %v5821_v32 = vpop.permute.xlu1 %953 }
  0xd6   :  { %v5832_v55 = vpop.permute.xlu0 %955 }
  0xd7   :  { %v5828_v51 = vpop.permute.xlu1 %957 }
 0x138   :  { %v4239_v13 = vpop.f32.mrb[0].mxu1 }
 0x139   :  { %v803_v15 = vpop.f32.mrb[1].mxu1  ;;  %v5797_v21 = vadd.f32 %v4239_v13, %v3881_v14 }
 0x13a   :  { %v4240_v16 = vpop.f32.mrb[2].mxu1  ;;  %v5793_v19 = vadd.f32 %v3881_v14, %v803_v15 }
 0x13b   :  { %v5791_v17 = vadd.f32 %v4240_v16, %v3881_v14  ;;  %v806_v18 = vpop.f32.mrb[3].mxu1  ;;  %v5845_v16 = vpop.permute.xlu1 %961 }
 0x13c   :  { %v5795_v20 = vadd.f32 %v3881_v14, %v806_v18 }
 0x13d   :  { %v819_v23 = vpack.c.bf16 %v5791_v17, %v5797_v21 }
 0x13e   :  { %v818_v22 = vpack.c.bf16 %v5795_v20, %v5793_v19 }
 0x13f   :  { %v5866_v40 = vpop.permute.xlu1 %965 }
 0x140   :  { %4245 = vmatprep.mubr.msk.bf16.mxu1 %vm843_vm1, %v818_v22 }
 0x141   :  { %4246 = vmatmul.mubr.msk.bf16.vlgmr.msra.gmra.mrb[4].mxu1 %vm843_vm1, %v819_v23 }
 0x214   :  { %v4247_v52 = vpop.f32.mrb[4].mxu1 }
 0x215   :  { %v5830_v53 = vadd.f32 %v4247_v52, %v3888_v50  ;;  %v884_v54 = vpop.f32.mrb[5].mxu1  ;;  %v5854_v52 = vpop.permute.xlu0 %959 }
 0x216   :  { %v5834_v56 = vadd.f32 %v3888_v50, %v884_v54  ;;  %v4248_v57 = vpop.f32.mrb[6].mxu1 }
 0x217   :  { %v5836_v58 = vadd.f32 %v4248_v57, %v3888_v50  ;;  %v887_v59 = vpop.f32.mrb[7].mxu1  ;;  %v985_v14 = vmul.f32 %v5805_v24, %v5830_v53 }
 0x218   :  { %v5838_v60 = vadd.f32 %v3888_v50, %v887_v59  ;;  %v899_v13 = vmul.f32 0.35355338, %v5834_v56  ;;  %v983_v18 = vmul.f32 %v5807_v25, %v5834_v56  ;;  %v989_v59 = vmul.f32 %v5819_v31, %v5830_v53 }
 0x219   :  { %v986_v15 = vmul.f32 %v5809_v26, %v5836_v58  ;;  %v990_v50 = vmul.f32 %v5817_v30, %v5836_v58  ;;  %v5873_v48 = vpop.permute.xlu0 %963 }
 0x21a   :  { %4281 = vmatprep.mubr.msk.f32.mxu1 %vm843_vm1, %v899_v13  ;;  %v984_v22 = vmul.f32 %v5811_v27, %v5838_v60  ;;  %v988_v57 = vmul.f32 %v5813_v28, %v5838_v60  ;;  %v987_v13 = vmul.f32 %v5815_v29, %v5834_v56 }
 0x21b   :  { %v4857_v23 = vpack.i.bf16 %v986_v15, %v985_v14  ;;  %v4867_v14 = vpack.i.bf16 %v990_v50, %v989_v59  ;;  %v994_v15 = vmul.f32 %v5828_v51, %v5836_v58  ;;  %v991_v50 = vmul.f32 %v5823_v49, %v5834_v56 }
 0x21c   :  { %v4852_v54 = vpack.i.bf16 %v984_v22, %v983_v18  ;;  %v4862_v18 = vpack.i.bf16 %v988_v57, %v987_v13  ;;  %v992_v22 = vmul.f32 %v5821_v32, %v5838_v60  ;;  %v996_v13 = vmul.f32 %v5845_v16, %v5838_v60 }
 0x21d   :  { %4858 = vrot.lane.b32.xlu1 %v4857_v23, %s5145_s1  ;;  %v993_v23 = vmul.f32 %v5832_v55, %v5830_v53 }
 0x21e   :  { %4853 = vrot.lane.b32.xlu0 %v4852_v54, %s5145_s1  ;;  %v998_v54 = vmul.f32 %v5866_v40, %v5836_v58  ;;  %v4872_v57 = vpack.i.bf16 %v992_v22, %v991_v50 }
 0x21f   :  { %v4877_v59 = vpack.i.bf16 %v994_v15, %v993_v23 }
 0x221   :  { %4868 = vrot.lane.b32.xlu1 %v4867_v14, %s5145_s1  ;;  %v997_v14 = vmul.f32 %v5873_v48, %v5830_v53 }
 0x222   :  { %4863 = vrot.lane.b32.xlu0 %v4862_v18, %s5145_s1  ;;  %v995_v18 = vmul.f32 %v5854_v52, %v5834_v56 }
 0x223   :  { %v4887_v39 = vpack.i.bf16 %v998_v54, %v997_v14 }
 0x224   :  { %v4882_v47 = vpack.i.bf16 %v996_v13, %v995_v18 }
 0x225   :  { %4878 = vrot.lane.b32.xlu1 %v4877_v59, %s5145_s1  ;;  %v6838_v59 = vmov 0 }
 0x226   :  { %4873 = vrot.lane.b32.xlu0 %v4872_v57, %s5145_s1  ;;  %v6839_v59 = vsel %vm5892_vm2, 4294967295, %v6838_v59 }
 0x227   :  { %6840 = vst [vmem:[#allocation28_spill] sm:$0xff] %v6839_v59 }
 0x229   :  { %4888 = vrot.lane.b32.xlu1 %v4887_v39, %s5145_s1 }
 0x22a   :  { %4883 = vrot.lane.b32.xlu0 %v4882_v47, %s5145_s1 }
 0x28f   :  { %v4859_v15 = vpop.permute.xlu1 %4858 }
 0x290   :  { %v4854_v22 = vpop.permute.xlu0 %4853  ;;  %v4861_v23 = vunpack.i.h.bf16 %v4859_v15  ;;  %v4860_v50 = vunpack.i.l.bf16 %v4859_v15 }
 0x291   :  { %v4856_v38 = vunpack.i.h.bf16 %v4854_v22  ;;  %v4855_v46 = vunpack.i.l.bf16 %v4854_v22 }
 0x292   :  { %v4575_v37 = vpack.c.bf16 %v4861_v23, %v4860_v50 }
 0x293   :  { %v4569_v57 = vpack.c.bf16 %v4856_v38, %v4855_v46  ;;  %v4869_v14 = vpop.permute.xlu1 %4868 }
 0x294   :  { %v4864_v39 = vpop.permute.xlu0 %4863  ;;  %v4871_v38 = vunpack.i.h.bf16 %v4869_v14  ;;  %v4870_v46 = vunpack.i.l.bf16 %v4869_v14 }
 0x295   :  { %4571 = vmatprep.subr.msk.bf16.mxu1 %vm5892_vm2, %v4569_v57  ;;  %v4866_v47 = vunpack.i.h.bf16 %v4864_v39  ;;  %v4865_v54 = vunpack.i.l.bf16 %v4864_v39 }
 0x296   :  { %4574 = vmatpush3.bf16.xpose.msk.msra.mxu1 %vm5892_vm2, %v4569_v57  ;;  %v4587_v18 = vpack.c.bf16 %v4871_v38, %v4870_v46 }
 0x297   :  { %4577 = vmatprep.subr.msk.bf16.mxu1 %vm5892_vm2, %v4575_v37  ;;  %v4581_v13 = vpack.c.bf16 %v4866_v47, %v4865_v54  ;;  %v4879_v57 = vpop.permute.xlu1 %4878 }
 0x298   :  { %v4874_v15 = vpop.permute.xlu0 %4873  ;;  %v4880_v39 = vunpack.i.l.bf16 %v4879_v57 }
 0x299   :  { %v4876_v22 = vunpack.i.h.bf16 %v4874_v15  ;;  %v4875_v23 = vunpack.i.l.bf16 %v4874_v15 }
 0x29b   :  { %v4593_v50 = vpack.c.bf16 %v4876_v22, %v4875_v23  ;;  %v4889_v46 = vpop.permute.xlu1 %4888  ;;  %v900_v23 = vmul.f32 0.35355338, %v5838_v60 }
 0x29c   :  { %v4884_v54 = vpop.permute.xlu0 %4883  ;;  %v4890_v15 = vunpack.i.l.bf16 %v4889_v46 }
 0x29d   :  { %v4885_v14 = vunpack.i.l.bf16 %v4884_v54 }
 0x29e   :  { %4580 = vmatpush3.bf16.xpose.msk.msra.mxu1 %vm5892_vm2, %v4575_v37  ;;  %v4881_v37 = vunpack.i.h.bf16 %v4879_v57  ;;  %v902_v57 = vmul.f32 0.35355338, %v5836_v58 }
 0x29f   :  { %4583 = vmatprep.subr.msk.bf16.mxu1 %vm5892_vm2, %v4581_v13 }
 0x2a0   :  { %v4599_v47 = vpack.c.bf16 %v4881_v37, %v4880_v39  ;;  %v1264_v37 = vld [vmem:[%s6784_s22] sm:$0xff]  ;;  %v1265_v39 = vld [vmem:[%s6784_s22 + $0x8] sm:$0xff] }
 0x2a6   :  { %4586 = vmatpush3.bf16.xpose.msk.msra.mxu1 %vm5892_vm2, %v4581_v13  ;;  %v4886_v13 = vunpack.i.h.bf16 %v4884_v54  ;;  %v5943_v54 = vpack.c.bf16 %v1265_v39, %v1264_v37 }
 0x2a7   :  { %4589 = vmatprep.subr.msk.bf16.mxu1 %vm5892_vm2, %v4587_v18 }
 0x2a8   :  { %v4605_v38 = vpack.c.bf16 %v4886_v13, %v4885_v14  ;;  %v1267_v13 = vld [vmem:[%s6784_s22 + $0x18] sm:$0xff] }
 0x2ae   :  { %4592 = vmatpush3.bf16.xpose.msk.msra.mxu1 %vm5892_vm2, %v4587_v18  ;;  %v4891_v18 = vunpack.i.h.bf16 %v4889_v46  ;;  %v1269_v46 = vld [vmem:[%s6784_s22 + $0x28] sm:$0xff] }
 0x2af   :  { %4595 = vmatprep.subr.msk.bf16.mxu1 %vm5892_vm2, %v4593_v50 }
 0x2b0   :  { %v4611_v22 = vpack.c.bf16 %v4891_v18, %v4890_v15  ;;  %v1270_v15 = vld [vmem:[%s6784_s22 + $0x30] sm:$0xff] }
 0x2b6   :  { %4598 = vmatpush3.bf16.xpose.msk.msra.mxu1 %vm5892_vm2, %v4593_v50  ;;  %v901_v50 = vmul.f32 0.35355338, %v5830_v53 }
 0x2b7   :  { %4601 = vmatprep.subr.msk.bf16.mxu1 %vm5892_vm2, %v4599_v47 }
 0x2be   :  { %4604 = vmatpush3.bf16.xpose.msk.msra.mxu1 %vm5892_vm2, %v4599_v47  ;;  %v1266_v47 = vld [vmem:[%s6784_s22 + $0x10] sm:$0xff] }
 0x2bf   :  { %4607 = vmatprep.subr.msk.bf16.mxu1 %vm5892_vm2, %v4605_v38  ;;  %v5948_v14 = vpack.c.bf16 %v1267_v13, %v1266_v47 }
 0x2c6   :  { %4610 = vmatpush3.bf16.xpose.msk.msra.mxu1 %vm5892_vm2, %v4605_v38  ;;  %v1268_v38 = vld [vmem:[%s6784_s22 + $0x20] sm:$0xff] }
 0x2c7   :  { %4613 = vmatprep.subr.msk.bf16.mxu1 %vm5892_vm2, %v4611_v22  ;;  %v5959_v18 = vpack.c.bf16 %v1269_v46, %v1268_v38  ;;  %v1065_v38 = vld [vmem:[%s6783_s21 + $0x10] sm:$0xff] }
 0x2ce   :  { %4616 = vmatpush3.bf16.xpose.msk.msra.mxu1 %vm5892_vm2, %v4611_v22  ;;  %v1271_v22 = vld [vmem:[%s6784_s22 + $0x38] sm:$0xff] }
 0x2cf   :  { %4618 = vmatprep.subr.bf16.mxu1 %v5943_v54 }
 0x2d5   :  { %4282 = vmatmul.mubr.msk.f32.vlgmr.msra.gmra.mrb[8].mxu1 %vm843_vm1, %v900_v23  ;;  %v5969_v23 = vpack.c.bf16 %v1271_v22, %v1270_v15 }
 0x2d6   :  { %4284 = vmatprep.mubr.msk.f32.mxu1 %vm843_vm1, %v901_v50  ;;  %4620 = vmatpush3.bf16.msra.mxu1 %v5943_v54  ;;  %v1064_v50 = vld [vmem:[%s6783_s21 + $0x8] sm:$0xff] }
 0x2d7   :  { %4622 = vmatprep.subr.bf16.mxu1 %v5948_v14 }
 0x2d9   :  { %4285 = vmatmul.mubr.msk.f32.gmra.mrb[10].mxu1 %vm843_vm1, %v902_v57  ;;  %v1063_v57 = vld [vmem:[%s6783_s21] sm:$0xff] }
 0x2da   :  { %4624 = vmatpush3.bf16.msra.mxu1 %v5948_v14 }
 0x2db   :  { %4626 = vmatprep.subr.bf16.mxu1 %v5959_v18 }
 0x2de   :  { %4628 = vmatpush3.bf16.msra.mxu1 %v5959_v18 }
 0x2df   :  { %4630 = vmatprep.subr.bf16.mxu1 %v5969_v23 }
 0x2e2   :  { %4632 = vmatpush3.bf16.msra.mxu1 %v5969_v23 }
 0x3a8   :  { %v4283_v37 = vpop.f32.mrb[8].mxu1 }
 0x3a9   :  { %v1231_v39 = vadd.f32 %v4283_v37, %v1064_v50  ;;  %v1225_v47 = vpop.f32.mrb[9].mxu1  ;;  %v1272_v50 = vld [vmem:[%s6784_s22 + $0x40] sm:$0xff] }
 0x3aa   :  { %v1226_v13 = vadd.f32 %v1225_v47, %v1063_v57  ;;  %v1273_v57 = vld [vmem:[%s6784_s22 + $0x48] sm:$0xff] }
 0x3ab   :  { %1246 = vmax.xlane.f32.xlu1 %v1231_v39  ;;  %v5994_v37 = vpack.c.bf16 %v1273_v57, %v1272_v50 }
 0x3ac   :  { %v4286_v46 = vpop.f32.mrb[10].mxu1  ;;  %1244 = vmax.xlane.f32.xlu0 %v1226_v13 }
 0x3ad   :  { %v1235_v15 = vpop.f32.mrb[11].mxu1  ;;  %v1241_v36 = vadd.f32 %v4286_v46, %v1066_v45  ;;  %4634 = vmatprep.subr.bf16.mxu1 %v5994_v37  ;;  %v1274_v45 = vld [vmem:[%s6784_s22 + $0x50] sm:$0xff] }
 0x3ae   :  { %v1236_v22 = vadd.f32 %v1235_v15, %v1065_v38  ;;  %4636 = vmatpush3.bf16.msra.mxu1 %v5994_v37  ;;  %v1277_v38 = vld [vmem:[%s6784_s22 + $0x68] sm:$0xff]  ;;  %v1279_v15 = vld [vmem:[%s6784_s22 + $0x78] sm:$0xff] }
 0x3b0   :  { %1248 = vmax.xlane.f32.xlu0 %v1236_v22 }
 0x3b4   :  { %1250 = vmax.xlane.f32.xlu0 %v1241_v36 }
 0x3bc   :  { %999 = vrot.lane.b32.xlu1 %v5695_v61, %s5146_s18  ;;  %v1275_v61 = vld [vmem:[%s6784_s22 + $0x58] sm:$0xff] }
 0x3bd   :  { %v6006_v47 = vpack.c.bf16 %v1275_v61, %v1274_v45 }
 0x3bf   :  { %4638 = vmatprep.subr.bf16.mxu1 %v6006_v47 }
 0x3c0   :  { %1003 = vrot.lane.b32.xlu1 %v5700_v62, %s5146_s18  ;;  %4640 = vmatpush3.bf16.msra.mxu1 %v6006_v47  ;;  %v1276_v62 = vld [vmem:[%s6784_s22 + $0x60] sm:$0xff] }
 0x3c1   :  { %v6018_v46 = vpack.c.bf16 %v1277_v38, %v1276_v62 }
 0x3c3   :  { %4642 = vmatprep.subr.bf16.mxu1 %v6018_v46 }
 0x3c4   :  { %1005 = vrot.lane.b32.xlu1 %v5712_v0, %s5146_s18  ;;  %v1278_v0 = vld [vmem:[%s6784_s22 + $0x70] sm:$0xff]  ;;  %4644 = vmatpush3.bf16.msra.mxu1 %v6018_v46 }
 0x3c5   :  { %v6030_v50 = vpack.c.bf16 %v1279_v15, %v1278_v0 }
 0x3c7   :  { %4646 = vmatprep.subr.bf16.mxu1 %v6030_v50 }
 0x3c8   :  { %1009 = vrot.lane.b32.xlu1 %v5724_v2, %s5146_s18  ;;  %4648 = vmatpush3.bf16.msra.mxu1 %v6030_v50 }
 0x3ca   :  { %1001 = vrot.lane.b32.xlu0 %v5707_v63, %s5146_s18 }
 0x3cc   :  { %1013 = vrot.lane.b32.xlu1 %v5736_v4, %s5146_s18 }
 0x3ce   :  { %1007 = vrot.lane.b32.xlu0 %v5719_v1, %s5146_s18 }
 0x3d0   :  { %1017 = vrot.lane.b32.xlu1 %v5748_v6, %s5146_s18 }
 0x3d2   :  { %1011 = vrot.lane.b32.xlu0 %v5731_v3, %s5146_s18 }
 0x3d4   :  { %1021 = vrot.lane.b32.xlu1 %v5760_v8, %s5146_s18 }
 0x3d6   :  { %1015 = vrot.lane.b32.xlu0 %v5743_v5, %s5146_s18 }
 0x3d8   :  { %1025 = vrot.lane.b32.xlu1 %v5772_v10, %s5146_s18 }
 0x3da   :  { %1019 = vrot.lane.b32.xlu0 %v5755_v7, %s5146_s18 }
 0x3dc   :  { %1029 = vrot.lane.b32.xlu1 %v5784_v12, %s5146_s18 }
 0x3de   :  { %1023 = vrot.lane.b32.xlu0 %v5767_v9, %s5146_s18 }
 0x3e2   :  { %1027 = vrot.lane.b32.xlu0 %v5779_v11, %s5146_s18 }
 0x438   :  { %v1247_v63 = vpop.xlane.xlu1 %1246 }
 0x439   :  { %v1253_v1 = vsub.f32 %v1231_v39, %v1247_v63  ;;  %v1245_v2 = vpop.xlane.xlu0 %1244 }
 0x43a   :  { %v1252_v3 = vsub.f32 %v1226_v13, %v1245_v2 }
 0x43b   :  { %v1258_v4 = vmul.f32 1.442695, %v1253_v1 }
 0x43c   :  { %v1256_v5 = vmul.f32 1.442695, %v1252_v3  ;;  %v6058_v6 = vpop.permute.xlu1 %999 }
 0x43d   :  { %v1249_v8 = vpop.xlane.xlu0 %1248 }
 0x43e   :  { %5036 = vpow2.f32 %v1256_v5  ;;  %v1254_v7 = vsub.f32 %v1236_v22, %v1249_v8  ;;  %v1047_v22 = vmul.f32 %v6058_v6, %v5834_v56 }
 0x43f   :  { %5038 = vpow2.f32 %v1258_v4 }
 0x440   :  { %v1260_v10 = vmul.f32 1.442695, %v1254_v7  ;;  %v6060_v12 = vpop.permute.xlu1 %1003 }
 0x441   :  { %v1251_v57 = vpop.xlane.xlu0 %1250  ;;  %v1049_v39 = vmul.f32 %v6060_v12, %v5830_v53 }
 0x442   :  { %5040 = vpow2.f32 %v1260_v10  ;;  %v1255_v9 = vsub.f32 %v1241_v36, %v1251_v57 }
 0x444   :  { %v1262_v45 = vmul.f32 1.442695, %v1255_v9  ;;  %v6062_v11 = vpop.permute.xlu1 %1005 }
 0x445   :  { %v1050_v13 = vmul.f32 %v6062_v11, %v5836_v58  ;;  %v6068_v61 = vpop.permute.xlu0 %1001 }
 0x446   :  { %5042 = vpow2.f32 %v1262_v45  ;;  %v1048_v62 = vmul.f32 %v6068_v61, %v5838_v60 }
 0x447   :  { %v4897_v38 = vpack.i.bf16 %v1050_v13, %v1049_v39 }
 0x448   :  { %v6074_v36 = vpop.eup %5036  ;;  %v4892_v0 = vpack.i.bf16 %v1048_v62, %v1047_v22  ;;  %v6076_v15 = vpop.permute.xlu1 %1009 }
 0x449   :  { %v6078_v63 = vpop.eup %5038  ;;  %v1052_v1 = vmul.f32 %v6076_v15, %v5838_v60  ;;  %4898 = vrot.lane.b32.xlu1 %v4897_v38, %s5146_s18  ;;  %4319 = vmatprep.mubr.f32.mxu1 %v6074_v36  ;;  %v6084_v2 = vpop.permute.xlu0 %1007 }
 0x44a   :  { %v1051_v3 = vmul.f32 %v6084_v2, %v5834_v56  ;;  %4320 = vmatmul.mubr.f32.vlgmr.msra.gmra.mrb[12].mxu1 %v6078_v63  ;;  %4893 = vrot.lane.b32.xlu0 %v4892_v0, %s5146_s18 }
 0x44c   :  { %v6090_v4 = vpop.eup %5040  ;;  %v4902_v5 = vpack.i.bf16 %v1052_v1, %v1051_v3  ;;  %v6092_v8 = vpop.permute.xlu1 %1013 }
 0x44d   :  { %v1054_v7 = vmul.f32 %v6092_v8, %v5836_v58  ;;  %4322 = vmatprep.mubr.f32.mxu1 %v6090_v4  ;;  %v6097_v10 = vpop.permute.xlu0 %1011 }
 0x44e   :  { %v1053_v57 = vmul.f32 %v6097_v10, %v5830_v53  ;;  %4903 = vrot.lane.b32.xlu0 %v4902_v5, %s5146_s18 }
 0x450   :  { %v6102_v9 = vpop.eup %5042  ;;  %v4907_v45 = vpack.i.bf16 %v1054_v7, %v1053_v57  ;;  %v6104_v39 = vpop.permute.xlu1 %1017 }
 0x451   :  { %v1056_v13 = vmul.f32 %v6104_v39, %v5838_v60  ;;  %4323 = vmatmul.mubr.f32.gmra.mrb[14].mxu1 %v6102_v9  ;;  %v6109_v22 = vpop.permute.xlu0 %1015 }
 0x452   :  { %v1055_v62 = vmul.f32 %v6109_v22, %v5834_v56  ;;  %4908 = vrot.lane.b32.xlu1 %v4907_v45, %s5146_s18 }
 0x454   :  { %v4912_v38 = vpack.i.bf16 %v1056_v13, %v1055_v62  ;;  %v6114_v0 = vpop.permute.xlu1 %1021 }
 0x455   :  { %v1058_v1 = vmul.f32 %v6114_v0, %v5836_v58  ;;  %v6118_v3 = vpop.permute.xlu0 %1019 }
 0x456   :  { %v1057_v5 = vmul.f32 %v6118_v3, %v5830_v53  ;;  %4913 = vrot.lane.b32.xlu0 %v4912_v38, %s5146_s18 }
 0x458   :  { %v4917_v7 = vpack.i.bf16 %v1058_v1, %v1057_v5  ;;  %v6123_v57 = vpop.permute.xlu1 %1025 }
 0x459   :  { %6841 = vst [vmem:[#allocation29_spill] sm:$0xff] %v6123_v57  ;;  %v1060_v44 = vmul.f32 %v6123_v57, %v5838_v60  ;;  %v6127_v45 = vpop.permute.xlu0 %1023 }
 0x45a   :  { %6842 = vst [vmem:[#allocation30_spill] sm:$0xff] %v6127_v45  ;;  %v1059_v13 = vmul.f32 %v6127_v45, %v5834_v56  ;;  %4918 = vrot.lane.b32.xlu1 %v4917_v7, %s5146_s18 }
 0x45c   :  { %v4922_v62 = vpack.i.bf16 %v1060_v44, %v1059_v13  ;;  %v6132_v35 = vpop.permute.xlu1 %1029 }
 0x45d   :  { %v1062_v43 = vmul.f32 %v6132_v35, %v5836_v58  ;;  %v6136_v38 = vpop.permute.xlu0 %1027 }
 0x45e   :  { %v1061_v1 = vmul.f32 %v6136_v38, %v5830_v53  ;;  %4923 = vrot.lane.b32.xlu0 %v4922_v62, %s5146_s18 }
 0x460   :  { %v4927_v60 = vpack.i.bf16 %v1062_v43, %v1061_v1 }
 0x462   :  { %4928 = vrot.lane.b32.xlu1 %v4927_v60, %s5146_s18 }
 0x4bb   :  { %v4899_v5 = vpop.permute.xlu1 %4898 }
 0x4bc   :  { %v4894_v56 = vpop.permute.xlu0 %4893  ;;  %v4901_v34 = vunpack.i.h.bf16 %v4899_v5  ;;  %v4900_v7 = vunpack.i.l.bf16 %v4899_v5 }
 0x4bd   :  { %v4896_v44 = vunpack.i.h.bf16 %v4894_v56  ;;  %v4895_v13 = vunpack.i.l.bf16 %v4894_v56 }
 0x4be   :  { %v4653_v41 = vpack.c.bf16 %v4901_v34, %v4900_v7 }
 0x4bf   :  { %v4649_v42 = vpack.c.bf16 %v4896_v44, %v4895_v13 }
 0x4c0   :  { %v4904_v33 = vpop.permute.xlu0 %4903 }
 0x4c1   :  { %v4906_v58 = vunpack.i.h.bf16 %v4904_v33  ;;  %v4905_v59 = vunpack.i.l.bf16 %v4904_v33  ;;  %4650 = vmatprep.subr.bf16.mxu0 %v4649_v42 }
 0x4c2   :  { %4652 = vmatpush3.bf16.msra.mxu0 %v4649_v42 }
 0x4c3   :  { %4654 = vmatprep.subr.bf16.mxu0 %v4653_v41  ;;  %v4657_v57 = vpack.c.bf16 %v4906_v58, %v4905_v59 }
 0x4c4   :  { %v4909_v53 = vpop.permute.xlu1 %4908 }
 0x4c5   :  { %v4911_v62 = vunpack.i.h.bf16 %v4909_v53  ;;  %v4910_v43 = vunpack.i.l.bf16 %v4909_v53 }
 0x4c6   :  { %4656 = vmatpush3.bf16.msra.mxu0 %v4653_v41 }
 0x4c7   :  { %4658 = vmatprep.subr.bf16.mxu0 %v4657_v57  ;;  %v4661_v60 = vpack.c.bf16 %v4911_v62, %v4910_v43 }
 0x4c8   :  { %v4914_v1 = vpop.permute.xlu0 %4913 }
 0x4c9   :  { %v4916_v45 = vunpack.i.h.bf16 %v4914_v1  ;;  %v4915_v5 = vunpack.i.l.bf16 %v4914_v1 }
 0x4ca   :  { %4660 = vmatpush3.bf16.msra.mxu0 %v4657_v57 }
 0x4cb   :  { %4662 = vmatprep.subr.bf16.mxu0 %v4661_v60  ;;  %v4665_v44 = vpack.c.bf16 %v4916_v45, %v4915_v5 }
 0x4cc   :  { %v4919_v56 = vpop.permute.xlu1 %4918 }
 0x4cd   :  { %v4921_v34 = vunpack.i.h.bf16 %v4919_v56  ;;  %v4920_v7 = vunpack.i.l.bf16 %v4919_v56 }
 0x4ce   :  { %4664 = vmatpush3.bf16.msra.mxu0 %v4661_v60 }
 0x4cf   :  { %4666 = vmatprep.subr.bf16.mxu0 %v4665_v44  ;;  %v4669_v42 = vpack.c.bf16 %v4921_v34, %v4920_v7 }
 0x4d0   :  { %v4924_v33 = vpop.permute.xlu0 %4923 }
 0x4d1   :  { %v4926_v13 = vunpack.i.h.bf16 %v4924_v33  ;;  %v4925_v59 = vunpack.i.l.bf16 %v4924_v33 }
 0x4d2   :  { %4668 = vmatpush3.bf16.msra.mxu0 %v4665_v44 }
 0x4d3   :  { %4670 = vmatprep.subr.bf16.mxu0 %v4669_v42  ;;  %v4673_v58 = vpack.c.bf16 %v4926_v13, %v4925_v59 }
 0x4d4   :  { %v4929_v41 = vpop.permute.xlu1 %4928 }
 0x4d5   :  { %v4931_v53 = vunpack.i.h.bf16 %v4929_v41  ;;  %v4930_v62 = vunpack.i.l.bf16 %v4929_v41 }
 0x4d6   :  { %4672 = vmatpush3.bf16.msra.mxu0 %v4669_v42 }
 0x4d7   :  { %4674 = vmatprep.subr.bf16.mxu0 %v4673_v58  ;;  %v4677_v57 = vpack.c.bf16 %v4931_v53, %v4930_v62  ;;  %v5018_v62 = vld [vmem:[%s6843_s20] sm:$0xff]  }
 0x4d8   :  { %4363 = vmatprep.subr.bf16.mxu1 %v5018_v62 }
 0x4d9   :  { %4364 = vmatpush3.bf16.msra.mxu1 %v5018_v62 }
 0x4da   :  { %4676 = vmatpush3.bf16.msra.mxu0 %v4673_v58 }
 0x4db   :  { %4678 = vmatprep.subr.bf16.mxu0 %v4677_v57 }
 0x4de   :  { %4680 = vmatpush3.bf16.msra.mxu0 %v4677_v57 }
 0x51d   :  { %v4321_v45 = vpop.f32.mrb[12].mxu1 }
 0x51e   :  { %v1366_v43 = vmax.f32 %v4321_v45, 1e-30  ;;  %v1346_v1 = vpop.f32.mrb[13].mxu1 }
 0x51f   :  { %v1365_v60 = vmax.f32 %v1346_v1, 1e-30  ;;  %v3913_v1 = vld [vmem:[%s6844_s3] ss:$0 sm:$0xff] }
 0x520   :  { %5044 = vrcp.f32 %v1366_v43 }
 0x521   :  { %5046 = vrcp.f32 %v1365_v60 }
 0x524   :  { %v4324_v5 = vpop.f32.mrb[14].mxu1 }
 0x525   :  { %v1368_v56 = vmax.f32 %v4324_v5, 1e-30  ;;  %v1356_v44 = vpop.f32.mrb[15].mxu1 }
 0x526   :  { %v1367_v34 = vmax.f32 %v1356_v44, 1e-30 }
 0x527   :  { %5048 = vrcp.f32 %v1368_v56 }
 0x528   :  { %5050 = vrcp.f32 %v1367_v34 }
 0x52a   :  { %v5045_v7 = vpop.eup %5044 }
 0x52b   :  { %v5047_v33 = vpop.eup %5046  ;;  %v1374_v13 = vmul.f32 %v5045_v7, %v6078_v63 }
 0x52c   :  { %v1373_v42 = vmul.f32 %v5047_v33, %v6074_v36  ;;  %v5019_v36 = vld [vmem:[%s6843_s20 + $0x8] sm:$0xff]  }
 0x52d   :  { %4365 = vmatprep.subr.bf16.mxu1 %v5019_v36 }
 0x52e   :  { %4357 = vmatprep.mubr.f32.mxu0 %v1373_v42  ;;  %4366 = vmatpush3.bf16.msra.mxu1 %v5019_v36 }
 0x52f   :  { %4358 = vmatmul.mubr.f32.vlgmr.msra.gmra.mrb[0].mxu0 %v1374_v13 }
 0x531   :  { %v5049_v59 = vpop.eup %5048 }
 0x532   :  { %v5051_v41 = vpop.eup %5050  ;;  %v1376_v53 = vmul.f32 %v5049_v59, %v6102_v9 }
 0x533   :  { %v1375_v58 = vmul.f32 %v5051_v41, %v6090_v4 }
 0x535   :  { %4360 = vmatprep.mubr.f32.mxu0 %v1375_v58 }
 0x536   :  { %4361 = vmatmul.mubr.f32.gmra.mrb[2].mxu0 %v1376_v53 }
 0x602   :  { %v4359_v63 = vpop.f32.mrb[0].mxu0 }
 0x603   :  { %v1507_v57 = vpop.f32.mrb[1].mxu0 }
 0x604   :  { %v1526_v45 = vpack.c.bf16 %v4359_v63, %v1507_v57 }
 0x606   :  { %4367 = vmatprep.mubr.msk.bf16.mxu1 %vm843_vm1, %v1526_v45 }
 0x609   :  { %v4362_v4 = vpop.f32.mrb[2].mxu0 }
 0x60a   :  { %v1517_v9 = vpop.f32.mrb[3].mxu0 }
 0x60b   :  { %v1527_v43 = vpack.c.bf16 %v4362_v4, %v1517_v9 }
 0x60d   :  { %4368 = vmatmul.mubr.msk.bf16.vlgmr.msra.gmra.mrb[16].mxu1 %vm843_vm1, %v1527_v43 }
 0x6e0   :  { %v4369_v60 = vpop.f32.mrb[16].mxu1 }
 0x6e1   :  { %v1591_v5 = vpop.f32.mrb[17].mxu1  ;;  %v1600_v56 = vadd.f32 %v4369_v60, %v3913_v1 }
 0x6e2   :  { %v1592_v44 = vadd.f32 %v3913_v1, %v1591_v5  ;;  %v4370_v34 = vpop.f32.mrb[18].mxu1 }
 0x6e3   :  { %v1594_v7 = vpop.f32.mrb[19].mxu1  ;;  %v1603_v13 = vadd.f32 %v4370_v34, %v3913_v1  ;;  %v1608_v58 = vadd.f32 %v1600_v56, %v5797_v21 }
 0x6e4   :  { %v1595_v33 = vadd.f32 %v3913_v1, %v1594_v7  ;;  %v1606_v42 = vadd.f32 %v1592_v44, %v5793_v19 }
 0x6e5   :  { %v1618_v62 = vsel %vm843_vm1, %v1608_v58, 0.0  ;;  %v1609_v36 = vadd.f32 %v1603_v13, %v5791_v17 }
 0x6e6   :  { %v1612_v59 = vsel %vm843_vm1, %v1606_v42, 0.0  ;;  %v1607_v41 = vadd.f32 %v1595_v33, %v5795_v20 }
 0x6e7   :  { %1613 = vadd.xlane.f32.xlu0 %v1612_v59  ;;  %v1621_v63 = vsel %vm843_vm1, %v1609_v36, 0.0 }
 0x6e8   :  { %v1615_v53 = vsel %vm843_vm1, %v1607_v41, 0.0 }
 0x6e9   :  { %1616 = vadd.xlane.f32.xlu1 %v1615_v53  ;;  %v5022_v53 = vld [vmem:[%s6775_s13] sm:$0xff]  }
 0x6ea   :  { %4379 = vmatprep.subr.bf16.mxu1 %v5022_v53 }
 0x6eb   :  { %1619 = vadd.xlane.f32.xlu0 %v1618_v62  ;;  %v5023_v62 = vld [vmem:[%s6775_s13 + $0x8] sm:$0xff]   ;;  %4380 = vmatpush3.bf16.msra.mxu1 %v5022_v53 }
 0x6ec   :  { %4381 = vmatprep.subr.bf16.mxu1 %v5023_v62 }
 0x6ef   :  { %1622 = vadd.xlane.f32.xlu0 %v1621_v63  ;;  %4382 = vmatpush3.bf16.msra.mxu1 %v5023_v62 }
 0x774   :  { %v1614_v19 = vpop.xlane.xlu0 %1613 }
 0x775   :  { %v1625_v57 = vmul.f32 0.03125, %v1614_v19 }
 0x776   :  { %v1617_v45 = vpop.xlane.xlu1 %1616 }
 0x777   :  { %v1629_v4 = vsub.f32 %v1606_v42, %v1625_v57  ;;  %v1626_v9 = vmul.f32 0.03125, %v1617_v45 }
 0x778   :  { %v1620_v20 = vpop.xlane.xlu0 %1619 }
 0x779   :  { %v1630_v43 = vsub.f32 %v1607_v41, %v1626_v9  ;;  %v1627_v21 = vmul.f32 0.03125, %v1620_v20  ;;  %v1633_v1 = vmul.f32 %v1629_v4, %v1629_v4  ;;  %v5020_v41 = vld [vmem:[%s6845_s30] sm:$0xff]  }
 0x77a   :  { %4371 = vmatprep.subr.bf16.mxu0 %v5020_v41 }
 0x77b   :  { %v1631_v60 = vsub.f32 %v1608_v58, %v1627_v21  ;;  %v1637_v5 = vsel %vm843_vm1, %v1633_v1, 0.0  ;;  %v1634_v56 = vmul.f32 %v1630_v43, %v1630_v43  ;;  %v5021_v58 = vld [vmem:[%s6845_s30 + $0x8] sm:$0xff]   ;;  %4372 = vmatpush3.bf16.msra.mxu0 %v5020_v41 }
 0x77c   :  { %1638 = vadd.xlane.f32.xlu1 %v1637_v5  ;;  %v1623_v44 = vpop.xlane.xlu0 %1622  ;;  %4373 = vmatprep.subr.bf16.mxu0 %v5021_v58 }
 0x77d   :  { %v1628_v17 = vmul.f32 0.03125, %v1623_v44  ;;  %v1640_v34 = vsel %vm843_vm1, %v1634_v56, 0.0  ;;  %v1635_v7 = vmul.f32 %v1631_v60, %v1631_v60 }
 0x77e   :  { %1641 = vadd.xlane.f32.xlu0 %v1640_v34  ;;  %v3918_v34 = vld [vmem:[%s6846_s11] ss:$0 sm:$0xff] }
 0x77f   :  { %v1632_v33 = vsub.f32 %v1609_v36, %v1628_v17  ;;  %v1643_v13 = vsel %vm843_vm1, %v1635_v7, 0.0  ;;  %4374 = vmatpush3.bf16.msra.mxu0 %v5021_v58  ;;  %v3919_v58 = vld [vmem:[%s6847_s4] ss:$0 sm:$0xff] }
 0x780   :  { %1644 = vadd.xlane.f32.xlu1 %v1643_v13 }
 0x781   :  { %v1636_v42 = vmul.f32 %v1632_v33, %v1632_v33 }
 0x783   :  { %v1646_v59 = vsel %vm843_vm1, %v1636_v42, 0.0 }
 0x784   :  { %1647 = vadd.xlane.f32.xlu0 %v1646_v59 }
 0x809   :  { %v1639_v36 = vpop.xlane.xlu1 %1638 }
 0x80a   :  { %v1649_v63 = vmul.f32 0.03125, %v1639_v36 }
 0x80b   :  { %v1642_v19 = vpop.xlane.xlu0 %1641 }
 0x80c   :  { %v1653_v57 = vadd.f32 1e-05, %v1649_v63  ;;  %v1650_v45 = vmul.f32 0.03125, %v1642_v19 }
 0x80d   :  { %v1645_v9 = vpop.xlane.xlu1 %1644 }
 0x80e   :  { %5052 = vrsqrt.f32 %v1653_v57  ;;  %v1654_v20 = vadd.f32 1e-05, %v1650_v45  ;;  %v1651_v21 = vmul.f32 0.03125, %v1645_v9 }
 0x810   :  { %5054 = vrsqrt.f32 %v1654_v20  ;;  %v1655_v1 = vadd.f32 1e-05, %v1651_v21 }
 0x811   :  { %v1648_v5 = vpop.xlane.xlu0 %1647 }
 0x812   :  { %5056 = vrsqrt.f32 %v1655_v1  ;;  %v1652_v56 = vmul.f32 0.03125, %v1648_v5  ;;  %v5024_v1 = vld [vmem:[%s6775_s13 + $0x10] sm:$0xff]  }
 0x813   :  { %4383 = vmatprep.subr.bf16.mxu1 %v5024_v1 }
 0x814   :  { %v1656_v44 = vadd.f32 1e-05, %v1652_v56  ;;  %4384 = vmatpush3.bf16.msra.mxu1 %v5024_v1 }
 0x816   :  { %5058 = vrsqrt.f32 %v1656_v44 }
 0x818   :  { %v5053_v17 = vpop.eup %5052 }
 0x819   :  { %v1661_v7 = vmul.f32 %v5053_v17, %v1629_v4 }
 0x81a   :  { %v5055_v13 = vpop.eup %5054 }
 0x81b   :  { %v1662_v42 = vmul.f32 %v5055_v13, %v1630_v43  ;;  %v1671_v59 = vmul.f32 %v3918_v34, %v1661_v7 }
 0x81c   :  { %v5057_v41 = vpop.eup %5056 }
 0x81d   :  { %v1663_v53 = vmul.f32 %v5057_v41, %v1631_v60  ;;  %v1672_v62 = vmul.f32 %v3918_v34, %v1662_v42  ;;  %v1681_v36 = vadd.f32 %v3919_v58, %v1671_v59  ;;  %v5025_v60 = vld [vmem:[%s6775_s13 + $0x18] sm:$0xff]  }
 0x81e   :  { %4385 = vmatprep.subr.bf16.mxu1 %v5025_v60 }
 0x81f   :  { %v1682_v63 = vadd.f32 %v3919_v58, %v1672_v62  ;;  %v1673_v57 = vmul.f32 %v3918_v34, %v1663_v53  ;;  %4386 = vmatpush3.bf16.msra.mxu1 %v5025_v60 }
 0x820   :  { %v5059_v19 = vpop.eup %5058  ;;  %4730 = vmatprep.subr.bf16.mxu1 %v5943_v54 }
 0x821   :  { %v1664_v45 = vmul.f32 %v5059_v19, %v1632_v33  ;;  %v1685_v9 = vpack.c.bf16 %v1682_v63, %v1681_v36  ;;  %v1683_v4 = vadd.f32 %v3919_v58, %v1673_v57  ;;  %v3920_v33 = vld [vmem:[%s6774_s12] ss:$0 sm:$0xff] }
 0x823   :  { %v1674_v20 = vmul.f32 %v3918_v34, %v1664_v45  ;;  %4375 = vmatprep.mubr.msk.bf16.mxu0 %vm843_vm1, %v1685_v9 }
 0x825   :  { %v1684_v21 = vadd.f32 %v3919_v58, %v1674_v20 }
 0x827   :  { %v1686_v43 = vpack.c.bf16 %v1684_v21, %v1683_v4 }
 0x829   :  { %4376 = vmatmul.mubr.msk.bf16.vlgmr.msra.gmra.mrb[4].mxu0 %vm843_vm1, %v1686_v43 }
 0x8fc   :  { %v4377_v5 = vpop.f32.mrb[4].mxu0 }
 0x8fd   :  { %v1759_v56 = vadd.f32 %v4377_v5, %v3920_v33  ;;  %v1750_v44 = vpop.f32.mrb[5].mxu0 }
 0x8fe   :  { %v1751_v17 = vadd.f32 %v3920_v33, %v1750_v44  ;;  %v4378_v34 = vpop.f32.mrb[6].mxu0 }
 0x8ff   :  { %v1762_v7 = vadd.f32 %v4378_v34, %v3920_v33  ;;  %v1753_v13 = vpop.f32.mrb[7].mxu0  ;;  %v1767_v59 = vmax.f32 %v1759_v56, 0.0 }
 0x900   :  { %v1754_v42 = vadd.f32 %v3920_v33, %v1753_v13  ;;  %v1765_v58 = vmax.f32 %v1751_v17, 0.0 }
 0x901   :  { %v1768_v41 = vmax.f32 %v1762_v7, 0.0 }
 0x902   :  { %v1766_v53 = vmax.f32 %v1754_v42, 0.0 }
 0x903   :  { %v1770_v62 = vpack.c.bf16 %v1768_v41, %v1767_v59 }
 0x904   :  { %v1769_v19 = vpack.c.bf16 %v1766_v53, %v1765_v58 }
 0x906   :  { %4387 = vmatprep.mubr.msk.bf16.mxu1 %vm762_vm0, %v1769_v19 }
 0x907   :  { %4388 = vmatmul.mubr.msk.bf16.vlgmr.msra.gmra.mrb[20].mxu1 %vm762_vm0, %v1770_v62 }
 0x908   :  { %4732 = vmatpush3.bf16.msra.mxu1 %v5943_v54  ;;  %v3925_v54 = vld [vmem:[%s6776_s14] ss:$0 sm:$0xff] }
 0x909   :  { %4734 = vmatprep.subr.bf16.mxu1 %v5948_v14 }
 0x90c   :  { %4736 = vmatpush3.bf16.msra.mxu1 %v5948_v14 }
 0x90d   :  { %4738 = vmatprep.subr.bf16.mxu1 %v5959_v18 }
 0x910   :  { %4740 = vmatpush3.bf16.msra.mxu1 %v5959_v18 }
 0x911   :  { %4742 = vmatprep.subr.bf16.mxu1 %v5969_v23 }
 0x914   :  { %4744 = vmatpush3.bf16.msra.mxu1 %v5969_v23 }
 0x915   :  { %4746 = vmatprep.subr.bf16.mxu1 %v5994_v37 }
 0x918   :  { %4748 = vmatpush3.bf16.msra.mxu1 %v5994_v37 }
 0x919   :  { %4750 = vmatprep.subr.bf16.mxu1 %v6006_v47 }
 0x91c   :  { %4752 = vmatpush3.bf16.msra.mxu1 %v6006_v47 }
 0x91d   :  { %4754 = vmatprep.subr.bf16.mxu1 %v6018_v46 }
 0x920   :  { %4756 = vmatpush3.bf16.msra.mxu1 %v6018_v46 }
 0x921   :  { %4758 = vmatprep.subr.bf16.mxu1 %v6030_v50 }
 0x924   :  { %4760 = vmatpush3.bf16.msra.mxu1 %v6030_v50 }
 0x9da   :  { %v4389_v14 = vpop.f32.mrb[20].mxu1 }
 0x9db   :  { %v1850_v18 = vpop.f32.mrb[21].mxu1  ;;  %v1859_v23 = vadd.f32 %v4389_v14, %v3925_v54 }
 0x9dc   :  { %v1851_v37 = vadd.f32 %v3925_v54, %v1850_v18  ;;  %v4390_v57 = vpop.f32.mrb[22].mxu1 }
 0x9dd   :  { %v1853_v45 = vpop.f32.mrb[23].mxu1  ;;  %v1862_v9 = vadd.f32 %v4390_v57, %v3925_v54  ;;  %v1867_v1 = vadd.f32 %v1859_v23, %v1683_v4  ;;  %v5026_v23 = vld [vmem:[%s6835_s8 + $0x10] sm:$0xff]  }
 0x9de   :  { %v1854_v47 = vadd.f32 %v3925_v54, %v1853_v45  ;;  %v1865_v20 = vadd.f32 %v1851_v37, %v1681_v36  ;;  %v5027_v37 = vld [vmem:[%s6835_s8 + $0x18] sm:$0xff]   ;;  %4391 = vmatprep.subr.bf16.mxu0 %v5026_v23 }
 0x9df   :  { %v1868_v60 = vadd.f32 %v1862_v9, %v1684_v21  ;;  %v1877_v33 = vsel %vm843_vm1, %v1867_v1, 0.0  ;;  %4392 = vmatpush3.bf16.msra.mxu0 %v5026_v23 }
 0x9e0   :  { %v1871_v43 = vsel %vm843_vm1, %v1865_v20, 0.0  ;;  %v1866_v46 = vadd.f32 %v1854_v47, %v1682_v63  ;;  %4393 = vmatprep.subr.bf16.mxu0 %v5027_v37 }
 0x9e1   :  { %1872 = vadd.xlane.f32.xlu1 %v1871_v43  ;;  %v1880_v5 = vsel %vm843_vm1, %v1868_v60, 0.0 }
 0x9e2   :  { %v1874_v50 = vsel %vm843_vm1, %v1866_v46, 0.0 }
 0x9e3   :  { %1875 = vadd.xlane.f32.xlu0 %v1874_v50  ;;  %4394 = vmatpush3.bf16.msra.mxu0 %v5027_v37 }
 0x9e5   :  { %1878 = vadd.xlane.f32.xlu1 %v1877_v33 }
 0x9e7   :  { %1881 = vadd.xlane.f32.xlu0 %v1880_v5 }
 0xa6e   :  { %v1873_v56 = vpop.xlane.xlu1 %1872 }
 0xa6f   :  { %v1883_v44 = vmul.f32 0.03125, %v1873_v56 }
 0xa70   :  { %v1876_v17 = vpop.xlane.xlu0 %1875 }
 0xa71   :  { %v1887_v34 = vsub.f32 %v1865_v20, %v1883_v44  ;;  %v1884_v36 = vmul.f32 0.03125, %v1876_v17  ;;  %v3932_v44 = vld [vmem:[%s6848_s0] ss:$0 sm:$0xff] }
 0xa72   :  { %v1879_v7 = vpop.xlane.xlu1 %1878 }
 0xa73   :  { %v1888_v13 = vsub.f32 %v1866_v46, %v1884_v36  ;;  %v1885_v63 = vmul.f32 0.03125, %v1879_v7  ;;  %v1891_v4 = vmul.f32 %v1887_v34, %v1887_v34 }
 0xa74   :  { %v1882_v42 = vpop.xlane.xlu0 %1881 }
 0xa75   :  { %v1889_v59 = vsub.f32 %v1867_v1, %v1885_v63  ;;  %v1886_v41 = vmul.f32 0.03125, %v1882_v42  ;;  %v1895_v21 = vsel %vm843_vm1, %v1891_v4, 0.0  ;;  %v1892_v58 = vmul.f32 %v1888_v13, %v1888_v13  ;;  %v3933_v42 = vld [vmem:[%s6849_s19] ss:$0 sm:$0xff] }
 0xa76   :  { %1896 = vadd.xlane.f32.xlu1 %v1895_v21 }
 0xa77   :  { %v1890_v53 = vsub.f32 %v1868_v60, %v1886_v41  ;;  %v1898_v62 = vsel %vm843_vm1, %v1892_v58, 0.0  ;;  %v1893_v19 = vmul.f32 %v1889_v59, %v1889_v59 }
 0xa78   :  { %1899 = vadd.xlane.f32.xlu0 %v1898_v62 }
 0xa79   :  { %v1901_v54 = vsel %vm843_vm1, %v1893_v19, 0.0  ;;  %v1894_v14 = vmul.f32 %v1890_v53, %v1890_v53 }
 0xa7a   :  { %1902 = vadd.xlane.f32.xlu1 %v1901_v54 }
 0xa7b   :  { %v1904_v18 = vsel %vm843_vm1, %v1894_v14, 0.0 }
 0xa7c   :  { %1905 = vadd.xlane.f32.xlu0 %v1904_v18 }
 0xb03   :  { %v1897_v57 = vpop.xlane.xlu1 %1896 }
 0xb04   :  { %v1907_v45 = vmul.f32 0.03125, %v1897_v57 }
 0xb05   :  { %v1900_v9 = vpop.xlane.xlu0 %1899 }
 0xb06   :  { %v1911_v47 = vadd.f32 1e-05, %v1907_v45  ;;  %v1908_v20 = vmul.f32 0.03125, %v1900_v9 }
 0xb07   :  { %v1903_v43 = vpop.xlane.xlu1 %1902 }
 0xb08   :  { %5060 = vrsqrt.f32 %v1911_v47  ;;  %v1912_v46 = vadd.f32 1e-05, %v1908_v20  ;;  %v1909_v1 = vmul.f32 0.03125, %v1903_v43 }
 0xb09   :  { %v1906_v50 = vpop.xlane.xlu0 %1905 }
 0xb0a   :  { %5062 = vrsqrt.f32 %v1912_v46  ;;  %v1913_v60 = vadd.f32 1e-05, %v1909_v1  ;;  %v1910_v33 = vmul.f32 0.03125, %v1906_v50 }
 0xb0c   :  { %5064 = vrsqrt.f32 %v1913_v60  ;;  %v1914_v5 = vadd.f32 1e-05, %v1910_v33 }
 0xb0e   :  { %5066 = vrsqrt.f32 %v1914_v5 }
 0xb12   :  { %v5061_v56 = vpop.eup %5060 }
 0xb13   :  { %v1919_v17 = vmul.f32 %v5061_v56, %v1887_v34 }
 0xb14   :  { %v5063_v36 = vpop.eup %5062 }
 0xb15   :  { %v1920_v7 = vmul.f32 %v5063_v36, %v1888_v13  ;;  %v1929_v63 = vmul.f32 %v3932_v44, %v1919_v17 }
 0xb16   :  { %v5065_v4 = vpop.eup %5064 }
 0xb17   :  { %v1921_v41 = vmul.f32 %v5065_v4, %v1889_v59  ;;  %v1930_v21 = vmul.f32 %v3932_v44, %v1920_v7  ;;  %v6239_v54 = vadd.f32 %v3933_v42, %v1929_v63 }
 0xb18   :  { %v5067_v58 = vpop.eup %5066 }
 0xb19   :  { %v1931_v62 = vmul.f32 %v3932_v44, %v1921_v41  ;;  %v1922_v19 = vmul.f32 %v5067_v58, %v1890_v53  ;;  %v6241_v14 = vadd.f32 %v3933_v42, %v1930_v21  ;;  %v3939_v53 = vld [vmem:[%s6837_s29 + $0x1] ss:$0 sm:$0xff] }
 0xb1b   :  { %v1932_v18 = vmul.f32 %v3932_v44, %v1922_v19  ;;  %v1943_v34 = vpack.c.bf16 %v6241_v14, %v6239_v54  ;;  %v6246_v13 = vadd.f32 %v3933_v42, %v1931_v62  ;;  %v6850_v19 = vld [vmem:[#allocation30_spill] sm:$0xff] }
 0xb1d   :  { %4395 = vmatprep.mubr.msk.bf16.mxu0 %vm843_vm1, %v1943_v34  ;;  %v6248_v23 = vadd.f32 %v3933_v42, %v1932_v18  ;;  %v6851_v34 = vld [vmem:[#allocation29_spill] sm:$0xff] }
 0xb1f   :  { %v1944_v59 = vpack.c.bf16 %v6248_v23, %v6246_v13 }
 0xb21   :  { %4396 = vmatmul.mubr.msk.bf16.vlgmr.msra.gmra.mrb[8].mxu0 %vm843_vm1, %v1944_v59 }
 0xbf4   :  { %v4397_v37 = vpop.f32.mrb[8].mxu0 }
 0xbf5   :  { %v6256_v57 = vadd.f32 %v4397_v37, %v3939_v53  ;;  %v2010_v45 = vpop.f32.mrb[9].mxu0 }
 0xbf6   :  { %v2011_v9 = vadd.f32 %v3939_v53, %v2010_v45  ;;  %v4398_v47 = vpop.f32.mrb[10].mxu0 }
 0xbf7   :  { %v6258_v20 = vadd.f32 %v4398_v47, %v3939_v53  ;;  %v2013_v43 = vpop.f32.mrb[11].mxu0  ;;  %v2031_v46 = vmul.f32 %v6256_v57, %v5805_v24  ;;  %v2035_v1 = vmul.f32 %v6256_v57, %v5819_v31 }
 0xbf8   :  { %v6264_v50 = vadd.f32 %v3939_v53, %v2013_v43  ;;  %v2025_v60 = vmul.f32 0.35355338, %v2011_v9  ;;  %v2029_v33 = vmul.f32 %v2011_v9, %v5807_v25  ;;  %v2037_v5 = vmul.f32 %v2011_v9, %v5823_v49 }
 0xbf9   :  { %v2032_v56 = vmul.f32 %v6258_v20, %v5809_v26  ;;  %v2033_v44 = vmul.f32 %v2011_v9, %v5815_v29  ;;  %v2041_v17 = vmul.f32 %v2011_v9, %v5854_v52  ;;  %v2036_v24 = vmul.f32 %v6258_v20, %v5817_v30 }
 0xbfa   :  { %4431 = vmatprep.mubr.msk.f32.mxu0 %vm843_vm1, %v2025_v60  ;;  %v2030_v31 = vmul.f32 %v6264_v50, %v5811_v27  ;;  %v2038_v25 = vmul.f32 %v6264_v50, %v5821_v32  ;;  %v2034_v49 = vmul.f32 %v6264_v50, %v5813_v28  ;;  %v2042_v26 = vmul.f32 %v6264_v50, %v5845_v16 }
 0xbfb   :  { %v4937_v29 = vpack.i.bf16 %v2032_v56, %v2031_v46  ;;  %v4947_v36 = vpack.i.bf16 %v2036_v24, %v2035_v1  ;;  %v2039_v52 = vmul.f32 %v6256_v57, %v5832_v55  ;;  %v2040_v30 = vmul.f32 %v6258_v20, %v5828_v51 }
 0xbfc   :  { %v4932_v7 = vpack.i.bf16 %v2030_v31, %v2029_v33  ;;  %v4952_v63 = vpack.i.bf16 %v2038_v25, %v2037_v5  ;;  %v4942_v27 = vpack.i.bf16 %v2034_v49, %v2033_v44  ;;  %v4962_v4 = vpack.i.bf16 %v2042_v26, %v2041_v17 }
 0xbfd   :  { %4938 = vrot.lane.b32.xlu0 %v4937_v29, %s5145_s1  ;;  %v4957_v32 = vpack.i.bf16 %v2040_v30, %v2039_v52  ;;  %v2043_v28 = vmul.f32 %v6256_v57, %v5873_v48  ;;  %v2044_v16 = vmul.f32 %v6258_v20, %v5866_v40  ;;  %v6294_v55 = vmul.f32 %v2011_v9, %v6058_v6 }
 0xbfe   :  { %4933 = vrot.lane.b32.xlu1 %v4932_v7, %s5145_s1  ;;  %v6298_v51 = vmul.f32 %v6264_v50, %v6068_v61  ;;  %v6301_v42 = vmul.f32 %v2011_v9, %v6084_v2  ;;  %v6305_v21 = vmul.f32 %v6264_v50, %v6076_v15  ;;  %v6309_v40 = vmul.f32 %v6256_v57, %v6097_v10 }
 0xbff   :  { %v4967_v41 = vpack.i.bf16 %v2044_v16, %v2043_v28  ;;  %v6313_v48 = vmul.f32 %v6258_v20, %v6092_v8  ;;  %v6319_v61 = vmul.f32 %v6256_v57, %v6118_v3  ;;  %v6323_v2 = vmul.f32 %v6258_v20, %v6114_v0 }
 0xc00   :  { %v4972_v6 = vpack.i.bf16 %v6298_v51, %v6294_v55  ;;  %v6327_v15 = vmul.f32 %v6256_v57, %v6060_v12  ;;  %v4982_v8 = vpack.i.bf16 %v6305_v21, %v6301_v42  ;;  %v6336_v3 = vmul.f32 %v6258_v20, %v6062_v11 }
 0xc01   :  { %4953 = vrot.lane.b32.xlu0 %v4952_v63, %s5145_s1  ;;  %v4987_v10 = vpack.i.bf16 %v6313_v48, %v6309_v40  ;;  %v6340_v0 = vmul.f32 %v6256_v57, %v6136_v38  ;;  %v4997_v12 = vpack.i.bf16 %v6323_v2, %v6319_v61  ;;  %v6347_v58 = vmul.f32 %v6258_v20, %v6132_v35 }
 0xc02   :  { %4943 = vrot.lane.b32.xlu1 %v4942_v27, %s5145_s1  ;;  %v6350_v62 = vmul.f32 %v2011_v9, %v6109_v22  ;;  %v6354_v11 = vmul.f32 %v6264_v50, %v6104_v39  ;;  %v4977_v38 = vpack.i.bf16 %v6336_v3, %v6327_v15  ;;  %v6359_v18 = vmul.f32 %v2011_v9, %v6850_v19 }
 0xc03   :  { %v6363_v59 = vmul.f32 %v6264_v50, %v6851_v34  ;;  %v5007_v35 = vpack.i.bf16 %v6347_v58, %v6340_v0 }
 0xc04   :  { %v4992_v22 = vpack.i.bf16 %v6354_v11, %v6350_v62 }
 0xc05   :  { %4963 = vrot.lane.b32.xlu0 %v4962_v4, %s5145_s1  ;;  %v5002_v39 = vpack.i.bf16 %v6363_v59, %v6359_v18 }
 0xc06   :  { %4948 = vrot.lane.b32.xlu1 %v4947_v36, %s5145_s1 }
 0xc0a   :  { %4958 = vrot.lane.b32.xlu1 %v4957_v32, %s5145_s1 }
 0xc0e   :  { %4968 = vrot.lane.b32.xlu1 %v4967_v41, %s5145_s1 }
 0xc6f   :  { %v4939_v53 = vpop.permute.xlu0 %4938 }
 0xc70   :  { %v4934_v37 = vpop.permute.xlu1 %4933  ;;  %v4941_v45 = vunpack.i.h.bf16 %v4939_v53  ;;  %v4940_v9 = vunpack.i.l.bf16 %v4939_v53  ;;  %v2026_v53 = vmul.f32 0.35355338, %v6264_v50  ;;  %v5109_v50 = vld [vmem:[%s6783_s21] sm:$0xff] }
 0xc71   :  { %v4936_v47 = vunpack.i.h.bf16 %v4934_v37  ;;  %v4935_v43 = vunpack.i.l.bf16 %v4934_v37  ;;  %v2027_v37 = vmul.f32 0.35355338, %v6256_v57 }
 0xc72   :  { %v4687_v1 = vpack.c.bf16 %v4941_v45, %v4940_v9  ;;  %v2028_v45 = vmul.f32 0.35355338, %v6258_v20  ;;  %v5110_v20 = vld [vmem:[%s6783_s21 + $0x10] sm:$0xff] }
 0xc73   :  { %v4681_v46 = vpack.c.bf16 %v4936_v47, %v4935_v43  ;;  %v4954_v49 = vpop.permute.xlu0 %4953  ;;  %v5108_v47 = vld [vmem:[%s6783_s21 + $0x8] sm:$0xff] }
 0xc74   :  { %v4944_v33 = vpop.permute.xlu1 %4943  ;;  %v4956_v26 = vunpack.i.h.bf16 %v4954_v49  ;;  %v4955_v29 = vunpack.i.l.bf16 %v4954_v49 }
 0xc75   :  { %4683 = vmatprep.subr.msk.bf16.mxu0 %vm5892_vm2, %v4681_v46  ;;  %v4946_v5 = vunpack.i.h.bf16 %v4944_v33  ;;  %v4945_v56 = vunpack.i.l.bf16 %v4944_v33 }
 0xc76   :  { %4686 = vmatpush3.bf16.xpose.msk.msra.mxu0 %vm5892_vm2, %v4681_v46  ;;  %v4705_v36 = vpack.c.bf16 %v4956_v26, %v4955_v29 }
 0xc77   :  { %4689 = vmatprep.subr.msk.bf16.mxu0 %vm5892_vm2, %v4687_v1  ;;  %v4693_v44 = vpack.c.bf16 %v4946_v5, %v4945_v56  ;;  %v4964_v27 = vpop.permute.xlu0 %4963  ;;  %v5111_v5 = vld [vmem:[%s6783_s21 + $0x18] sm:$0xff] }
 0xc78   :  { %v4949_v17 = vpop.permute.xlu1 %4948  ;;  %v4966_v4 = vunpack.i.h.bf16 %v4964_v27  ;;  %v4965_v32 = vunpack.i.l.bf16 %v4964_v27 }
 0xc79   :  { %v4951_v24 = vunpack.i.h.bf16 %v4949_v17  ;;  %v4950_v31 = vunpack.i.l.bf16 %v4949_v17 }
 0xc7a   :  { %v4717_v28 = vpack.c.bf16 %v4966_v4, %v4965_v32 }
 0xc7b   :  { %v4699_v25 = vpack.c.bf16 %v4951_v24, %v4950_v31 }
 0xc7c   :  { %v4959_v52 = vpop.permute.xlu1 %4958 }
 0xc7d   :  { %v4961_v30 = vunpack.i.h.bf16 %v4959_v52  ;;  %v4960_v7 = vunpack.i.l.bf16 %v4959_v52 }
 0xc7e   :  { %4692 = vmatpush3.bf16.xpose.msk.msra.mxu0 %vm5892_vm2, %v4687_v1 }
 0xc7f   :  { %4695 = vmatprep.subr.msk.bf16.mxu0 %vm5892_vm2, %v4693_v44  ;;  %v4711_v63 = vpack.c.bf16 %v4961_v30, %v4960_v7 }
 0xc80   :  { %v4969_v16 = vpop.permute.xlu1 %4968 }
 0xc81   :  { %v4971_v41 = vunpack.i.h.bf16 %v4969_v16  ;;  %v4970_v19 = vunpack.i.l.bf16 %v4969_v16 }
 0xc83   :  { %v4723_v34 = vpack.c.bf16 %v4971_v41, %v4970_v19 }
 0xc86   :  { %4698 = vmatpush3.bf16.xpose.msk.msra.mxu0 %vm5892_vm2, %v4693_v44 }
 0xc87   :  { %4701 = vmatprep.subr.msk.bf16.mxu0 %vm5892_vm2, %v4699_v25 }
 0xc8e   :  { %4704 = vmatpush3.bf16.xpose.msk.msra.mxu0 %vm5892_vm2, %v4699_v25 }
 0xc8f   :  { %4707 = vmatprep.subr.msk.bf16.mxu0 %vm5892_vm2, %v4705_v36 }
 0xc96   :  { %4710 = vmatpush3.bf16.xpose.msk.msra.mxu0 %vm5892_vm2, %v4705_v36 }
 0xc97   :  { %4713 = vmatprep.subr.msk.bf16.mxu0 %vm5892_vm2, %v4711_v63 }
 0xc9e   :  { %4716 = vmatpush3.bf16.xpose.msk.msra.mxu0 %vm5892_vm2, %v4711_v63 }
 0xc9f   :  { %4719 = vmatprep.subr.msk.bf16.mxu0 %vm5892_vm2, %v4717_v28 }
 0xca6   :  { %4722 = vmatpush3.bf16.xpose.msk.msra.mxu0 %vm5892_vm2, %v4717_v28 }
 0xca7   :  { %4725 = vmatprep.subr.msk.bf16.mxu0 %vm5892_vm2, %v4723_v34 }
 0xcae   :  { %4728 = vmatpush3.bf16.xpose.msk.msra.mxu0 %vm5892_vm2, %v4723_v34 }
 0xcb5   :  { %4432 = vmatmul.mubr.msk.f32.vlgmr.msra.gmra.mrb[12].mxu0 %vm843_vm1, %v2026_v53 }
 0xcb6   :  { %4434 = vmatprep.mubr.msk.f32.mxu0 %vm843_vm1, %v2027_v37 }
 0xcb9   :  { %4435 = vmatmul.mubr.msk.f32.gmra.mrb[14].mxu0 %vm843_vm1, %v2028_v45 }
 0xd88   :  { %v4433_v9 = vpop.f32.mrb[12].mxu0 }
 0xd89   :  { %v2225_v43 = vadd.f32 %v5108_v47, %v4433_v9  ;;  %v2219_v46 = vpop.f32.mrb[13].mxu0 }
 0xd8a   :  { %v2220_v57 = vadd.f32 %v5109_v50, %v2219_v46 }
 0xd8b   :  { %2240 = vmax.xlane.f32.xlu1 %v2225_v43 }
 0xd8c   :  { %v4436_v1 = vpop.f32.mrb[14].mxu0  ;;  %2238 = vmax.xlane.f32.xlu0 %v2220_v57 }
 0xd8d   :  { %v2229_v60 = vpop.f32.mrb[15].mxu0  ;;  %v2235_v56 = vadd.f32 %v5111_v5, %v4436_v1 }
 0xd8e   :  { %v2230_v33 = vadd.f32 %v5110_v20, %v2229_v60 }
 0xd90   :  { %2242 = vmax.xlane.f32.xlu0 %v2230_v33 }
 0xd94   :  { %2244 = vmax.xlane.f32.xlu0 %v2235_v56 }
 0xd9c   :  { %4973 = vrot.lane.b32.xlu1 %v4972_v6, %s5146_s18 }
 0xda0   :  { %4983 = vrot.lane.b32.xlu1 %v4982_v8, %s5146_s18 }
 0xda4   :  { %4988 = vrot.lane.b32.xlu1 %v4987_v10, %s5146_s18 }
 0xda8   :  { %4998 = vrot.lane.b32.xlu1 %v4997_v12, %s5146_s18 }
 0xdaa   :  { %4978 = vrot.lane.b32.xlu0 %v4977_v38, %s5146_s18 }
 0xdac   :  { %5008 = vrot.lane.b32.xlu1 %v5007_v35, %s5146_s18 }
 0xdae   :  { %4993 = vrot.lane.b32.xlu0 %v4992_v22, %s5146_s18 }
 0xdb2   :  { %5003 = vrot.lane.b32.xlu0 %v5002_v39, %s5146_s18 }
 0xe18   :  { %v2241_v55 = vpop.xlane.xlu1 %2240 }
 0xe19   :  { %v2247_v51 = vsub.f32 %v2225_v43, %v2241_v55  ;;  %v2239_v42 = vpop.xlane.xlu0 %2238 }
 0xe1a   :  { %v2246_v21 = vsub.f32 %v2220_v57, %v2239_v42 }
 0xe1b   :  { %v2252_v40 = vmul.f32 1.442695, %v2247_v51 }
 0xe1c   :  { %v2250_v48 = vmul.f32 1.442695, %v2246_v21  ;;  %v4974_v6 = vpop.permute.xlu1 %4973 }
 0xe1d   :  { %v4976_v61 = vunpack.i.h.bf16 %v4974_v6  ;;  %v4975_v2 = vunpack.i.l.bf16 %v4974_v6  ;;  %v2243_v15 = vpop.xlane.xlu0 %2242 }
 0xe1e   :  { %5068 = vpow2.f32 %v2250_v48  ;;  %v2248_v8 = vsub.f32 %v2230_v33, %v2243_v15  ;;  %v5029_v48 = vld [vmem:[%s6843_s20 + $0x18] sm:$0xff]  }
 0xe1f   :  { %5070 = vpow2.f32 %v2252_v40  ;;  %v4761_v10 = vpack.c.bf16 %v4976_v61, %v4975_v2  ;;  %v5028_v40 = vld [vmem:[%s6843_s20 + $0x10] sm:$0xff]  }
 0xe20   :  { %v2254_v3 = vmul.f32 1.442695, %v2248_v8  ;;  %v4984_v62 = vpop.permute.xlu1 %4983  ;;  %4513 = vmatprep.subr.bf16.mxu0 %v5028_v40 }
 0xe21   :  { %4762 = vmatprep.subr.bf16.mxu1 %v4761_v10  ;;  %v2245_v0 = vpop.xlane.xlu0 %2244  ;;  %v4986_v39 = vunpack.i.h.bf16 %v4984_v62  ;;  %v4985_v44 = vunpack.i.l.bf16 %v4984_v62  ;;  %4514 = vmatpush3.bf16.msra.mxu0 %v5028_v40 }
 0xe22   :  { %5072 = vpow2.f32 %v2254_v3  ;;  %v2249_v12 = vsub.f32 %v2235_v56, %v2245_v0  ;;  %4515 = vmatprep.subr.bf16.mxu0 %v5029_v48  ;;  %v3969_v3 = vld [vmem:[%s6844_s3 + $0x1] ss:$0 sm:$0xff] }
 0xe23   :  { %v4769_v31 = vpack.c.bf16 %v4986_v39, %v4985_v44 }
 0xe24   :  { %v2256_v58 = vmul.f32 1.442695, %v2249_v12  ;;  %v4989_v17 = vpop.permute.xlu1 %4988 }
 0xe25   :  { %v4979_v11 = vpop.permute.xlu0 %4978  ;;  %v4991_v25 = vunpack.i.h.bf16 %v4989_v17  ;;  %v4990_v49 = vunpack.i.l.bf16 %v4989_v17  ;;  %4516 = vmatpush3.bf16.msra.mxu0 %v5029_v48 }
 0xe26   :  { %5074 = vpow2.f32 %v2256_v58  ;;  %v4981_v38 = vunpack.i.h.bf16 %v4979_v11  ;;  %v4980_v18 = vunpack.i.l.bf16 %v4979_v11 }
 0xe27   :  { %v4773_v36 = vpack.c.bf16 %v4991_v25, %v4990_v49 }
 0xe28   :  { %v5069_v59 = vpop.eup %5068  ;;  %v4765_v35 = vpack.c.bf16 %v4981_v38, %v4980_v18  ;;  %v4999_v7 = vpop.permute.xlu1 %4998 }
 0xe29   :  { %v5071_v22 = vpop.eup %5070  ;;  %4469 = vmatprep.mubr.f32.mxu1 %v5069_v59  ;;  %v4994_v26 = vpop.permute.xlu0 %4993  ;;  %v5001_v63 = vunpack.i.h.bf16 %v4999_v7  ;;  %v5000_v27 = vunpack.i.l.bf16 %v4999_v7 }
 0xe2a   :  { %4470 = vmatmul.mubr.f32.vlgmr.msra.gmra.mrb[24].mxu1 %v5071_v22  ;;  %v4996_v52 = vunpack.i.h.bf16 %v4994_v26  ;;  %v4995_v30 = vunpack.i.l.bf16 %v4994_v26 }
 0xe2b   :  { %4764 = vmatpush3.bf16.msra.mxu1 %v4761_v10  ;;  %v4781_v28 = vpack.c.bf16 %v5001_v63, %v5000_v27 }
 0xe2c   :  { %v5073_v24 = vpop.eup %5072  ;;  %4766 = vmatprep.subr.bf16.mxu1 %v4765_v35  ;;  %v4777_v4 = vpack.c.bf16 %v4996_v52, %v4995_v30  ;;  %v5009_v19 = vpop.permute.xlu1 %5008 }
 0xe2d   :  { %4472 = vmatprep.mubr.f32.mxu1 %v5073_v24  ;;  %v5004_v32 = vpop.permute.xlu0 %5003  ;;  %v5011_v34 = vunpack.i.h.bf16 %v5009_v19  ;;  %v5010_v53 = vunpack.i.l.bf16 %v5009_v19 }
 0xe2e   :  { %v5006_v16 = vunpack.i.h.bf16 %v5004_v32  ;;  %v5005_v41 = vunpack.i.l.bf16 %v5004_v32 }
 0xe2f   :  { %4768 = vmatpush3.bf16.msra.mxu1 %v4765_v35  ;;  %v4789_v45 = vpack.c.bf16 %v5011_v34, %v5010_v53  ;;  %v5030_v53 = vld [vmem:[%s6845_s30 + $0x10] sm:$0xff]  }
 0xe30   :  { %v5075_v29 = vpop.eup %5074  ;;  %4770 = vmatprep.subr.bf16.mxu1 %v4769_v31  ;;  %v4785_v37 = vpack.c.bf16 %v5006_v16, %v5005_v41 }
 0xe31   :  { %4473 = vmatmul.mubr.f32.gmra.mrb[26].mxu1 %v5075_v29 }
 0xe33   :  { %4772 = vmatpush3.bf16.msra.mxu1 %v4769_v31 }
 0xe34   :  { %4774 = vmatprep.subr.bf16.mxu1 %v4773_v36 }
 0xe37   :  { %4776 = vmatpush3.bf16.msra.mxu1 %v4773_v36 }
 0xe38   :  { %4778 = vmatprep.subr.bf16.mxu1 %v4777_v4 }
 0xe3b   :  { %4780 = vmatpush3.bf16.msra.mxu1 %v4777_v4 }
 0xe3c   :  { %4782 = vmatprep.subr.bf16.mxu1 %v4781_v28 }
 0xe3f   :  { %4784 = vmatpush3.bf16.msra.mxu1 %v4781_v28 }
 0xe40   :  { %4786 = vmatprep.subr.bf16.mxu1 %v4785_v37 }
 0xe43   :  { %4788 = vmatpush3.bf16.msra.mxu1 %v4785_v37  ;;  %v5031_v37 = vld [vmem:[%s6845_s30 + $0x18] sm:$0xff]  }
 0xe44   :  { %4790 = vmatprep.subr.bf16.mxu1 %v4789_v45 }
 0xe47   :  { %4792 = vmatpush3.bf16.msra.mxu1 %v4789_v45  ;;  %v5032_v45 = vld [vmem:[%s6775_s13 + $0x20] sm:$0xff]  }
 0xe48   :  { %4521 = vmatprep.subr.bf16.mxu1 %v5030_v53  ;;  %4529 = vmatprep.subr.bf16.mxu0 %v5032_v45 }
 0xefd   :  { %v4471_v9 = vpop.f32.mrb[24].mxu1 }
 0xefe   :  { %v2344_v47 = vmax.f32 %v4471_v9, 1e-30  ;;  %v2324_v43 = vpop.f32.mrb[25].mxu1  ;;  %v5033_v9 = vld [vmem:[%s6775_s13 + $0x28] sm:$0xff]  }
 0xeff   :  { %v2343_v46 = vmax.f32 %v2324_v43, 1e-30 }
 0xf00   :  { %5076 = vrcp.f32 %v2344_v47 }
 0xf01   :  { %5078 = vrcp.f32 %v2343_v46 }
 0xf04   :  { %v4474_v50 = vpop.f32.mrb[26].mxu1 }
 0xf05   :  { %v2346_v57 = vmax.f32 %v4474_v50, 1e-30  ;;  %v2334_v1 = vpop.f32.mrb[27].mxu1 }
 0xf06   :  { %v2345_v60 = vmax.f32 %v2334_v1, 1e-30 }
 0xf07   :  { %5080 = vrcp.f32 %v2346_v57 }
 0xf08   :  { %5082 = vrcp.f32 %v2345_v60 }
 0xf0a   :  { %v5077_v20 = vpop.eup %5076 }
 0xf0b   :  { %v5079_v33 = vpop.eup %5078  ;;  %v2352_v56 = vmul.f32 %v5077_v20, %v5071_v22 }
 0xf0c   :  { %v2351_v5 = vmul.f32 %v5079_v33, %v5069_v59 }
 0xf0e   :  { %4507 = vmatprep.mubr.f32.mxu1 %v2351_v5 }
 0xf0f   :  { %4508 = vmatmul.mubr.f32.vlgmr.msra.gmra.mrb[28].mxu1 %v2352_v56 }
 0xf10   :  { %4522 = vmatpush3.bf16.msra.mxu1 %v5030_v53 }
 0xf11   :  { %v5081_v55 = vpop.eup %5080  ;;  %4523 = vmatprep.subr.bf16.mxu1 %v5031_v37 }
 0xf12   :  { %v5083_v51 = vpop.eup %5082  ;;  %v2354_v21 = vmul.f32 %v5081_v55, %v5075_v29 }
 0xf13   :  { %v2353_v42 = vmul.f32 %v5083_v51, %v5073_v24 }
 0xf14   :  { %4524 = vmatpush3.bf16.msra.mxu1 %v5031_v37 }
 0xf15   :  { %4510 = vmatprep.mubr.f32.mxu1 %v2353_v42  ;;  %v3976_v42 = vld [vmem:[%s6846_s11 + $0x1] ss:$0 sm:$0xff] }
 0xf16   :  { %4511 = vmatmul.mubr.f32.gmra.mrb[30].mxu1 %v2354_v21 }
 0xfe2   :  { %v4509_v6 = vpop.f32.mrb[28].mxu1 }
 0xfe3   :  { %v2485_v61 = vpop.f32.mrb[29].mxu1 }
 0xfe4   :  { %v2504_v2 = vpack.c.bf16 %v4509_v6, %v2485_v61 }
 0xfe6   :  { %4517 = vmatprep.mubr.msk.bf16.mxu0 %vm843_vm1, %v2504_v2  ;;  %v3977_v2 = vld [vmem:[%s6847_s4 + $0x1] ss:$0 sm:$0xff] }
 0xfe9   :  { %v4512_v15 = vpop.f32.mrb[30].mxu1 }
 0xfea   :  { %v2495_v8 = vpop.f32.mrb[31].mxu1 }
 0xfeb   :  { %v2505_v10 = vpack.c.bf16 %v4512_v15, %v2495_v8 }
 0xfed   :  { %4518 = vmatmul.mubr.msk.bf16.vlgmr.msra.gmra.mrb[16].mxu0 %vm843_vm1, %v2505_v10 }
 0xfee   :  { %4530 = vmatpush3.bf16.msra.mxu0 %v5032_v45 }
 0xfef   :  { %4531 = vmatprep.subr.bf16.mxu0 %v5033_v9 }
 0xff2   :  { %4532 = vmatpush3.bf16.msra.mxu0 %v5033_v9 }
0x10c0   :  { %v4519_v0 = vpop.f32.mrb[16].mxu0 }
0x10c1   :  { %v2571_v12 = vpop.f32.mrb[17].mxu0  ;;  %v2580_v58 = vadd.f32 %v4519_v0, %v3969_v3 }
0x10c2   :  { %v2572_v62 = vadd.f32 %v3969_v3, %v2571_v12  ;;  %v4520_v11 = vpop.f32.mrb[18].mxu0 }
0x10c3   :  { %v2574_v38 = vpop.f32.mrb[19].mxu0  ;;  %v2583_v35 = vadd.f32 %v4520_v11, %v3969_v3  ;;  %v2588_v44 = vadd.f32 %v2580_v58, %v6246_v13 }
0x10c4   :  { %v2575_v18 = vadd.f32 %v3969_v3, %v2574_v38  ;;  %v2586_v59 = vadd.f32 %v2572_v62, %v6239_v54 }
0x10c5   :  { %v2600_v24 = vsel %vm843_vm1, %v2588_v44, 0.0  ;;  %v2589_v31 = vadd.f32 %v2583_v35, %v6248_v23  ;;  %v5034_v35 = vld [vmem:[%s6775_s13 + $0x30] sm:$0xff]  }
0x10c6   :  { %v2594_v22 = vsel %vm843_vm1, %v2586_v59, 0.0  ;;  %v2587_v39 = vadd.f32 %v2575_v18, %v6241_v14  ;;  %4533 = vmatprep.subr.bf16.mxu0 %v5034_v35 }
0x10c7   :  { %2595 = vadd.xlane.f32.xlu0 %v2594_v22  ;;  %v2603_v25 = vsel %vm843_vm1, %v2589_v31, 0.0  ;;  %v5035_v22 = vld [vmem:[%s6775_s13 + $0x38] sm:$0xff]   ;;  %4534 = vmatpush3.bf16.msra.mxu0 %v5034_v35 }
0x10c8   :  { %v2597_v17 = vsel %vm843_vm1, %v2587_v39, 0.0  ;;  %4535 = vmatprep.subr.bf16.mxu0 %v5035_v22 }
0x10c9   :  { %2598 = vadd.xlane.f32.xlu1 %v2597_v17 }
0x10cb   :  { %2601 = vadd.xlane.f32.xlu0 %v2600_v24  ;;  %4536 = vmatpush3.bf16.msra.mxu0 %v5035_v22 }
0x10cf   :  { %2604 = vadd.xlane.f32.xlu0 %v2603_v25 }
0x1154   :  { %v2596_v54 = vpop.xlane.xlu0 %2595 }
0x1155   :  { %v2606_v49 = vmul.f32 0.03125, %v2596_v54 }
0x1156   :  { %v2599_v26 = vpop.xlane.xlu1 %2598 }
0x1157   :  { %v2610_v29 = vsub.f32 %v2586_v59, %v2606_v49  ;;  %v2607_v36 = vmul.f32 0.03125, %v2599_v26 }
0x1158   :  { %v2602_v14 = vpop.xlane.xlu0 %2601 }
0x1159   :  { %v2611_v52 = vsub.f32 %v2587_v39, %v2607_v36  ;;  %v2608_v13 = vmul.f32 0.03125, %v2602_v14  ;;  %v2614_v30 = vmul.f32 %v2610_v29, %v2610_v29  ;;  %v3983_v39 = vld [vmem:[%s6774_s12 + $0x1] ss:$0 sm:$0xff] }
0x115b   :  { %v2612_v7 = vsub.f32 %v2588_v44, %v2608_v13  ;;  %v2618_v63 = vsel %vm843_vm1, %v2614_v30, 0.0  ;;  %v2615_v27 = vmul.f32 %v2611_v52, %v2611_v52 }
0x115c   :  { %2619 = vadd.xlane.f32.xlu1 %v2618_v63  ;;  %v2605_v4 = vpop.xlane.xlu0 %2604 }
0x115d   :  { %v2609_v23 = vmul.f32 0.03125, %v2605_v4  ;;  %v2621_v32 = vsel %vm843_vm1, %v2615_v27, 0.0  ;;  %v2616_v28 = vmul.f32 %v2612_v7, %v2612_v7 }
0x115e   :  { %2622 = vadd.xlane.f32.xlu0 %v2621_v32 }
0x115f   :  { %v2613_v16 = vsub.f32 %v2589_v31, %v2609_v23  ;;  %v2624_v41 = vsel %vm843_vm1, %v2616_v28, 0.0 }
0x1160   :  { %2625 = vadd.xlane.f32.xlu1 %v2624_v41 }
0x1161   :  { %v2617_v19 = vmul.f32 %v2613_v16, %v2613_v16 }
0x1163   :  { %v2627_v34 = vsel %vm843_vm1, %v2617_v19, 0.0 }
0x1164   :  { %2628 = vadd.xlane.f32.xlu0 %v2627_v34 }
0x11e9   :  { %v2620_v47 = vpop.xlane.xlu1 %2619 }
0x11ea   :  { %v2630_v43 = vmul.f32 0.03125, %v2620_v47 }
0x11eb   :  { %v2623_v46 = vpop.xlane.xlu0 %2622 }
0x11ec   :  { %v2634_v50 = vadd.f32 1e-05, %v2630_v43  ;;  %v2631_v57 = vmul.f32 0.03125, %v2623_v46 }
0x11ed   :  { %v2626_v1 = vpop.xlane.xlu1 %2625 }
0x11ee   :  { %5084 = vrsqrt.f32 %v2634_v50  ;;  %v2635_v60 = vadd.f32 1e-05, %v2631_v57  ;;  %v2632_v20 = vmul.f32 0.03125, %v2626_v1 }
0x11f0   :  { %5086 = vrsqrt.f32 %v2635_v60  ;;  %v2636_v33 = vadd.f32 1e-05, %v2632_v20 }
0x11f1   :  { %v2629_v5 = vpop.xlane.xlu0 %2628 }
0x11f2   :  { %5088 = vrsqrt.f32 %v2636_v33  ;;  %v2633_v56 = vmul.f32 0.03125, %v2629_v5 }
0x11f4   :  { %v2637_v55 = vadd.f32 1e-05, %v2633_v56 }
0x11f6   :  { %5090 = vrsqrt.f32 %v2637_v55 }
0x11f8   :  { %v5085_v51 = vpop.eup %5084 }
0x11f9   :  { %v2642_v21 = vmul.f32 %v5085_v51, %v2610_v29 }
0x11fa   :  { %v5087_v40 = vpop.eup %5086 }
0x11fb   :  { %v2643_v48 = vmul.f32 %v5087_v40, %v2611_v52  ;;  %v2652_v6 = vmul.f32 %v3976_v42, %v2642_v21 }
0x11fc   :  { %v5089_v61 = vpop.eup %5088 }
0x11fd   :  { %v2644_v15 = vmul.f32 %v5089_v61, %v2612_v7  ;;  %v2653_v8 = vmul.f32 %v3976_v42, %v2643_v48  ;;  %v2662_v10 = vadd.f32 %v3977_v2, %v2652_v6  ;;  %v3997_v7 = vld [vmem:[%s6776_s14 + $0x1] ss:$0 sm:$0xff] }
0x11ff   :  { %v2663_v3 = vadd.f32 %v3977_v2, %v2653_v8  ;;  %v2654_v12 = vmul.f32 %v3976_v42, %v2644_v15 }
0x1200   :  { %v5091_v0 = vpop.eup %5090 }
0x1201   :  { %v2645_v58 = vmul.f32 %v5091_v0, %v2613_v16  ;;  %v2666_v62 = vpack.c.bf16 %v2663_v3, %v2662_v10  ;;  %v2664_v38 = vadd.f32 %v3977_v2, %v2654_v12 }
0x1203   :  { %v2655_v11 = vmul.f32 %v3976_v42, %v2645_v58  ;;  %4525 = vmatprep.mubr.msk.bf16.mxu1 %vm843_vm1, %v2666_v62 }
0x1205   :  { %v2665_v18 = vadd.f32 %v3977_v2, %v2655_v11 }
0x1207   :  { %v2667_v59 = vpack.c.bf16 %v2665_v18, %v2664_v38 }
0x1209   :  { %4526 = vmatmul.mubr.msk.bf16.vlgmr.msra.gmra.mrb[32].mxu1 %vm843_vm1, %v2667_v59 }
0x12dc   :  { %v4527_v44 = vpop.f32.mrb[32].mxu1 }
0x12dd   :  { %v2742_v17 = vadd.f32 %v4527_v44, %v3983_v39  ;;  %v2733_v24 = vpop.f32.mrb[33].mxu1 }
0x12de   :  { %v2734_v31 = vadd.f32 %v3983_v39, %v2733_v24  ;;  %v4528_v25 = vpop.f32.mrb[34].mxu1 }
0x12df   :  { %v2745_v54 = vadd.f32 %v4528_v25, %v3983_v39  ;;  %v2736_v49 = vpop.f32.mrb[35].mxu1  ;;  %v2750_v29 = vmax.f32 %v2742_v17, 0.0  ;;  %v4006_v17 = vld [vmem:[%s6848_s0 + $0x1] ss:$0 sm:$0xff] }
0x12e0   :  { %v2737_v26 = vadd.f32 %v3983_v39, %v2736_v49  ;;  %v2748_v14 = vmax.f32 %v2734_v31, 0.0 }
0x12e1   :  { %v2751_v36 = vmax.f32 %v2745_v54, 0.0 }
0x12e2   :  { %v2749_v52 = vmax.f32 %v2737_v26, 0.0  ;;  %v4007_v26 = vld [vmem:[%s6849_s19 + $0x1] ss:$0 sm:$0xff] }
0x12e3   :  { %v2753_v13 = vpack.c.bf16 %v2751_v36, %v2750_v29 }
0x12e4   :  { %v2752_v30 = vpack.c.bf16 %v2749_v52, %v2748_v14 }
0x12e6   :  { %4537 = vmatprep.mubr.msk.bf16.mxu0 %vm762_vm0, %v2752_v30 }
0x12e7   :  { %4538 = vmatmul.mubr.msk.bf16.vlgmr.msra.gmra.mrb[20].mxu0 %vm762_vm0, %v2753_v13 }
0x13ba   :  { %v4539_v63 = vpop.f32.mrb[20].mxu0 }
0x13bb   :  { %v2835_v27 = vpop.f32.mrb[21].mxu0  ;;  %v2844_v4 = vadd.f32 %v4539_v63, %v3997_v7 }
0x13bc   :  { %v2836_v23 = vadd.f32 %v3997_v7, %v2835_v27  ;;  %v4540_v32 = vpop.f32.mrb[22].mxu0 }
0x13bd   :  { %v2838_v28 = vpop.f32.mrb[23].mxu0  ;;  %v2847_v16 = vadd.f32 %v4540_v32, %v3997_v7  ;;  %v2852_v37 = vadd.f32 %v2844_v4, %v2664_v38 }
0x13be   :  { %v2839_v41 = vadd.f32 %v3997_v7, %v2838_v28  ;;  %v2850_v19 = vadd.f32 %v2836_v23, %v2662_v10  ;;  %v2930_v10 = vld [vmem:[%s6785_s23] sm:$0xff] }
0x13bf   :  { %v2853_v45 = vadd.f32 %v2847_v16, %v2665_v18  ;;  %v2864_v47 = vsel %vm843_vm1, %v2852_v37, 0.0  ;;  %4549 = vmatprep.mubr.msk.f32.mxu1 %vm843_vm1, %v2930_v10 }
0x13c0   :  { %v2851_v34 = vadd.f32 %v2839_v41, %v2663_v3  ;;  %v2858_v53 = vsel %vm843_vm1, %v2850_v19, 0.0 }
0x13c1   :  { %2859 = vadd.xlane.f32.xlu1 %v2858_v53  ;;  %v2867_v43 = vsel %vm843_vm1, %v2853_v45, 0.0 }
0x13c2   :  { %v2861_v9 = vsel %vm843_vm1, %v2851_v34, 0.0 }
0x13c3   :  { %2862 = vadd.xlane.f32.xlu0 %v2861_v9  ;;  %v2933_v9 = vld [vmem:[%s6785_s23 + $0x18] sm:$0xff] }
0x13c5   :  { %2865 = vadd.xlane.f32.xlu1 %v2864_v47 }
0x13c7   :  { %2868 = vadd.xlane.f32.xlu0 %v2867_v43 }
0x144e   :  { %v2860_v46 = vpop.xlane.xlu1 %2859 }
0x144f   :  { %v2870_v50 = vmul.f32 0.03125, %v2860_v46 }
0x1450   :  { %v2863_v57 = vpop.xlane.xlu0 %2862 }
0x1451   :  { %v2874_v1 = vsub.f32 %v2850_v19, %v2870_v50  ;;  %v2871_v60 = vmul.f32 0.03125, %v2863_v57 }
0x1452   :  { %v2866_v20 = vpop.xlane.xlu1 %2865 }
0x1453   :  { %v2875_v33 = vsub.f32 %v2851_v34, %v2871_v60  ;;  %v2872_v5 = vmul.f32 0.03125, %v2866_v20  ;;  %v2878_v56 = vmul.f32 %v2874_v1, %v2874_v1  ;;  %v2931_v34 = vld [vmem:[%s6785_s23 + $0x8] sm:$0xff] }
0x1454   :  { %v2869_v55 = vpop.xlane.xlu0 %2868 }
0x1455   :  { %v2876_v51 = vsub.f32 %v2852_v37, %v2872_v5  ;;  %v2873_v42 = vmul.f32 0.03125, %v2869_v55  ;;  %v2882_v21 = vsel %vm843_vm1, %v2878_v56, 0.0  ;;  %v2879_v40 = vmul.f32 %v2875_v33, %v2875_v33  ;;  %v2932_v37 = vld [vmem:[%s6785_s23 + $0x10] sm:$0xff] }
0x1456   :  { %2883 = vadd.xlane.f32.xlu1 %v2882_v21 }
0x1457   :  { %v2877_v48 = vsub.f32 %v2853_v45, %v2873_v42  ;;  %v2885_v6 = vsel %vm843_vm1, %v2879_v40, 0.0  ;;  %v2880_v61 = vmul.f32 %v2876_v51, %v2876_v51 }
0x1458   :  { %2886 = vadd.xlane.f32.xlu0 %v2885_v6  ;;  %v3185_v6 = vld [vmem:[%s6786_s24 + $0x28] sm:$0xff] }
0x1459   :  { %v2888_v2 = vsel %vm843_vm1, %v2880_v61, 0.0  ;;  %v2881_v15 = vmul.f32 %v2877_v48, %v2877_v48  ;;  %v3183_v61 = vld [vmem:[%s6786_s24 + $0x18] sm:$0xff] }
0x145a   :  { %2889 = vadd.xlane.f32.xlu1 %v2888_v2 }
0x145b   :  { %v2891_v8 = vsel %vm843_vm1, %v2881_v15, 0.0  ;;  %v3187_v15 = vld [vmem:[%s6786_s24 + $0x38] sm:$0xff] }
0x145c   :  { %2892 = vadd.xlane.f32.xlu0 %v2891_v8  ;;  %v3180_v8 = vld [vmem:[%s6786_s24] sm:$0xff] }
0x14e3   :  { %v2884_v3 = vpop.xlane.xlu1 %2883 }
0x14e4   :  { %v2894_v0 = vmul.f32 0.03125, %v2884_v3  ;;  %v5147_v3 = vmov 0.0  }
0x14e5   :  { %v2887_v12 = vpop.xlane.xlu0 %2886  ;;  %3272 = vmatprep.mubr.f32.mxu0 %v5147_v3 }
0x14e6   :  { %v2898_v58 = vadd.f32 1e-05, %v2894_v0  ;;  %v2895_v62 = vmul.f32 0.03125, %v2887_v12  ;;  %v4817_v0 = vpack.c.bf16 %v3187_v15, %v3183_v61 }
0x14e7   :  { %v2890_v11 = vpop.xlane.xlu1 %2889 }
0x14e8   :  { %5092 = vrsqrt.f32 %v2898_v58  ;;  %v2899_v38 = vadd.f32 1e-05, %v2895_v62  ;;  %v2896_v18 = vmul.f32 0.03125, %v2890_v11  ;;  %v3182_v58 = vld [vmem:[%s6786_s24 + $0x10] sm:$0xff]  ;;  %v3189_v11 = vld [vmem:[%s6786_s24 + $0x48] sm:$0xff] }
0x14e9   :  { %v2893_v59 = vpop.xlane.xlu0 %2892  ;;  %v3186_v62 = vld [vmem:[%s6786_s24 + $0x30] sm:$0xff] }
0x14ea   :  { %5094 = vrsqrt.f32 %v2899_v38  ;;  %v2900_v35 = vadd.f32 1e-05, %v2896_v18  ;;  %v2897_v22 = vmul.f32 0.03125, %v2893_v59  ;;  %v4819_v38 = vpack.c.bf16 %v3186_v62, %v3182_v58  ;;  %v3193_v18 = vld [vmem:[%s6786_s24 + $0x68] sm:$0xff]  ;;  %v3191_v59 = vld [vmem:[%s6786_s24 + $0x58] sm:$0xff] }
0x14ec   :  { %5096 = vrsqrt.f32 %v2900_v35  ;;  %v2901_v39 = vadd.f32 1e-05, %v2897_v22  ;;  %v3195_v35 = vld [vmem:[%s6786_s24 + $0x78] sm:$0xff]  ;;  %v4813_v22 = vpack.c.bf16 %v3193_v18, %v3189_v11  ;;  %v3388_v11 = vld [vmem:[%s6787_s25 + $0x8] sm:$0xff] }
0x14ed   :  { %v3390_v18 = vld [vmem:[%s6787_s25 + $0x18] sm:$0xff] }
0x14ee   :  { %5098 = vrsqrt.f32 %v2901_v39  ;;  %v4821_v39 = vpack.c.bf16 %v3195_v35, %v3191_v59  ;;  %v3392_v59 = vld [vmem:[%s6787_s25 + $0x28] sm:$0xff]  ;;  %v3394_v35 = vld [vmem:[%s6787_s25 + $0x38] sm:$0xff] }
0x14f2   :  { %v5093_v44 = vpop.eup %5092 }
0x14f3   :  { %v2906_v24 = vmul.f32 %v5093_v44, %v2874_v1  ;;  %v3188_v44 = vld [vmem:[%s6786_s24 + $0x40] sm:$0xff] }
0x14f4   :  { %v5095_v31 = vpop.eup %5094 }
0x14f5   :  { %v2907_v25 = vmul.f32 %v5095_v31, %v2875_v33  ;;  %v2916_v54 = vmul.f32 %v4006_v17, %v2906_v24  ;;  %v3190_v24 = vld [vmem:[%s6786_s24 + $0x50] sm:$0xff] }
0x14f6   :  { %v5097_v49 = vpop.eup %5096 }
0x14f7   :  { %v2917_v29 = vmul.f32 %v4006_v17, %v2907_v25  ;;  %v2908_v36 = vmul.f32 %v5097_v49, %v2876_v51  ;;  %v6532_v52 = vadd.f32 %v4007_v26, %v2916_v54  ;;  %v3194_v25 = vld [vmem:[%s6786_s24 + $0x70] sm:$0xff] }
0x14f8   :  { %v5099_v14 = vpop.eup %5098  ;;  %v4823_v54 = vpack.c.bf16 %v3194_v25, %v3190_v24 }
0x14f9   :  { %v6534_v13 = vadd.f32 %v4007_v26, %v2917_v29  ;;  %v2909_v30 = vmul.f32 %v5099_v14, %v2877_v48  ;;  %v2918_v7 = vmul.f32 %v4006_v17, %v2908_v36  ;;  %v3031_v16 = vmul.f32 %v6532_v52, %v6532_v52  ;;  %v3181_v48 = vld [vmem:[%s6786_s24 + $0x8] sm:$0xff] }
0x14fa   :  { %v4809_v2 = vpack.c.bf16 %v3185_v6, %v3181_v48 }
0x14fb   :  { %v4793_v63 = vpack.c.bf16 %v6534_v13, %v6532_v52  ;;  %v2919_v27 = vmul.f32 %v4006_v17, %v2909_v30  ;;  %v6538_v4 = vadd.f32 %v4007_v26, %v2918_v7  ;;  %v3032_v32 = vmul.f32 %v6534_v13, %v6534_v13  ;;  %v3192_v17 = vld [vmem:[%s6786_s24 + $0x60] sm:$0xff] }
0x14fc   :  { %4810 = vmatprep.subr.bf16.mxu0 %v4809_v2  ;;  %v4815_v31 = vpack.c.bf16 %v3192_v17, %v3188_v44 }
0x14fd   :  { %4794 = vmatprep.subr.bf16.mxu1 %v4793_v63  ;;  %v6540_v23 = vadd.f32 %v4007_v26, %v2919_v27  ;;  %v4801_v41 = vpack.c.bf16 %v3032_v32, %v3031_v16  ;;  %v3033_v53 = vmul.f32 %v6538_v4, %v6538_v4 }
0x14fe   :  { %4796 = vmatpush3.bf16.msra.mxu1 %v4793_v63 }
0x14ff   :  { %v4797_v28 = vpack.c.bf16 %v6540_v23, %v6538_v4  ;;  %v3034_v19 = vmul.f32 %v6540_v23, %v6540_v23 }
0x1501   :  { %4798 = vmatprep.subr.bf16.mxu1 %v4797_v28  ;;  %v4805_v45 = vpack.c.bf16 %v3034_v19, %v3033_v53 }
0x1502   :  { %4800 = vmatpush3.bf16.msra.mxu1 %v4797_v28 }
0x1503   :  { %4802 = vmatprep.subr.bf16.mxu1 %v4801_v41 }
0x1505   :  { %4550 = vmatmul.mubr.msk.f32.vlgmr.msra.gmra.mrb[36].mxu1 %vm843_vm1, %v2931_v34 }
0x1506   :  { %4804 = vmatpush3.bf16.msra.mxu1 %v4801_v41  ;;  %4552 = vmatprep.mubr.msk.f32.mxu1 %vm843_vm1, %v2932_v37 }
0x1507   :  { %4806 = vmatprep.subr.bf16.mxu1 %v4805_v45 }
0x1509   :  { %4553 = vmatmul.mubr.msk.f32.gmra.mrb[38].mxu1 %vm843_vm1, %v2933_v9 }
0x150a   :  { %4808 = vmatpush3.bf16.msra.mxu1 %v4805_v45  ;;  %4563 = vmatprep.mubr.msk.f32.mxu1 %vm843_vm1, %v2930_v10  ;;  %v3184_v10 = vld [vmem:[%s6786_s24 + $0x20] sm:$0xff] }
0x150b   :  { %v4811_v12 = vpack.c.bf16 %v3184_v10, %v3180_v8  ;;  %4818 = vmatprep.subr.bf16.mxu1 %v4817_v0  ;;  %v3387_v0 = vld [vmem:[%s6787_s25] sm:$0xff] }
0x150d   :  { %4564 = vmatmul.mubr.msk.f32.vlgmr.msra.gmra.mrb[40].mxu1 %vm843_vm1, %v2931_v34  ;;  %4812 = vmatpush1.bf16.msra.mxu0 %v4811_v12  ;;  %v3389_v12 = vld [vmem:[%s6787_s25 + $0x10] sm:$0xff] }
0x150e   :  { %4566 = vmatprep.mubr.msk.f32.mxu1 %vm843_vm1, %v2932_v37  ;;  %4820 = vmatpush1.bf16.msra.mxu1 %v4819_v38  ;;  %v3393_v38 = vld [vmem:[%s6787_s25 + $0x30] sm:$0xff] }
0x150f   :  { %4814 = vmatprep.subr.bf16.mxu0 %v4813_v22  ;;  %4822 = vmatprep.subr.bf16.mxu1 %v4821_v39 }
0x1511   :  { %4567 = vmatmul.mubr.msk.f32.gmra.mrb[42].mxu1 %vm843_vm1, %v2933_v9  ;;  %4816 = vmatpush1.bf16.msra.mxu0 %v4815_v31 }
0x1512   :  { %3361 = vmatprep.mubr.f32.mxu1 %v5147_v3  ;;  %4824 = vmatpush1.bf16.msra.mxu1 %v4823_v54 }
0x15d8   :  { %v4551_v47 = vpop.f32.mrb[36].mxu1 }
0x15d9   :  { %v3012_v43 = vpop.f32.mrb[37].mxu1  ;;  %v3123_v1 = vsel %vm843_vm1, %v4551_v47, 0.0 }
0x15da   :  { %v3120_v46 = vsel %vm843_vm1, %v3012_v43, 0.0 }
0x15db   :  { %3121 = vadd.xlane.f32.xlu1 %v3120_v46 }
0x15dc   :  { %v4554_v50 = vpop.f32.mrb[38].mxu1 }
0x15dd   :  { %v3022_v57 = vpop.f32.mrb[39].mxu1  ;;  %v3129_v51 = vsel %vm843_vm1, %v4554_v50, 0.0 }
0x15de   :  { %v3126_v33 = vsel %vm843_vm1, %v3022_v57, 0.0 }
0x15df   :  { %3124 = vadd.xlane.f32.xlu1 %v3123_v1 }
0x15e0   :  { %v4565_v60 = vpop.f32.mrb[40].mxu1 }
0x15e1   :  { %v3101_v20 = vpop.f32.mrb[41].mxu1  ;;  %v3139_v42 = vsel %vm843_vm1, %v4565_v60, 0.0 }
0x15e2   :  { %v3136_v5 = vsel %vm843_vm1, %v3101_v20, 0.0 }
0x15e3   :  { %3127 = vadd.xlane.f32.xlu1 %v3126_v33  ;;  %3137 = vadd.xlane.f32.xlu0 %v3136_v5 }
0x15e4   :  { %v4568_v56 = vpop.f32.mrb[42].mxu1 }
0x15e5   :  { %v3111_v55 = vpop.f32.mrb[43].mxu1  ;;  %v3145_v40 = vsel %vm843_vm1, %v4568_v56, 0.0 }
0x15e6   :  { %v3142_v21 = vsel %vm843_vm1, %v3111_v55, 0.0 }
0x15e7   :  { %3130 = vadd.xlane.f32.xlu1 %v3129_v51  ;;  %3140 = vadd.xlane.f32.xlu0 %v3139_v42 }
0x15eb   :  { %3143 = vadd.xlane.f32.xlu0 %v3142_v21 }
0x15ef   :  { %3146 = vadd.xlane.f32.xlu0 %v3145_v40 }
0x1668   :  { %v3122_v49 = vpop.xlane.xlu1 %3121 }
0x1669   :  { %v3132_v29 = vmul.f32 0.001953125, %v3122_v49 }
0x166b   :  { %v3152_v30 = vmul.f32 %v3132_v29, %v3132_v29  ;;  %v3172_v51 = vsub.f32 %v6532_v52, %v3132_v29 }
0x166c   :  { %v3125_v26 = vpop.xlane.xlu1 %3124 }
0x166d   :  { %v3133_v7 = vmul.f32 0.001953125, %v3125_v26 }
0x166f   :  { %v3153_v16 = vmul.f32 %v3133_v7, %v3133_v7  ;;  %v3173_v48 = vsub.f32 %v6534_v13, %v3133_v7 }
0x1670   :  { %v3128_v36 = vpop.xlane.xlu1 %3127  ;;  %v3138_v14 = vpop.xlane.xlu0 %3137 }
0x1671   :  { %v3148_v63 = vmul.f32 0.001953125, %v3138_v14  ;;  %v3134_v32 = vmul.f32 0.001953125, %v3128_v36 }
0x1673   :  { %v3156_v27 = vsub.f32 %v3148_v63, %v3152_v30  ;;  %v3154_v45 = vmul.f32 %v3134_v32, %v3134_v32  ;;  %v3174_v2 = vsub.f32 %v6538_v4, %v3134_v32 }
0x1674   :  { %v3141_v28 = vpop.xlane.xlu0 %3140  ;;  %v3131_v34 = vpop.xlane.xlu1 %3130 }
0x1675   :  { %v3160_v41 = vmax.f32 %v3156_v27, 0.0  ;;  %v3149_v19 = vmul.f32 0.001953125, %v3141_v28  ;;  %v3135_v47 = vmul.f32 0.001953125, %v3131_v34  ;;  %v3395_v28 = vld [vmem:[%s6787_s25 + $0x40] sm:$0xff]  ;;  %v3396_v34 = vld [vmem:[%s6787_s25 + $0x48] sm:$0xff] }
0x1677   :  { %v3164_v53 = vadd.f32 1e-05, %v3160_v41  ;;  %v3157_v37 = vsub.f32 %v3149_v19, %v3153_v16  ;;  %v3155_v60 = vmul.f32 %v3135_v47, %v3135_v47  ;;  %v3175_v15 = vsub.f32 %v6540_v23, %v3135_v47  ;;  %v3397_v16 = vld [vmem:[%s6787_s25 + $0x50] sm:$0xff]  ;;  %v3402_v47 = vld [vmem:[%s6787_s25 + $0x78] sm:$0xff] }
0x1678   :  { %v3144_v9 = vpop.xlane.xlu0 %3143 }
0x1679   :  { %5100 = vrsqrt.f32 %v3164_v53  ;;  %v3161_v43 = vmax.f32 %v3157_v37, 0.0  ;;  %v3150_v46 = vmul.f32 0.001953125, %v3144_v9  ;;  %v3399_v53 = vld [vmem:[%s6787_s25 + $0x60] sm:$0xff]  ;;  %v3401_v37 = vld [vmem:[%s6787_s25 + $0x70] sm:$0xff]  ;;  %v3400_v9 = vld [vmem:[%s6787_s25 + $0x68] sm:$0xff] }
0x167b   :  { %v3165_v50 = vadd.f32 1e-05, %v3161_v43  ;;  %v3158_v57 = vsub.f32 %v3150_v46, %v3154_v45  ;;  %v3398_v45 = vld [vmem:[%s6787_s25 + $0x58] sm:$0xff] }
0x167c   :  { %v3147_v1 = vpop.xlane.xlu0 %3146 }
0x167d   :  { %5102 = vrsqrt.f32 %v3165_v50  ;;  %v3162_v20 = vmax.f32 %v3158_v57, 0.0  ;;  %v3151_v33 = vmul.f32 0.001953125, %v3147_v1 }
0x167f   :  { %v3166_v5 = vadd.f32 1e-05, %v3162_v20  ;;  %v3159_v56 = vsub.f32 %v3151_v33, %v3155_v60 }
0x1681   :  { %5104 = vrsqrt.f32 %v3166_v5  ;;  %v3163_v55 = vmax.f32 %v3159_v56, 0.0 }
0x1683   :  { %v5101_v42 = vpop.eup %5100  ;;  %v3167_v21 = vadd.f32 1e-05, %v3163_v55 }
0x1684   :  { %v3176_v40 = vmul.f32 %v5101_v42, %v3172_v51 }
0x1685   :  { %5106 = vrsqrt.f32 %v3167_v21 }
0x1686   :  { %4016 = vmatmul.mubr.msk.f32.vlgmr.msra.gmra.mrb[24].mxu0 %vm843_vm1, %v3176_v40  ;;  %4020 = vmatmul.mubr.msk.f32.vlgmr.msra.gmra.mrb[44].mxu1 %vm843_vm1, %v3176_v40 }
0x1687   :  { %v5103_v6 = vpop.eup %5102  ;;  %3278 = vmatprep.mubr.f32.mxu0 %v5147_v3  ;;  %3367 = vmatprep.mubr.f32.mxu1 %v5147_v3 }
0x1688   :  { %v3177_v61 = vmul.f32 %v5103_v6, %v3173_v48  ;;  %v3386_v6 = vld [vmem:[%s6788_s26] sm:$0x3] }
0x168a   :  { %4017 = vmatmul.mubr.msk.f32.gmra.mrb[26].mxu0 %vm843_vm1, %v3177_v61  ;;  %4021 = vmatmul.mubr.msk.f32.gmra.mrb[46].mxu1 %vm843_vm1, %v3177_v61  ;;  %v3421_v61 = vlaneseq }
0x168b   :  { %v5105_v52 = vpop.eup %5104  ;;  %3284 = vmatprep.mubr.f32.mxu0 %v5147_v3  ;;  %3373 = vmatprep.mubr.f32.mxu1 %v5147_v3 }
0x168c   :  { %v3178_v13 = vmul.f32 %v5105_v52, %v3174_v2  ;;  %v6699_v2 = vshrl.u32 %v3421_v61, 7 }
0x168e   :  { %4018 = vmatmul.mubr.msk.f32.gmra.mrb[28].mxu0 %vm843_vm1, %v3178_v13  ;;  %4022 = vmatmul.mubr.msk.f32.gmra.mrb[48].mxu1 %vm843_vm1, %v3178_v13  ;;  %v3423_v52 = vsub.s32 0, %v6699_v2  ;;  %v3431_v13 = vsub.s32 2, %v6699_v2 }
0x168f   :  { %v5107_v8 = vpop.eup %5106  ;;  %3290 = vmatprep.mubr.f32.mxu0 %v5147_v3  ;;  %3379 = vmatprep.mubr.f32.mxu1 %v5147_v3 }
0x1690   :  { %v3179_v4 = vmul.f32 %v5107_v8, %v3175_v15  ;;  %v3419_v15 = vld [vmem:[%s6777_s15] sm:$0xf]  ;;  %v3427_v8 = vsub.s32 1, %v6699_v2 }
0x1692   :  { %4019 = vmatmul.mubr.msk.f32.gmra.mrb[30].mxu0 %vm843_vm1, %v3179_v4  ;;  %4023 = vmatmul.mubr.msk.f32.gmra.mrb[50].mxu1 %vm843_vm1, %v3179_v4  ;;  %v3435_v4 = vsub.s32 3, %v6699_v2 }
0x1693   :  { %3508 = vmatprep.mubr.f32.mxu0 %v5147_v3  ;;  %3579 = vmatprep.mubr.f32.mxu1 %v5147_v3  ;;  %v3391_v3 = vld [vmem:[%s6787_s25 + $0x20] sm:$0xff] }
0x1759   :  { %v3274_v10 = vpop.f32.mrb[24].mxu0  ;;  %v3363_v23 = vpop.f32.mrb[44].mxu1 }
0x175a   :  { %v3276_v58 = vpop.f32.mrb[25].mxu0  ;;  %v3365_v62 = vpop.f32.mrb[45].mxu1  ;;  %v3403_v44 = vmul.f32 %v3387_v0, %v3274_v10  ;;  %v3405_v17 = vmul.f32 %v3389_v12, %v3363_v23  ;;  %v3424_v10 = vrot.slane %v3419_v15, %v3423_v52  ;;  %v3432_v23 = vrot.slane %v3419_v15, %v3431_v13 }
0x175b   :  { %v3404_v49 = vmul.f32 %v3388_v11, %v3276_v58  ;;  %v3406_v26 = vmul.f32 %v3390_v18, %v3365_v62  ;;  %v3428_v0 = vrot.slane %v3419_v15, %v3427_v8  ;;  %v3436_v12 = vrot.slane %v3419_v15, %v3435_v4 }
0x175d   :  { %v3280_v22 = vpop.f32.mrb[26].mxu0  ;;  %v3369_v39 = vpop.f32.mrb[46].mxu1 }
0x175e   :  { %v3407_v24 = vmul.f32 %v3391_v3, %v3280_v22  ;;  %v3409_v31 = vmul.f32 %v3393_v38, %v3369_v39  ;;  %v3282_v25 = vpop.f32.mrb[27].mxu0  ;;  %v3371_v54 = vpop.f32.mrb[47].mxu1 }
0x175f   :  { %v3408_v29 = vmul.f32 %v3392_v59, %v3282_v25  ;;  %v3410_v36 = vmul.f32 %v3394_v35, %v3371_v54 }
0x1760   :  { %v4827_v14 = vpack.c.bf16 %v3407_v24, %v3403_v44  ;;  %v4835_v30 = vpack.c.bf16 %v3409_v31, %v3405_v17 }
0x1761   :  { %v4825_v7 = vpack.c.bf16 %v3408_v29, %v3404_v49  ;;  %v4833_v63 = vpack.c.bf16 %v3410_v36, %v3406_v26  ;;  %v3286_v27 = vpop.f32.mrb[28].mxu0  ;;  %v3375_v32 = vpop.f32.mrb[48].mxu1 }
0x1762   :  { %v3288_v41 = vpop.f32.mrb[29].mxu0  ;;  %v3377_v19 = vpop.f32.mrb[49].mxu1  ;;  %v3411_v50 = vmul.f32 %v3395_v28, %v3286_v27  ;;  %v3413_v57 = vmul.f32 %v3397_v16, %v3375_v32 }
0x1763   :  { %4826 = vmatprep.subr.bf16.mxu0 %v4825_v7  ;;  %4834 = vmatprep.subr.bf16.mxu1 %v4833_v63  ;;  %v3412_v5 = vmul.f32 %v3396_v34, %v3288_v41  ;;  %v3414_v56 = vmul.f32 %v3398_v45, %v3377_v19 }
0x1764   :  { %4828 = vmatpush1.bf16.msra.mxu0 %v4827_v14  ;;  %4836 = vmatpush1.bf16.msra.mxu1 %v4835_v30 }
0x1765   :  { %v3292_v43 = vpop.f32.mrb[30].mxu0  ;;  %v3381_v46 = vpop.f32.mrb[50].mxu1 }
0x1766   :  { %v3415_v1 = vmul.f32 %v3399_v53, %v3292_v43  ;;  %v3417_v60 = vmul.f32 %v3401_v37, %v3381_v46  ;;  %v3294_v20 = vpop.f32.mrb[31].mxu0  ;;  %v3383_v33 = vpop.f32.mrb[51].mxu1 }
0x1767   :  { %v3416_v55 = vmul.f32 %v3400_v9, %v3294_v20  ;;  %v3418_v51 = vmul.f32 %v3402_v47, %v3383_v33 }
0x1768   :  { %v4831_v42 = vpack.c.bf16 %v3415_v1, %v3411_v50  ;;  %v4839_v21 = vpack.c.bf16 %v3417_v60, %v3413_v57 }
0x1769   :  { %v4829_v40 = vpack.c.bf16 %v3416_v55, %v3412_v5  ;;  %v4837_v48 = vpack.c.bf16 %v3418_v51, %v3414_v56 }
0x176b   :  { %4830 = vmatprep.subr.bf16.mxu0 %v4829_v40  ;;  %4838 = vmatprep.subr.bf16.mxu1 %v4837_v48 }
0x176c   :  { %4832 = vmatpush1.bf16.msra.mxu0 %v4831_v42  ;;  %4840 = vmatpush1.bf16.msra.mxu1 %v4839_v21 }
0x176f   :  { %4024 = vmatmul.mubr.msk.f32.vlgmr.msra.gmra.mrb[32].mxu0 %vm843_vm1, %v3386_v6  ;;  %4025 = vmatmul.mubr.msk.f32.vlgmr.msra.gmra.mrb[52].mxu1 %vm843_vm1, %v3386_v6 }
0x1842   :  { %v3510_v58 = vpop.f32.mrb[32].mxu0  ;;  %v3581_v62 = vpop.f32.mrb[52].mxu1 }
0x1843   :  { %v6712_v11 = vadd.f32 %v3510_v58, %v3424_v10  ;;  %v6714_v3 = vadd.f32 %v3581_v62, %v3432_v23  ;;  %v3512_v38 = vpop.f32.mrb[33].mxu0  ;;  %v3583_v18 = vpop.f32.mrb[53].mxu1 }
0x1844   :  { %v3513_v59 = vadd.f32 %v3512_v38, %v3428_v0  ;;  %v6716_v35 = vadd.f32 %v3583_v18, %v3436_v12 }
0x1845   :  { %5138 = dma.done.wait [#allocation4], 8192 }
0x1846   :  { %5139 = vsyncadd [#allocation4], 4294959104  ;;  %v3591_v22 = vpack.c.bf16 %v3513_v59, %v3513_v59  ;;  %v3595_v39 = vld [vmem:[#allocation2 + $0x8] sm:$0xff]  ;;  %v3594_v44 = vld [vmem:[#allocation2] sm:$0xff]  ;;  %v3590_v20 = vpack.c.bf16 %v6712_v11, %v6712_v11  ;;  %v3593_v33 = vpack.c.bf16 %v6716_v35, %v6716_v35 }
0x1847   :  { %v3597_v17 = vld [vmem:[#allocation2 + $0x18] sm:$0xff]  ;;  %3670 = vmatprep.subr.bf16.mxu0 %v3595_v39  ;;  %v3596_v24 = vld [vmem:[#allocation2 + $0x10] sm:$0xff]  ;;  %v3599_v31 = vld [vmem:[#allocation2 + $0x28] sm:$0xff] }
0x1848   :  { %3702 = vmatprep.mubr.bf16.mxu0 %v3591_v22  ;;  %3671 = vmatpush1.bf16.msra.mxu0 %v3594_v44  ;;  %v3598_v25 = vld [vmem:[#allocation2 + $0x20] sm:$0xff]  ;;  %v3601_v54 = vld [vmem:[#allocation2 + $0x38] sm:$0xff]  ;;  %v3600_v49 = vld [vmem:[#allocation2 + $0x30] sm:$0xff] }
0x1849   :  { %3672 = vmatprep.subr.bf16.mxu0 %v3597_v17  ;;  %v3603_v26 = vld [vmem:[#allocation2 + $0x48] sm:$0xff]  ;;  %v3602_v29 = vld [vmem:[#allocation2 + $0x40] sm:$0xff]  ;;  %v3605_v36 = vld [vmem:[#allocation2 + $0x58] sm:$0xff] }
0x184a   :  { %v3604_v14 = vld [vmem:[#allocation2 + $0x50] sm:$0xff]  ;;  %v3607_v30 = vld [vmem:[#allocation2 + $0x68] sm:$0xff]  ;;  %v3606_v7 = vld [vmem:[#allocation2 + $0x60] sm:$0xff] }
0x184b   :  { %v3609_v63 = vld [vmem:[#allocation2 + $0x78] sm:$0xff]  ;;  %v3608_v27 = vld [vmem:[#allocation2 + $0x70] sm:$0xff]  ;;  %v3611_v32 = vld [vmem:[#allocation2 + $0x88] sm:$0xff] }
0x184c   :  { %3673 = vmatpush1.bf16.msra.mxu0 %v3596_v24  ;;  %v3610_v28 = vld [vmem:[#allocation2 + $0x80] sm:$0xff]  ;;  %v3613_v16 = vld [vmem:[#allocation2 + $0x98] sm:$0xff]  ;;  %v3612_v41 = vld [vmem:[#allocation2 + $0x90] sm:$0xff] }
0x184d   :  { %3674 = vmatprep.subr.bf16.mxu0 %v3599_v31  ;;  %v3615_v19 = vld [vmem:[#allocation2 + $0xa8] sm:$0xff]  ;;  %v3614_v34 = vld [vmem:[#allocation2 + $0xa0] sm:$0xff]  ;;  %v3617_v53 = vld [vmem:[#allocation2 + $0xb8] sm:$0xff] }
0x184e   :  { %v3616_v37 = vld [vmem:[#allocation2 + $0xb0] sm:$0xff]  ;;  %v3619_v45 = vld [vmem:[#allocation2 + $0xc8] sm:$0xff]  ;;  %v3618_v9 = vld [vmem:[#allocation2 + $0xc0] sm:$0xff] }
0x184f   :  { %v3621_v47 = vld [vmem:[#allocation2 + $0xd8] sm:$0xff]  ;;  %v3620_v43 = vld [vmem:[#allocation2 + $0xd0] sm:$0xff]  ;;  %v3623_v46 = vld [vmem:[#allocation2 + $0xe8] sm:$0xff] }
0x1850   :  { %3675 = vmatpush1.bf16.msra.mxu0 %v3598_v25  ;;  %v3622_v50 = vld [vmem:[#allocation2 + $0xe0] sm:$0xff]  ;;  %v3625_v57 = vld [vmem:[#allocation2 + $0xf8] sm:$0xff]  ;;  %v3624_v1 = vld [vmem:[#allocation2 + $0xf0] sm:$0xff] }
0x1851   :  { %3676 = vmatprep.subr.bf16.mxu0 %v3601_v54  ;;  %v3627_v60 = vld [vmem:[#allocation2 + $0x108] sm:$0xff]  ;;  %v3626_v5 = vld [vmem:[#allocation2 + $0x100] sm:$0xff]  ;;  %v3629_v56 = vld [vmem:[#allocation2 + $0x118] sm:$0xff]  ;;  %v3592_v54 = vpack.c.bf16 %v6714_v3, %v6714_v3 }
0x1852   :  { %v3628_v55 = vld [vmem:[#allocation2 + $0x110] sm:$0xff]  ;;  %v3631_v51 = vld [vmem:[#allocation2 + $0x128] sm:$0xff]  ;;  %v3630_v42 = vld [vmem:[#allocation2 + $0x120] sm:$0xff] }
0x1853   :  { %v3633_v21 = vld [vmem:[#allocation2 + $0x138] sm:$0xff]  ;;  %v3632_v40 = vld [vmem:[#allocation2 + $0x130] sm:$0xff]  ;;  %v3635_v48 = vld [vmem:[#allocation2 + $0x148] sm:$0xff] }
0x1854   :  { %3677 = vmatpush1.bf16.msra.mxu0 %v3600_v49  ;;  %v3634_v6 = vld [vmem:[#allocation2 + $0x140] sm:$0xff]  ;;  %v3637_v61 = vld [vmem:[#allocation2 + $0x158] sm:$0xff]  ;;  %v3636_v13 = vld [vmem:[#allocation2 + $0x150] sm:$0xff] }
0x1855   :  { %3678 = vmatprep.subr.bf16.mxu0 %v3603_v26  ;;  %v3639_v15 = vld [vmem:[#allocation2 + $0x168] sm:$0xff]  ;;  %v3638_v4 = vld [vmem:[#allocation2 + $0x160] sm:$0xff]  ;;  %v3641_v10 = vld [vmem:[#allocation2 + $0x178] sm:$0xff] }
0x1856   :  { %v3640_v23 = vld [vmem:[#allocation2 + $0x170] sm:$0xff]  ;;  %v3643_v0 = vld [vmem:[#allocation2 + $0x188] sm:$0xff]  ;;  %v3642_v12 = vld [vmem:[#allocation2 + $0x180] sm:$0xff] }
0x1857   :  { %v3645_v58 = vld [vmem:[#allocation2 + $0x198] sm:$0xff]  ;;  %v3644_v62 = vld [vmem:[#allocation2 + $0x190] sm:$0xff]  ;;  %v3647_v11 = vld [vmem:[#allocation2 + $0x1a8] sm:$0xff] }
0x1858   :  { %3679 = vmatpush1.bf16.msra.mxu0 %v3602_v29  ;;  %v3646_v38 = vld [vmem:[#allocation2 + $0x1a0] sm:$0xff]  ;;  %v3649_v18 = vld [vmem:[#allocation2 + $0x1b8] sm:$0xff]  ;;  %v3648_v59 = vld [vmem:[#allocation2 + $0x1b0] sm:$0xff] }
0x1859   :  { %3680 = vmatprep.subr.bf16.mxu0 %v3605_v36  ;;  %v3651_v35 = vld [vmem:[#allocation2 + $0x1c8] sm:$0xff]  ;;  %v3650_v22 = vld [vmem:[#allocation2 + $0x1c0] sm:$0xff]  ;;  %v3653_v39 = vld [vmem:[#allocation2 + $0x1d8] sm:$0xff] }
0x185a   :  { %v3652_v44 = vld [vmem:[#allocation2 + $0x1d0] sm:$0xff]  ;;  %v3655_v17 = vld [vmem:[#allocation2 + $0x1e8] sm:$0xff]  ;;  %v3654_v24 = vld [vmem:[#allocation2 + $0x1e0] sm:$0xff] }
0x185b   :  { %v3657_v31 = vld [vmem:[#allocation2 + $0x1f8] sm:$0xff]  ;;  %v3656_v25 = vld [vmem:[#allocation2 + $0x1f0] sm:$0xff]  ;;  %v3658_v49 = vld [vmem:[%s6778_s16] sm:$0x3] }
0x185c   :  { %3681 = vmatpush1.bf16.msra.mxu0 %v3604_v14  ;;  %v3663_v26 = vrot.slane %v3658_v49, %v3423_v52  ;;  %v3667_v29 = vrot.slane %v3658_v49, %v3427_v8  ;;  %v6853_v2 = vld [vmem:[#allocation20_spill] sm:$0xff] }
0x185d   :  { %3682 = vmatprep.subr.bf16.mxu0 %v3607_v30  ;;  %4207 = vmatprep.subr.bf16.mxu1 %v6853_v2 }
0x1860   :  { %3683 = vmatpush1.bf16.msra.mxu0 %v3606_v7 }
0x1861   :  { %3684 = vmatprep.subr.bf16.mxu0 %v3609_v63 }
0x1864   :  { %3685 = vmatpush1.bf16.msra.mxu0 %v3608_v27 }
0x1865   :  { %3686 = vmatprep.subr.bf16.mxu0 %v3611_v32 }
0x1868   :  { %3687 = vmatpush1.bf16.msra.mxu0 %v3610_v28 }
0x1869   :  { %3688 = vmatprep.subr.bf16.mxu0 %v3613_v16 }
0x186c   :  { %3689 = vmatpush1.bf16.msra.mxu0 %v3612_v41 }
0x186d   :  { %3690 = vmatprep.subr.bf16.mxu0 %v3615_v19 }
0x1870   :  { %3691 = vmatpush1.bf16.msra.mxu0 %v3614_v34 }
0x1871   :  { %3692 = vmatprep.subr.bf16.mxu0 %v3617_v53 }
0x1874   :  { %3693 = vmatpush1.bf16.msra.mxu0 %v3616_v37 }
0x1875   :  { %3694 = vmatprep.subr.bf16.mxu0 %v3619_v45 }
0x1878   :  { %3695 = vmatpush1.bf16.msra.mxu0 %v3618_v9 }
0x1879   :  { %3696 = vmatprep.subr.bf16.mxu0 %v3621_v47 }
0x187c   :  { %3697 = vmatpush1.bf16.msra.mxu0 %v3620_v43 }
0x187d   :  { %3698 = vmatprep.subr.bf16.mxu0 %v3623_v46 }
0x1880   :  { %3699 = vmatpush1.bf16.msra.mxu0 %v3622_v50 }
0x1881   :  { %3700 = vmatprep.subr.bf16.mxu0 %v3625_v57 }
0x1884   :  { %3701 = vmatpush1.bf16.msra.mxu0 %v3624_v1 }
0x1885   :  { %3711 = vmatprep.subr.bf16.mxu0 %v3627_v60 }
0x1887   :  { %3703 = vmatmul.mubr.bf16.vlgmr.msra.gmra.mrb[36].mxu0 %v3590_v20 }
0x1888   :  { %3712 = vmatpush1.bf16.msra.mxu0 %v3626_v5  ;;  %3743 = vmatprep.mubr.bf16.mxu0 %v3593_v33 }
0x1889   :  { %3713 = vmatprep.subr.bf16.mxu0 %v3629_v56 }
0x188c   :  { %3714 = vmatpush1.bf16.msra.mxu0 %v3628_v55 }
0x188d   :  { %3715 = vmatprep.subr.bf16.mxu0 %v3631_v51 }
0x1890   :  { %3716 = vmatpush1.bf16.msra.mxu0 %v3630_v42 }
0x1891   :  { %3717 = vmatprep.subr.bf16.mxu0 %v3633_v21 }
0x1894   :  { %3718 = vmatpush1.bf16.msra.mxu0 %v3632_v40 }
0x1895   :  { %3719 = vmatprep.subr.bf16.mxu0 %v3635_v48 }
0x1898   :  { %3720 = vmatpush1.bf16.msra.mxu0 %v3634_v6 }
0x1899   :  { %3721 = vmatprep.subr.bf16.mxu0 %v3637_v61 }
0x189c   :  { %3722 = vmatpush1.bf16.msra.mxu0 %v3636_v13 }
0x189d   :  { %3723 = vmatprep.subr.bf16.mxu0 %v3639_v15 }
0x18a0   :  { %3724 = vmatpush1.bf16.msra.mxu0 %v3638_v4 }
0x18a1   :  { %3725 = vmatprep.subr.bf16.mxu0 %v3641_v10 }
0x18a4   :  { %3726 = vmatpush1.bf16.msra.mxu0 %v3640_v23 }
0x18a5   :  { %3727 = vmatprep.subr.bf16.mxu0 %v3643_v0 }
0x18a8   :  { %3728 = vmatpush1.bf16.msra.mxu0 %v3642_v12 }
0x18a9   :  { %3729 = vmatprep.subr.bf16.mxu0 %v3645_v58 }
0x18ac   :  { %3730 = vmatpush1.bf16.msra.mxu0 %v3644_v62 }
0x18ad   :  { %3731 = vmatprep.subr.bf16.mxu0 %v3647_v11 }
0x18b0   :  { %3732 = vmatpush1.bf16.msra.mxu0 %v3646_v38 }
0x18b1   :  { %3733 = vmatprep.subr.bf16.mxu0 %v3649_v18 }
0x18b4   :  { %3734 = vmatpush1.bf16.msra.mxu0 %v3648_v59 }
0x18b5   :  { %3735 = vmatprep.subr.bf16.mxu0 %v3651_v35 }
0x18b8   :  { %3736 = vmatpush1.bf16.msra.mxu0 %v3650_v22 }
0x18b9   :  { %3737 = vmatprep.subr.bf16.mxu0 %v3653_v39 }
0x18bc   :  { %3738 = vmatpush1.bf16.msra.mxu0 %v3652_v44 }
0x18bd   :  { %3739 = vmatprep.subr.bf16.mxu0 %v3655_v17 }
0x18c0   :  { %3740 = vmatpush1.bf16.msra.mxu0 %v3654_v24 }
0x18c1   :  { %3741 = vmatprep.subr.bf16.mxu0 %v3657_v31 }
0x18c4   :  { %3742 = vmatpush1.bf16.msra.mxu0 %v3656_v25 }
0x18c7   :  { %3744 = vmatmul.mubr.bf16.vlgmr.msra.gmra.mrb[36].mxu0 %v3592_v54 }
0x199a   :  { %v3745_v36 = vpop.f32.mrb[36].mxu0 }
0x199b   :  { %v4841_v14 = vadd.f32 %v3745_v36, %v3663_v26  ;;  %v3747_v30 = vpop.f32.mrb[37].mxu0 }
0x199c   :  { %v4842_v7 = vadd.f32 %v3747_v30, %v3667_v29  ;;  %v3749_v63 = vpop.f32.mrb[38].mxu0 }
0x199d   :  { %v3754_v27 = vmul.f32 0.70710677, %v4841_v14  ;;  %v3750_v32 = vpop.f32.mrb[39].mxu0  ;;  %v3752_v41 = vmul.f32 0.5, %v4841_v14 }
0x199e   :  { %v3755_v3 = vmul.f32 0.70710677, %v4842_v7  ;;  %v3753_v34 = vmul.f32 0.5, %v4842_v7 }
0x199f   :  { %5112 = verf.f32 %v3754_v27 }
0x19a0   :  { %5114 = verf.f32 %v3755_v3 }
0x19a9   :  { %v5113_v28 = vpop.eup %5112 }
0x19aa   :  { %v5115_v16 = vpop.eup %5114  ;;  %v3758_v19 = vadd.f32 1.0, %v5113_v28 }
0x19ab   :  { %v3759_v53 = vadd.f32 1.0, %v5115_v16 }
0x19ac   :  { %v3760_v52 = vmul.f32 %v3758_v19, %v3752_v41 }
0x19ad   :  { %v3761_v37 = vmul.f32 %v3759_v53, %v3753_v34 }
0x19af   :  { %v3767_v8 = vpack.c.bf16 %v3761_v37, %v3761_v37 }
0x19b0   :  { %5140 = dma.done.wait [#allocation4 + $0x1], 2048 }
0x19b1   :  { %5141 = vsyncadd [#allocation4 + $0x1], 4294965248  ;;  %v6854_v45 = vld [vmem:[#allocation12_spill] sm:$0xff]  ;;  %v6855_v9 = vld [vmem:[#allocation21_spill] sm:$0xff]  ;;  %3823 = vmatprep.mubr.bf16.mxu1 %v3767_v8  ;;  %v3766_v51 = vpack.c.bf16 %v3760_v52, %v3760_v52  ;;  %s5148_s0 = smov [#allocation5]  }
0x19b2   :  { %4208 = vmatpush3.bf16.msra.mxu1 %v6854_v45  ;;  %v6856_v47 = vld [vmem:[#allocation13_spill] sm:$0xff]  ;;  %v6857_v43 = vld [vmem:[#allocation22_spill] sm:$0xff]  ;;  %v6859_v50 = vld [vmem:[#allocation23_spill] sm:$0xff]  ;;  %s3838_s19 = sshll.u32 %s5148_s0, 4  ;;  %s3839_s19 = int_to_ptr.vmem [resolvable:$true] %s3838_s19 }
0x19b3   :  { %4209 = vmatprep.subr.bf16.mxu1 %v6855_v9  ;;  %v6858_v46 = vld [vmem:[#allocation14_spill] sm:$0xff]  ;;  %v6860_v57 = vld [vmem:[#allocation15_spill] sm:$0xff]  ;;  %v6861_v1 = vld [vmem:[#allocation24_spill] sm:$0xff]  ;;  %s5116_s5 = scalar_lea.vmem %s3839_s19, 32  ;;  %p5121_p1 = scmp.lt.s32.totalorder %s3839_s19, %s3839_s19 }
0x19b4   :  { %v6862_v60 = vld [vmem:[#allocation16_spill] sm:$0xff]  ;;  %v6863_v20 = vld [vmem:[#allocation25_spill] sm:$0xff]  ;;  %v6865_v5 = vld [vmem:[#allocation26_spill] sm:$0xff]  ;;  %p5117_p0 = scmp.ne.s32.totalorder %s3839_s19, %s5116_s5  ;;  %p5122_p2 = scmp.lt.s32.totalorder %s5116_s5, %s5116_s5 }
0x19b5   :  { %v6864_v33 = vld [vmem:[#allocation17_spill] sm:$0xff]  ;;  %v6866_v56 = vld [vmem:[#allocation18_spill] sm:$0xff]  ;;  %v6867_v55 = vld [vmem:[#allocation27_spill] sm:$0xff] }
0x19b6   :  { %4210 = vmatpush3.bf16.msra.mxu1 %v6856_v47  ;;  %v6868_v42 = vld [vmem:[#allocation19_spill] sm:$0xff]  ;;  %p5123_p3 = por %p5122_p2, %p5121_p1 }
0x19b7   :  { %4211 = vmatprep.subr.bf16.mxu1 %v6857_v43  ;;  %v4026_v40 = vld [vmem:[%s6779_s17] ss:$0 sm:$0xff] }
0x19b8   :  { %p5124_p4 = pnand %p5123_p3, %p5117_p0 }
0x19ba   :  { %4212 = vmatpush3.bf16.msra.mxu1 %v6858_v46 }
0x19bb   :  { %4213 = vmatprep.subr.bf16.mxu1 %v6859_v50 }
0x19be   :  { %4214 = vmatpush3.bf16.msra.mxu1 %v6860_v57 }
0x19bf   :  { %4215 = vmatprep.subr.bf16.mxu1 %v6861_v1 }
0x19c2   :  { %4216 = vmatpush3.bf16.msra.mxu1 %v6862_v60 }
0x19c3   :  { %4217 = vmatprep.subr.bf16.mxu1 %v6863_v20 }
0x19c6   :  { %4218 = vmatpush3.bf16.msra.mxu1 %v6864_v33 }
0x19c7   :  { %4219 = vmatprep.subr.bf16.mxu1 %v6865_v5 }
0x19ca   :  { %4220 = vmatpush3.bf16.msra.mxu1 %v6866_v56 }
0x19cb   :  { %4221 = vmatprep.subr.bf16.mxu1 %v6867_v55 }
0x19ce   :  { %4222 = vmatpush3.bf16.msra.mxu1 %v6868_v42 }
0x19d1   :  { %3824 = vmatmul.mubr.bf16.vlgmr.msra.gmra.mrb[56].mxu1 %v3766_v51 }
0x1aa4   :  { %v4223_v21 = vpop.f32.mrb[56].mxu1 }
0x1aa5   :  { %v4224_v48 = vpop.f32.mrb[57].mxu1 }
0x1aa6   :  { %v4225_v6 = vadd.f32 %v4224_v48, %v4223_v21  ;;  %v4226_v61 = vpop.f32.mrb[58].mxu1 }
0x1aa7   :  { %v4227_v13 = vpop.f32.mrb[59].mxu1 }
0x1aa8   :  { %v3826_v15 = vadd.f32 %v4225_v6, %v4026_v40 }
0x1aaa   :  { %3831 = vst [vmem:[#allocation5] sm:$0x3] %v3826_v15 }
0x1aab   :  { %5127 = shalt.err (!%p5124_p4)
}
0x1aac   :  { %s5128_s17 = scalar_lea.hbm %s6789_s27, 32 }
0x1aad   :  { %p5129_p5 = scmp.ne.s32.totalorder %s6789_s27, %s5128_s17  ;;  %p5132_p6 = scmp.lt.u32.totalorder %s5128_s17, %s6789_s27 }
0x1aaf   :  { %p5134_p7 = pnand %p5132_p6, %p5129_p5 }
0x1ab1   :  { %5137 = shalt.err (!%p5134_p7)
}
0x1ab2   :  { %3841 = dma.vmem_to_hbm [thread:$0]  %s3839_s19, 32, %s6789_s27, [#allocation6]  }
0x1ab3   :  { %5142 = dma.done.wait [#allocation6], 32  }
0x1ab4   :  { %5143 = vsyncadd [#allocation6], 4294967264 }
0x1ab5   :  { %3845 = vsyncpa [#allocation6], 1 }
0x1ab6   :  { %3846 = vsyncmov [#allocation4] }
0x1ab9   :  { %s3847_s10 = vpop.sfrf %3846 }
0x1aba   :  { %p4027_p8 = scmp.ne.s32.totalorder %s3847_s10, 0 }
0x1abc   :  { %3851 = shalt.err (%p4027_p8)  }
0x1abd   :  { %3853 = vsyncmov [#allocation4 + $0x1] }
0x1ac0   :  { %s3854_s4 = vpop.sfrf %3853 }
0x1ac1   :  { %p4028_p9 = scmp.ne.s32.totalorder %s3854_s4, 0 }
0x1ac3   :  { %3858 = shalt.err (%p4028_p9)  }

</bundles_post_ra>
